<compile_context>
chip_gen: v6e
topology: v6e:2x2x1
jax: 0.10.0
libtpu: 0.0.40
codegen_flags: <defaults>
</compile_context>

<pallas_src>
from math import sqrt

import jax
import jax.numpy as jnp
from jax.experimental import pallas as pl
from jax.experimental.pallas import tpu as pltpu

# ---- small, module-consistent config (synthetic; the original uses (3,128,128)/opts) ----
IMG_SHAPE = (3, 16, 16)          # C, H, W  (small stand-in for (3, 128, 128))
NUM_CLASSES = 10                 # opts.numClasses
HIDDEN = 512
D_IN = NUM_CLASSES + IMG_SHAPE[0] * IMG_SHAPE[1] * IMG_SHAPE[2]   # 778

TB = 128                         # batch tile (MXU M dim; 256 also good on v6e/v7x)
TK = 512                         # contraction tile for layer 1 (1024-2048 at real size)
OUT_PAD = 128                    # lane-dense width for the final 512->1 layer
D_IN_PAD = pl.cdiv(D_IN, TK) * TK   # 1024 -> lane-aligned, 2 K-steps at the toy size


def _leaky_relu(x, slope=0.2):
    # For 0 < slope < 1, LeakyReLU(x) == max(x, slope*x): one vmul + one vmax.
    return jnp.maximum(x, slope * x)


def discriminator_kernel(x_ref, w1_ref, b1_ref, w2_ref, b2_ref,
                         w3_ref, b3_ref, w4_ref, b4_ref, out_ref, acc_ref):
    # Grid = (batch tiles, K tiles of D_IN). Layer 1 is accumulated across the K axis
    # into an fp32 scratch; layers 2-4 run once per batch tile at the last K step.
    k = pl.program_id(1)

    @pl.when(k == 0)
    def _():
        # Fold the layer-1 bias into the accumulator init (replaces zeros-init + later add).
        acc_ref[...] = jnp.broadcast_to(b1_ref[...], acc_ref.shape)

    # Layer 1 (K-tiled): bf16 x bf16 -> fp32 accumulate on the MXU.
    acc_ref[...] += jnp.dot(x_ref[...], w1_ref[...],
                            preferred_element_type=jnp.float32)

    @pl.when(k == pl.num_programs(1) - 1)
    def _():
        h = _leaky_relu(acc_ref[...])                                  # fp32

        h = jnp.dot(h.astype(jnp.bfloat16), w2_ref[...],
                    preferred_element_type=jnp.float32) + b2_ref[...]
        # Dropout(0.4): identity in eval mode.
        h = _leaky_relu(h)

        h = jnp.dot(h.astype(jnp.bfloat16), w3_ref[...],
                    preferred_element_type=jnp.float32) + b3_ref[...]
        # Dropout(0.4): identity in eval mode.
        h = _leaky_relu(h)

        # Lane-dense final layer: W4/b4 are zero-padded to OUT_PAD columns; column 0
        # holds the real logit, the rest are zeros (sliced off in the wrapper).
        out = jnp.dot(h.astype(jnp.bfloat16), w4_ref[...],
                      preferred_element_type=jnp.float32) + b4_ref[...]
        out_ref[...] = out.astype(out_ref.dtype)


def prepare_params(params):
    """Pad + cast natural-shape fp32 params into kernel layout.

    Weights -> bf16 (W1 rows zero-padded to D_IN_PAD; W4/b4 columns zero-padded to
    OUT_PAD). Biases stay fp32 since they are added to fp32 accumulations.
    """
    w1, b1, w2, b2, w3, b3, w4, b4 = params
    w1p = jnp.pad(w1, ((0, D_IN_PAD - D_IN), (0, 0))).astype(jnp.bfloat16)
    w4p = jnp.pad(w4, ((0, 0), (0, OUT_PAD - w4.shape[1]))).astype(jnp.bfloat16)
    b4p = jnp.pad(b4, ((0, 0), (0, OUT_PAD - b4.shape[1])))
    return (w1p, b1,
            w2.astype(jnp.bfloat16), b2,
            w3.astype(jnp.bfloat16), b3,
            w4p, b4p)


@jax.jit
def discriminator_forward(img, labels, kernel_params):
    """img: (B, C, H, W) float32 (NCHW, like PyTorch); labels: (B, NUM_CLASSES) float32."""
    B = img.shape[0]
    d_in = jnp.concatenate([img.reshape(B, -1), labels], axis=-1)
    d_in = d_in.astype(jnp.bfloat16)                     # bf16 input DMA / MXU operand

    # Pad batch to TB (sublane/MXU-M aligned) and features to D_IN_PAD (lane aligned).
    B_pad = pl.cdiv(B, TB) * TB
    d_in_p = jnp.pad(d_in, ((0, B_pad - B), (0, D_IN_PAD - D_IN)))

    w1, b1, w2, b2, w3, b3, w4, b4 = kernel_params

    const_spec = lambda shape: pl.BlockSpec(shape, lambda i, k: (0, 0))
    grid = (B_pad // TB, D_IN_PAD // TK)

    # Advisory cost hint for XLA's scheduler around the custom call (all Python ints).
    flops = 2 * B_pad * (D_IN_PAD * HIDDEN + 2 * HIDDEN * HIDDEN + HIDDEN * OUT_PAD)
    bytes_accessed = (
        B_pad * D_IN_PAD * 2
        + sum(int(p.size) * p.dtype.itemsize for p in kernel_params)
        + B_pad * OUT_PAD * 4)
    cost = pl.CostEstimate(flops=flops, transcendentals=0,
                           bytes_accessed=bytes_accessed)

    # Rough VMEM budget at the toy size (double-buffered where the block index moves):
    #   d_in 2*128*512*2B + W1 2*512*512*2B + (W2+W3) 2*512*512*2B each + W4/biases
    #   + out 2*128*128*4B + acc 128*512*4B  ~= 4.5 MiB  -> 32 MiB limit is ample.
    out_p = pl.pallas_call(
        discriminator_kernel,
        out_shape=jax.ShapeDtypeStruct((B_pad, OUT_PAD), jnp.float32),
        grid_spec=pltpu.PrefetchScalarGridSpec(
            num_scalar_prefetch=0,
            grid=grid,
            in_specs=[
                pl.BlockSpec((TB, TK), lambda i, k: (i, k)),       # d_in tile
                pl.BlockSpec((TK, HIDDEN), lambda i, k: (k, 0)),   # W1 (streamed over K)
                const_spec((1, HIDDEN)),                           # b1
                const_spec((HIDDEN, HIDDEN)),                      # W2
                const_spec((1, HIDDEN)),                           # b2
                const_spec((HIDDEN, HIDDEN)),                      # W3
                const_spec((1, HIDDEN)),                           # b3
                const_spec((HIDDEN, OUT_PAD)),                     # W4 (lane-padded)
                const_spec((1, OUT_PAD)),                          # b4 (lane-padded)
            ],
            out_specs=pl.BlockSpec((TB, OUT_PAD), lambda i, k: (i, 0)),
            scratch_shapes=[pltpu.VMEM((TB, HIDDEN), jnp.float32)],  # layer-1 accumulator
        ),
        compiler_params=pltpu.CompilerParams(
            dimension_semantics=("parallel", "arbitrary"),
            vmem_limit_bytes=32 * 1024 * 1024,
        ),
        cost_estimate=cost,
    )(d_in_p, w1, b1, w2, b2, w3, b3, w4, b4)

    return out_p[:B, :1]


def init_params(key):
    """Deterministic init mirroring nn.Linear's U(-1/sqrt(fan_in), 1/sqrt(fan_in))."""
    def linear(k, fan_in, fan_out):
        kw, kb = jax.random.split(k)
        bound = 1.0 / sqrt(fan_in)
        w = jax.random.uniform(kw, (fan_in, fan_out), jnp.float32, -bound, bound)
        b = jax.random.uniform(kb, (1, fan_out), jnp.float32, -bound, bound)
        return w, b

    k1, k2, k3, k4 = jax.random.split(key, 4)
    w1, b1 = linear(k1, D_IN, HIDDEN)
    w2, b2 = linear(k2, HIDDEN, HIDDEN)
    w3, b3 = linear(k3, HIDDEN, HIDDEN)
    w4, b4 = linear(k4, HIDDEN, 1)
    return (w1, b1, w2, b2, w3, b3, w4, b4)


def reference_forward(img, labels, params):
    """Pure-JAX reference mirroring the kernel numerics (bf16 operands, fp32 accumulate)."""
    w1, b1, w2, b2, w3, b3, w4, b4 = params
    bf = lambda a: a.astype(jnp.bfloat16).astype(jnp.float32)
    B = img.shape[0]
    x = bf(jnp.concatenate([img.reshape(B, -1), labels], axis=-1))
    lrelu = lambda v: jnp.where(v > 0, v, 0.2 * v)
    h = lrelu(x @ bf(w1) + b1)
    h = lrelu(bf(h) @ bf(w2) + b2)     # Dropout(0.4): eval identity
    h = lrelu(bf(h) @ bf(w3) + b3)     # Dropout(0.4): eval identity
    return bf(h) @ bf(w4) + b4


if __name__ == "__main__":
    key = jax.random.PRNGKey(0)
    kp, ki, kl = jax.random.split(key, 3)

    params = init_params(kp)                 # natural fp32 shapes (like the nn.Module)
    kparams = prepare_params(params)         # padded / bf16 kernel layout

    B = 2
    img = jax.random.normal(ki, (B,) + IMG_SHAPE, jnp.float32)           # (2, 3, 16, 16)
    labels_idx = jax.random.randint(kl, (B,), 0, NUM_CLASSES)
    labels = jax.nn.one_hot(labels_idx, NUM_CLASSES, dtype=jnp.float32)  # (2, 10)

    out = discriminator_forward(img, labels, kparams)
    out = jax.block_until_ready(out)

    ref = reference_forward(img, labels, params)
    assert out.shape == (B, 1), out.shape
    assert jnp.allclose(out, ref, atol=2e-3, rtol=2e-3), (out, ref)

    print("KERNEL_OK")
</pallas_src>

<mosaic_0001>
module attributes {stable_mosaic.version = 11 : i64} {
  func.func @discriminator_kernel(%arg0: i32, %arg1: i32, %arg2: memref<128x512xbf16, #tpu.memory_space<vmem>>, %arg3: memref<512x512xbf16, #tpu.memory_space<vmem>>, %arg4: memref<1x512xf32, #tpu.memory_space<vmem>>, %arg5: memref<512x512xbf16, #tpu.memory_space<vmem>>, %arg6: memref<1x512xf32, #tpu.memory_space<vmem>>, %arg7: memref<512x512xbf16, #tpu.memory_space<vmem>>, %arg8: memref<1x512xf32, #tpu.memory_space<vmem>>, %arg9: memref<512x128xbf16, #tpu.memory_space<vmem>>, %arg10: memref<1x128xf32, #tpu.memory_space<vmem>>, %arg11: memref<128x128xf32, #tpu.memory_space<vmem>>, %arg12: memref<128x512xf32, #tpu.memory_space<vmem>>) attributes {dimension_semantics = [#tpu.dimension_semantics<parallel>, #tpu.dimension_semantics<arbitrary>], iteration_bounds = array<i64: 1, 2>, scalar_prefetch = 0 : i64, scratch_operands = 1 : i64, tpu.core_type = #tpu.core_type<tc>, window_params = [{transform_indices = @transform_0, window_bounds = array<i64: 128, 512>}, {transform_indices = @transform_1, window_bounds = array<i64: 512, 512>}, {pipeline_mode = #tpu.pipeline_mode<synchronous>, transform_indices = @transform_2, window_bounds = array<i64: 1, 512>}, {pipeline_mode = #tpu.pipeline_mode<synchronous>, transform_indices = @transform_3, window_bounds = array<i64: 512, 512>}, {pipeline_mode = #tpu.pipeline_mode<synchronous>, transform_indices = @transform_4, window_bounds = array<i64: 1, 512>}, {pipeline_mode = #tpu.pipeline_mode<synchronous>, transform_indices = @transform_5, window_bounds = array<i64: 512, 512>}, {pipeline_mode = #tpu.pipeline_mode<synchronous>, transform_indices = @transform_6, window_bounds = array<i64: 1, 512>}, {pipeline_mode = #tpu.pipeline_mode<synchronous>, transform_indices = @transform_7, window_bounds = array<i64: 512, 128>}, {pipeline_mode = #tpu.pipeline_mode<synchronous>, transform_indices = @transform_8, window_bounds = array<i64: 1, 128>}, {transform_indices = @transform_9, window_bounds = array<i64: 128, 128>}]} {
    %c0_i32 = arith.constant 0 : i32
    %0 = arith.cmpi eq, %arg1, %c0_i32 : i32
    %1 = arith.extui %0 : i1 to i32
    %c0_i32_0 = arith.constant 0 : i32
    %2 = arith.cmpi ne, %1, %c0_i32_0 : i32
    scf.if %2 {
      %c0_9 = arith.constant 0 : index
      %c0_10 = arith.constant 0 : index
      %12 = vector.load %arg4[%c0_9, %c0_10] : memref<1x512xf32, #tpu.memory_space<vmem>>, vector<1x512xf32>
      %13 = vector.shape_cast %12 : vector<1x512xf32> to vector<1x512xf32>
      %14 = vector.broadcast %13 : vector<1x512xf32> to vector<128x512xf32>
      %c0_11 = arith.constant 0 : index
      %c0_12 = arith.constant 0 : index
      %15 = vector.load %arg12[%c0_11, %c0_12] : memref<128x512xf32, #tpu.memory_space<vmem>>, vector<128x512xf32>
      tpu.vector_store %arg12[%c0_11, %c0_12], %14 {strides = array<i32>} : memref<128x512xf32, #tpu.memory_space<vmem>>, vector<128x512xf32>,
    } else {
    }
    %c0 = arith.constant 0 : index
    %c0_1 = arith.constant 0 : index
    %3 = vector.load %arg12[%c0, %c0_1] : memref<128x512xf32, #tpu.memory_space<vmem>>, vector<128x512xf32>
    %c0_2 = arith.constant 0 : index
    %c0_3 = arith.constant 0 : index
    %4 = vector.load %arg2[%c0_2, %c0_3] : memref<128x512xbf16, #tpu.memory_space<vmem>>, vector<128x512xbf16>
    %c0_4 = arith.constant 0 : index
    %c0_5 = arith.constant 0 : index
    %5 = vector.load %arg3[%c0_4, %c0_5] : memref<512x512xbf16, #tpu.memory_space<vmem>>, vector<512x512xbf16>
    %cst = arith.constant dense<0.000000e+00> : vector<128x512xf32>
    %6 = tpu.matmul %4, %5, %cst {dimension_numbers = #tpu.dot_dimension_numbers<[1], [0], [0], [1], [0, 0, 1, 1], [], []>} : vector<128x512xbf16>, vector<512x512xbf16>, vector<128x512xf32> -> vector<128x512xf32>
    %7 = arith.addf %3, %6 : vector<128x512xf32>
    %c0_6 = arith.constant 0 : index
    %c0_7 = arith.constant 0 : index
    %8 = vector.load %arg12[%c0_6, %c0_7] : memref<128x512xf32, #tpu.memory_space<vmem>>, vector<128x512xf32>
    tpu.vector_store %arg12[%c0_6, %c0_7], %7 {strides = array<i32>} : memref<128x512xf32, #tpu.memory_space<vmem>>, vector<128x512xf32>,
    %c1_i32 = arith.constant 1 : i32
    %9 = arith.cmpi eq, %arg1, %c1_i32 : i32
    %10 = arith.extui %9 : i1 to i32
    %c0_i32_8 = arith.constant 0 : i32
    %11 = arith.cmpi ne, %10, %c0_i32_8 : i32
    scf.if %11 {
      %c0_9 = arith.constant 0 : index
      %c0_10 = arith.constant 0 : index
      %12 = vector.load %arg12[%c0_9, %c0_10] : memref<128x512xf32, #tpu.memory_space<vmem>>, vector<128x512xf32>
      %cst_11 = arith.constant 2.000000e-01 : f32
      %13 = vector.broadcast %cst_11 : f32 to vector<128x512xf32>
      %14 = arith.mulf %13, %12 : vector<128x512xf32>
      %15 = arith.maximumf %12, %14 : vector<128x512xf32>
      %16 = arith.truncf %15 : vector<128x512xf32> to vector<128x512xbf16>
      %c0_12 = arith.constant 0 : index
      %c0_13 = arith.constant 0 : index
      %17 = vector.load %arg5[%c0_12, %c0_13] : memref<512x512xbf16, #tpu.memory_space<vmem>>, vector<512x512xbf16>
      %cst_14 = arith.constant dense<0.000000e+00> : vector<128x512xf32>
      %18 = tpu.matmul %16, %17, %cst_14 {dimension_numbers = #tpu.dot_dimension_numbers<[1], [0], [0], [1], [0, 0, 1, 1], [], []>} : vector<128x512xbf16>, vector<512x512xbf16>, vector<128x512xf32> -> vector<128x512xf32>
      %c0_15 = arith.constant 0 : index
      %c0_16 = arith.constant 0 : index
      %19 = vector.load %arg6[%c0_15, %c0_16] : memref<1x512xf32, #tpu.memory_space<vmem>>, vector<1x512xf32>
      %20 = vector.broadcast %19 : vector<1x512xf32> to vector<128x512xf32>
      %21 = arith.addf %18, %20 : vector<128x512xf32>
      %cst_17 = arith.constant 2.000000e-01 : f32
      %22 = vector.broadcast %cst_17 : f32 to vector<128x512xf32>
      %23 = arith.mulf %22, %21 : vector<128x512xf32>
      %24 = arith.maximumf %21, %23 : vector<128x512xf32>
      %25 = arith.truncf %24 : vector<128x512xf32> to vector<128x512xbf16>
      %c0_18 = arith.constant 0 : index
      %c0_19 = arith.constant 0 : index
      %26 = vector.load %arg7[%c0_18, %c0_19] : memref<512x512xbf16, #tpu.memory_space<vmem>>, vector<512x512xbf16>
      %cst_20 = arith.constant dense<0.000000e+00> : vector<128x512xf32>
      %27 = tpu.matmul %25, %26, %cst_20 {dimension_numbers = #tpu.dot_dimension_numbers<[1], [0], [0], [1], [0, 0, 1, 1], [], []>} : vector<128x512xbf16>, vector<512x512xbf16>, vector<128x512xf32> -> vector<128x512xf32>
      %c0_21 = arith.constant 0 : index
      %c0_22 = arith.constant 0 : index
      %28 = vector.load %arg8[%c0_21, %c0_22] : memref<1x512xf32, #tpu.memory_space<vmem>>, vector<1x512xf32>
      %29 = vector.broadcast %28 : vector<1x512xf32> to vector<128x512xf32>
      %30 = arith.addf %27, %29 : vector<128x512xf32>
      %cst_23 = arith.constant 2.000000e-01 : f32
      %31 = vector.broadcast %cst_23 : f32 to vector<128x512xf32>
      %32 = arith.mulf %31, %30 : vector<128x512xf32>
      %33 = arith.maximumf %30, %32 : vector<128x512xf32>
      %34 = arith.truncf %33 : vector<128x512xf32> to vector<128x512xbf16>
      %c0_24 = arith.constant 0 : index
      %c0_25 = arith.constant 0 : index
      %35 = vector.load %arg9[%c0_24, %c0_25] : memref<512x128xbf16, #tpu.memory_space<vmem>>, vector<512x128xbf16>
      %cst_26 = arith.constant dense<0.000000e+00> : vector<128x128xf32>
      %36 = tpu.matmul %34, %35, %cst_26 {dimension_numbers = #tpu.dot_dimension_numbers<[1], [0], [0], [1], [0, 0, 1, 1], [], []>} : vector<128x512xbf16>, vector<512x128xbf16>, vector<128x128xf32> -> vector<128x128xf32>
      %c0_27 = arith.constant 0 : index
      %c0_28 = arith.constant 0 : index
      %37 = vector.load %arg10[%c0_27, %c0_28] : memref<1x128xf32, #tpu.memory_space<vmem>>, vector<1x128xf32>
      %38 = vector.broadcast %37 : vector<1x128xf32> to vector<128x128xf32>
      %39 = arith.addf %36, %38 : vector<128x128xf32>
      %c0_29 = arith.constant 0 : index
      %c0_30 = arith.constant 0 : index
      %40 = vector.load %arg11[%c0_29, %c0_30] : memref<128x128xf32, #tpu.memory_space<vmem>>, vector<128x128xf32>
      tpu.vector_store %arg11[%c0_29, %c0_30], %39 {strides = array<i32>} : memref<128x128xf32, #tpu.memory_space<vmem>>, vector<128x128xf32>,
    } else {
    }
    return
  }
  func.func @transform_0(%arg0: i32, %arg1: i32) -> (i32, i32) {
    %c0_i32 = arith.constant 0 : i32
    return %arg0, %arg1 : i32, i32
  }
  func.func @transform_1(%arg0: i32, %arg1: i32) -> (i32, i32) {
    %c0_i32 = arith.constant 0 : i32
    %c0_i32_0 = arith.constant 0 : i32
    return %arg1, %c0_i32 : i32, i32
  }
  func.func @transform_2(%arg0: i32, %arg1: i32) -> (i32, i32) {
    %c0_i32 = arith.constant 0 : i32
    %c0_i32_0 = arith.constant 0 : i32
    %c0_i32_1 = arith.constant 0 : i32
    return %c0_i32, %c0_i32_0 : i32, i32
  }
  func.func @transform_3(%arg0: i32, %arg1: i32) -> (i32, i32) {
    %c0_i32 = arith.constant 0 : i32
    %c0_i32_0 = arith.constant 0 : i32
    %c0_i32_1 = arith.constant 0 : i32
    return %c0_i32, %c0_i32_0 : i32, i32
  }
  func.func @transform_4(%arg0: i32, %arg1: i32) -> (i32, i32) {
    %c0_i32 = arith.constant 0 : i32
    %c0_i32_0 = arith.constant 0 : i32
    %c0_i32_1 = arith.constant 0 : i32
    return %c0_i32, %c0_i32_0 : i32, i32
  }
  func.func @transform_5(%arg0: i32, %arg1: i32) -> (i32, i32) {
    %c0_i32 = arith.constant 0 : i32
    %c0_i32_0 = arith.constant 0 : i32
    %c0_i32_1 = arith.constant 0 : i32
    return %c0_i32, %c0_i32_0 : i32, i32
  }
  func.func @transform_6(%arg0: i32, %arg1: i32) -> (i32, i32) {
    %c0_i32 = arith.constant 0 : i32
    %c0_i32_0 = arith.constant 0 : i32
    %c0_i32_1 = arith.constant 0 : i32
    return %c0_i32, %c0_i32_0 : i32, i32
  }
  func.func @transform_7(%arg0: i32, %arg1: i32) -> (i32, i32) {
    %c0_i32 = arith.constant 0 : i32
    %c0_i32_0 = arith.constant 0 : i32
    %c0_i32_1 = arith.constant 0 : i32
    return %c0_i32, %c0_i32_0 : i32, i32
  }
  func.func @transform_8(%arg0: i32, %arg1: i32) -> (i32, i32) {
    %c0_i32 = arith.constant 0 : i32
    %c0_i32_0 = arith.constant 0 : i32
    %c0_i32_1 = arith.constant 0 : i32
    return %c0_i32, %c0_i32_0 : i32, i32
  }
  func.func @transform_9(%arg0: i32, %arg1: i32) -> (i32, i32) {
    %c0_i32 = arith.constant 0 : i32
    %c0_i32_0 = arith.constant 0 : i32
    return %arg0, %c0_i32 : i32, i32
  }
}

</mosaic_0001>

<bundles_post_ra>
// kernel: discriminator_forward.1
= control target key start
LH: loop header
LB: loop body
LE: loop exit
PB: predicated region body
PF: predicated region fallthrough
CT: control target
= control target key end

     0   :  { %s8626_s0 = inlined_call_operand.vmem [shape: bf16[128,1024], index: 0, kind: input, shape index: {}]   ;;  %s8627_s1 = inlined_call_operand.hbm [shape: bf16[1024,512], index: 1, kind: input, shape index: {}]   ;;  %s8628_s2 = inlined_call_operand.vmem [shape: f32[1,512], index: 2, kind: input, shape index: {}]   ;;  %s8629_s3 = inlined_call_operand.hbm [shape: bf16[512,512], index: 3, kind: input, shape index: {}]   ;;  %s8630_s4 = inlined_call_operand.vmem [shape: f32[1,512], index: 4, kind: input, shape index: {}]   ;;  %s8631_s5 = inlined_call_operand.hbm [shape: bf16[512,512], index: 5, kind: input, shape index: {}]   ;;  %s8632_s6 = inlined_call_operand.vmem [shape: f32[1,512], index: 6, kind: input, shape index: {}]   ;;  %s8633_s7 = inlined_call_operand.vmem [shape: bf16[512,128], index: 7, kind: input, shape index: {}]   ;;  %s8634_s8 = inlined_call_operand.vmem [shape: f32[1,128], index: 8, kind: input, shape index: {}]   ;;  %s8635_s9 = inlined_call_operand.vmem [shape: f32[128,128], index: 9, kind: output, shape index: {}]  }
   0x1   :  { %8640 = sst [smem:[#allocation12_spill]] %s8626_s0 }
   0x2   :  { %8641 = sst [smem:[#allocation13_spill]] %s8629_s3 }
   0x3   :  { %14 = vsyncpa [#allocation5], 0 }
   0x4   :  { %16 = vsyncpa [#allocation5 + $0x1], 0 }
   0x5   :  { %17 = vsyncpa [#allocation7], 0  ;;  %s7344_s30 = smov 0   ;;  %s7346_s10 = smov 0  }
   0x6   :  { %s7348_s11 = smov 0   ;;  %s7350_s12 = smov 0  }
   0x7   :  { %s7352_s13 = smov 0   ;;  %s7354_s14 = smov 0  }
   0x8 LB: > { %s5819_s15 = sadd.s32 4294967295, %s7285_s14   ;;  %s32_s16 = sadd.s32 1, %s7281_s13  ;;  %s7285_s14 = sphi %s7354_s14, %s23_s14   ;;  %s7281_s13 = sphi %s7352_s13, %s8657_s13   ;;  %s7277_s12 = sphi %s7350_s12, %s8656_s12   ;;  %s7273_s11 = sphi %s7348_s11, %s8655_s11   ;;  %s7269_s10 = sphi %s7346_s10, %s8654_s10   ;;  %s7265_s30 = sphi %s7344_s30, %s8653_s30  }
   0x9   : > { %p33_p0 = scmp.ge.s32.totalorder %s32_s16, 2  ;;  %s44_s17 = sadd.s32 1, %s7273_s11 }
   0xa   : > { %p51_p1 = scmp.ne.s32.totalorder %s7273_s11, %s7269_s10  ;;  %p52_p2 = scmp.eq.s32.totalorder %s7285_s14, 0 }
   0xb   : > { %s8659_s16 = smov (%p33_p0, %s32_s16), 0  ;;  %p83_p4 = scmp.ne.s32.totalorder %s7269_s10, %s7265_s30 }
   0xc   : > { %8642 = sst [smem:[#allocation11_spill]] %s8659_s16  ;;  %p7380_p3 = por %p52_p2, %p51_p1 }
   0xd   : > { %s40_s19 = ssub.s32 %s7281_s13, %s8659_s16  ;;  %p7387_p5 = scmp.eq.s32.totalorder %s5819_s15, 0 }
   0xe   : > { %p42_p6 = scmp.eq.s32.totalorder %s40_s19, 0  ;;  %p5820_p7 = scmp.ge.s32.totalorder %s7285_s14, 1 }
   0xf   : > { %s8644_s20 = scalar_select %p7387_p5, 1, 0 }
  0x10   : > { %p7394_p8 = por %p7387_p5, %p83_p4  ;;  %p267_p9 = scmp.lt.s32.totalorder %s7285_s14, 3 }
  0x11   : > { %s7400_s22 = scalar_select %p42_p6, %s7273_s11, %s44_s17  }
  0x12   : > { %s8645_s21 = scalar_select %p7394_p8, 1, 0 }
  0x13   : > { %p7402_p10 = pnand %p5820_p7, %p267_p9  ;;  %s7287_s24 = smov [#allocation6]  }
  0x14   : > { %s282_s25 = sshll.u32 %s7287_s24, 4  ;;  %s7288_s27 = smov [#allocation8]   ;;  %s283_s25 = int_to_ptr.vmem [resolvable:$true] %s282_s25 }
  0x15   : > { %p6432_p11 = pneg %p7402_p10  ;;  %s298_s28 = sshll.u32 %s7288_s27, 4  ;;  %s299_s28 = int_to_ptr.vmem [resolvable:$true] %s298_s28 }
  0x16   : > { %s7164_s29 = scalar_lea.vmem %s283_s25, 16384  ;;  %p7172_p4 = scmp.lt.s32.totalorder %s283_s25, %s283_s25 }
  0x17   : > { %p7410_p12 = pnand %p6432_p11, %p7387_p5  ;;  %p7165_p0 = scmp.ne.s32.totalorder %s283_s25, %s7164_s29 }
  0x18   : > { %p7173_p6 = scmp.lt.s32.totalorder %s7164_s29, %s7164_s29 }
  0x19   : > { %p7155_p13 = pneg %p7410_p12 }
  0x1a   : > { %p7174_p7 = por %p7173_p6, %p7172_p4 }
  0x1b   : > { %p7167_p1 = pnand %p7165_p0, %p7155_p13 }
  0x1d   : > { %p7168_p2 = pneg %p7167_p1 }
  0x1f   : > { %p7175_p9 = pnand %p7174_p7, %p7168_p2 }
  0x21   : > { %7178 = shalt.err (!%p7175_p9)
}
  0x22   : > { %s7289_s30 = smov 256   ;;  %s7290_s15 = smov 16  }
  0x23   : > { %s8648_s3 = sld [smem:[#allocation13_spill]]  ;;  %s7190_s24 = scalar_lea.vmem %s299_s28, 16384 }
  0x24   : > { %p7191_p11 = scmp.ne.s32.totalorder %s299_s28, %s7190_s24  ;;  %p7198_p5 = scmp.lt.s32.totalorder %s299_s28, %s299_s28 }
  0x25   : > { %p7199_p8 = scmp.lt.s32.totalorder %s7190_s24, %s7190_s24 }
  0x26   : > { %p7193_p0 = pnand %p7191_p11, %p7155_p13 }
  0x27   : > { %p7200_p4 = por %p7199_p8, %p7198_p5 }
  0x28   : > { %p7194_p1 = pneg %p7193_p0 }
  0x29   : > { %6435 = dma.hbm_to_vmem [thread:$0]  (!%p7410_p12), %s8648_s3, 16384, %s283_s25, [#allocation7], %s7289_s30, %s7289_s30, %s7290_s15  }
  0x2a   : > { %p7201_p2 = pnand %p7200_p4, %p7194_p1 }
  0x2c   : > { %7204 = shalt.err (!%p7201_p2)
}
  0x2d   : > { %6438 = dma.hbm_to_vmem [thread:$0]  (!%p7410_p12), %s8631_s5, 16384, %s299_s28, [#allocation7], %s7289_s30, %s7289_s30, %s7290_s15  }
  0x2e   : > { %p5823_p6 = scmp.ge.s32.totalorder %s7285_s14, 2 }
  0x30   : > { %317 = sbr.rel (%p5823_p6) target bundleno = 95 (0x5f), region = 44 }
  0x35   : > { %320 = sbr.rel (!%p7380_p3) target bundleno = 79 (0x4f), region = 48  ;;  %s322_s25 = sand.u32 (%p7380_p3), 1, %s7273_s11  }
  0x36   : > { %s6291_s17 = sshll.u32 (%p7380_p3), %s7281_s13, 4  ;;  %s5824_s19 = sshll.u32 (%p7380_p3), %s322_s25, 8 }
  0x37   : > { %s8649_s0 = sld [smem:[#allocation12_spill]] (%p7380_p3)  ;;  %s7445_s26 = scalar_lea.vmem (%p7380_p3), [#allocation3], %s5824_s19 }
  0x3d   : > { %s7440_s16 = scalar_lea.vmem %s8649_s0, %s6291_s17 }
  0x3e   : > { %v343_v0 = vld [vmem:[%s7440_s16] sm:$0xff]  ;;  %v345_v1 = vld [vmem:[%s7440_s16 + $0x8] sm:$0xff] }
  0x3f   : > { %v347_v2 = vld [vmem:[%s7440_s16 + $0x20] sm:$0xff]  ;;  %344 = vst [vmem:[%s7445_s26] sm:$0xff] %v343_v0  ;;  %346 = vst [vmem:[%s7445_s26 + $0x8] sm:$0xff] %v345_v1  ;;  %v349_v3 = vld [vmem:[%s7440_s16 + $0x28] sm:$0xff] }
  0x40   : > { %348 = vst [vmem:[%s7445_s26 + $0x10] sm:$0xff] %v347_v2  ;;  %v351_v4 = vld [vmem:[%s7440_s16 + $0x40] sm:$0xff]  ;;  %v353_v5 = vld [vmem:[%s7440_s16 + $0x48] sm:$0xff]  ;;  %350 = vst [vmem:[%s7445_s26 + $0x18] sm:$0xff] %v349_v3 }
  0x41   : > { %352 = vst [vmem:[%s7445_s26 + $0x20] sm:$0xff] %v351_v4  ;;  %354 = vst [vmem:[%s7445_s26 + $0x28] sm:$0xff] %v353_v5  ;;  %v355_v6 = vld [vmem:[%s7440_s16 + $0x60] sm:$0xff]  ;;  %v357_v7 = vld [vmem:[%s7440_s16 + $0x68] sm:$0xff] }
  0x42   : > { %v359_v8 = vld [vmem:[%s7440_s16 + $0x80] sm:$0xff]  ;;  %356 = vst [vmem:[%s7445_s26 + $0x30] sm:$0xff] %v355_v6  ;;  %358 = vst [vmem:[%s7445_s26 + $0x38] sm:$0xff] %v357_v7  ;;  %v361_v9 = vld [vmem:[%s7440_s16 + $0x88] sm:$0xff] }
  0x43   : > { %360 = vst [vmem:[%s7445_s26 + $0x40] sm:$0xff] %v359_v8  ;;  %v363_v10 = vld [vmem:[%s7440_s16 + $0xa0] sm:$0xff]  ;;  %v365_v11 = vld [vmem:[%s7440_s16 + $0xa8] sm:$0xff]  ;;  %362 = vst [vmem:[%s7445_s26 + $0x48] sm:$0xff] %v361_v9 }
  0x44   : > { %364 = vst [vmem:[%s7445_s26 + $0x50] sm:$0xff] %v363_v10  ;;  %366 = vst [vmem:[%s7445_s26 + $0x58] sm:$0xff] %v365_v11  ;;  %v367_v12 = vld [vmem:[%s7440_s16 + $0xc0] sm:$0xff]  ;;  %v369_v13 = vld [vmem:[%s7440_s16 + $0xc8] sm:$0xff] }
  0x45   : > { %v371_v14 = vld [vmem:[%s7440_s16 + $0xe0] sm:$0xff]  ;;  %368 = vst [vmem:[%s7445_s26 + $0x60] sm:$0xff] %v367_v12  ;;  %370 = vst [vmem:[%s7445_s26 + $0x68] sm:$0xff] %v369_v13  ;;  %v373_v15 = vld [vmem:[%s7440_s16 + $0xe8] sm:$0xff] }
  0x46   : > { %372 = vst [vmem:[%s7445_s26 + $0x70] sm:$0xff] %v371_v14  ;;  %v375_v16 = vld [vmem:[%s7440_s16 + $0x100] sm:$0xff]  ;;  %v377_v17 = vld [vmem:[%s7440_s16 + $0x108] sm:$0xff]  ;;  %374 = vst [vmem:[%s7445_s26 + $0x78] sm:$0xff] %v373_v15 }
  0x47   : > { %376 = vst [vmem:[%s7445_s26 + $0x80] sm:$0xff] %v375_v16  ;;  %378 = vst [vmem:[%s7445_s26 + $0x88] sm:$0xff] %v377_v17  ;;  %v379_v18 = vld [vmem:[%s7440_s16 + $0x120] sm:$0xff]  ;;  %v381_v19 = vld [vmem:[%s7440_s16 + $0x128] sm:$0xff] }
  0x48   : > { %v383_v20 = vld [vmem:[%s7440_s16 + $0x140] sm:$0xff]  ;;  %380 = vst [vmem:[%s7445_s26 + $0x90] sm:$0xff] %v379_v18  ;;  %382 = vst [vmem:[%s7445_s26 + $0x98] sm:$0xff] %v381_v19  ;;  %v385_v21 = vld [vmem:[%s7440_s16 + $0x148] sm:$0xff] }
  0x49   : > { %384 = vst [vmem:[%s7445_s26 + $0xa0] sm:$0xff] %v383_v20  ;;  %v387_v22 = vld [vmem:[%s7440_s16 + $0x160] sm:$0xff]  ;;  %v389_v23 = vld [vmem:[%s7440_s16 + $0x168] sm:$0xff]  ;;  %386 = vst [vmem:[%s7445_s26 + $0xa8] sm:$0xff] %v385_v21 }
  0x4a   : > { %388 = vst [vmem:[%s7445_s26 + $0xb0] sm:$0xff] %v387_v22  ;;  %390 = vst [vmem:[%s7445_s26 + $0xb8] sm:$0xff] %v389_v23  ;;  %v391_v24 = vld [vmem:[%s7440_s16 + $0x180] sm:$0xff]  ;;  %v393_v25 = vld [vmem:[%s7440_s16 + $0x188] sm:$0xff] }
  0x4b   : > { %v395_v26 = vld [vmem:[%s7440_s16 + $0x1a0] sm:$0xff]  ;;  %392 = vst [vmem:[%s7445_s26 + $0xc0] sm:$0xff] %v391_v24  ;;  %394 = vst [vmem:[%s7445_s26 + $0xc8] sm:$0xff] %v393_v25  ;;  %v397_v27 = vld [vmem:[%s7440_s16 + $0x1a8] sm:$0xff] }
  0x4c   : > { %396 = vst [vmem:[%s7445_s26 + $0xd0] sm:$0xff] %v395_v26  ;;  %v399_v28 = vld [vmem:[%s7440_s16 + $0x1c0] sm:$0xff]  ;;  %v401_v29 = vld [vmem:[%s7440_s16 + $0x1c8] sm:$0xff]  ;;  %398 = vst [vmem:[%s7445_s26 + $0xd8] sm:$0xff] %v397_v27 }
  0x4d   : > { %400 = vst [vmem:[%s7445_s26 + $0xe0] sm:$0xff] %v399_v28  ;;  %402 = vst [vmem:[%s7445_s26 + $0xe8] sm:$0xff] %v401_v29  ;;  %v403_v30 = vld [vmem:[%s7440_s16 + $0x1e0] sm:$0xff]  ;;  %v405_v31 = vld [vmem:[%s7440_s16 + $0x1e8] sm:$0xff] }
  0x4e   : > { %404 = vst [vmem:[%s7445_s26 + $0xf0] sm:$0xff] %v403_v30  ;;  %406 = vst [vmem:[%s7445_s26 + $0xf8] sm:$0xff] %v405_v31 }
  0x4f PF: > { %s413_s3 = sand.u32 1, %s7273_s11   ;;  %s6293_s28 = sshll.u32 %s7281_s13, 14 }
  0x50   : > { %s5827_s30 = sshll.u32 %s413_s3, 10  ;;  %s424_s29 = scalar_lea.hbm %s8627_s1, %s6293_s28 }
  0x51   : > { %s417_s25 = scalar_lea.vmem [#allocation4], %s5827_s30  ;;  %s414_s19 = scalar_lea.sflag [#allocation5], %s413_s3 }
  0x52   : > { %s425_s17 = sshll.u32 %s417_s25, 4  ;;  %s7291_s16 = smov [#allocation4]   ;;  %s426_s17 = int_to_ptr.vmem [resolvable:$true] %s425_s17 }
  0x53   : > { %s7217_s24 = scalar_lea.vmem %s426_s17, 16384  ;;  %s7221_s26 = sshll.u32 %s7291_s16, 4  ;;  %s7222_s26 = int_to_ptr.vmem [resolvable:$false] %s7221_s26 }
  0x54   : > { %p7218_p5 = scmp.ne.s32.totalorder %s426_s17, %s7217_s24  ;;  %s7223_s0 = scalar_lea.vmem %s7222_s26, 32768 }
  0x55   : > { %p7224_p13 = scmp.lt.s32.totalorder %s426_s17, %s7222_s26  ;;  %p7225_p7 = scmp.lt.s32.totalorder %s7223_s0, %s7217_s24 }
  0x56   : > { %p7219_p8 = pnand %p7218_p5, %p7380_p3 }
  0x57   : > { %p7226_p9 = por %p7225_p7, %p7224_p13 }
  0x58   : > { %p7220_p12 = pneg %p7219_p8 }
  0x5a   : > { %p7227_p11 = pnand %p7226_p9, %p7220_p12 }
  0x5c   : > { %7230 = shalt.err (!%p7227_p11)
}
  0x5d   : > { %s7292_s15 = smov 256   ;;  %s7293_s28 = smov 16  }
  0x5e   : > { %6426 = dma.hbm_to_vmem [thread:$0]  (%p7380_p3), %s424_s29, 16384, %s426_s17, %s414_s19, %s7292_s15, %s7292_s15, %s7293_s28  }
  0x5f PF: > { %437 = sbr.rel (%p7402_p10) target bundleno = 1412 (0x584), region = 75  ;;  %s440_s3 = sand.u32 (!%p7402_p10), 1, %s7269_s10  }
  0x60   : > { %s5832_s30 = sshll.u32 (!%p7402_p10), %s440_s3, 8  ;;  %s5833_s27 = sshll.u32 (!%p7402_p10), %s440_s3, 10 }
  0x61   : > { %s7520_s25 = scalar_lea.vmem (!%p7402_p10), [#allocation3], %s5832_s30  ;;  %s447_s0 = scalar_lea.sflag (!%p7402_p10), [#allocation5], %s440_s3 }
  0x62   : > { %s7522_s24 = scalar_lea.vmem (!%p7402_p10), [#allocation4], %s5833_s27  ;;  %p8650_p0 = scmp.ne.s32.totalorder (!%p7402_p10), %s8645_s21, 0 }
  0x64   : > { %7256 = dma.done.wait (%p8650_p0), %s447_s0, 16384  }
  0x65   : > { %7258 = vsyncadd (%p8650_p0), %s447_s0, 4294950912  ;;  %p8651_p3 = scmp.ne.s32.totalorder %s8644_s20, 0 }
  0x67   : > { %7260 = dma.done.wait (%p8651_p3), [#allocation7], 32768  }
  0x68   : > { %7262 = vsyncadd (%p8651_p3), [#allocation7], 4294934528  ;;  %p5836_p10 = scmp.ne.s32.totalorder %s7277_s12, 0 }
  0x6a   : > { %510 = sbr.rel (%p5836_p10) target bundleno = 151 (0x97), region = 95 }
  0x6f   : > { %v513_v32 = vlaneseq  ;;  %v511_v34 = vld [vmem:[%s8628_s2] sm:$0xf] }
  0x71   : > { %v514_v33 = vshrl.u32 %v513_v32, 7 }
  0x73   : > { %v515_v35 = vsub.s32 0, %v514_v33  ;;  %v519_v36 = vsub.s32 1, %v514_v33  ;;  %v523_v37 = vsub.s32 2, %v514_v33  ;;  %v527_v38 = vsub.s32 3, %v514_v33 }
  0x75   : > { %v516_v39 = vrot.slane %v511_v34, %v515_v35  ;;  %v520_v40 = vrot.slane %v511_v34, %v519_v36  ;;  %v524_v41 = vrot.slane %v511_v34, %v523_v37  ;;  %v7536_v42 = vrot.slane %v511_v34, %v527_v38 }
  0x77   : > { %533 = vst [vmem:[#allocation2 + $0xb0] sm:$0xff] %v516_v39  ;;  %537 = vst [vmem:[#allocation2 + $0x50] sm:$0xff] %v516_v39 }
  0x78   : > { %541 = vst [vmem:[#allocation2 + $0x180] sm:$0xff] %v516_v39  ;;  %545 = vst [vmem:[#allocation2 + $0x120] sm:$0xff] %v516_v39 }
  0x79   : > { %549 = vst [vmem:[#allocation2 + $0xe0] sm:$0xff] %v516_v39  ;;  %553 = vst [vmem:[#allocation2 + $0x80] sm:$0xff] %v516_v39 }
  0x7a   : > { %557 = vst [vmem:[#allocation2 + $0x1e8] sm:$0xff] %v516_v39  ;;  %561 = vst [vmem:[#allocation2 + $0x1e0] sm:$0xff] %v516_v39 }
  0x7b   : > { %565 = vst [vmem:[#allocation2 + $0x148] sm:$0xff] %v516_v39  ;;  %569 = vst [vmem:[#allocation2 + $0x40] sm:$0xff] %v516_v39 }
  0x7c   : > { %573 = vst [vmem:[#allocation2 + $0x1a0] sm:$0xff] %v516_v39  ;;  %577 = vst [vmem:[#allocation2 + $0x70] sm:$0xff] %v516_v39 }
  0x7d   : > { %581 = vst [vmem:[#allocation2 + $0xb8] sm:$0xff] %v516_v39  ;;  %585 = vst [vmem:[#allocation2 + $0x170] sm:$0xff] %v516_v39 }
  0x7e   : > { %589 = vst [vmem:[#allocation2 + $0x198] sm:$0xff] %v516_v39  ;;  %593 = vst [vmem:[#allocation2 + $0x158] sm:$0xff] %v516_v39 }
  0x7f   : > { %534 = vst [vmem:[#allocation2 + $0x1b0] sm:$0xff] %v520_v40  ;;  %538 = vst [vmem:[#allocation2 + $0x168] sm:$0xff] %v520_v40 }
  0x80   : > { %542 = vst [vmem:[#allocation2 + $0x110] sm:$0xff] %v520_v40  ;;  %546 = vst [vmem:[#allocation2 + $0x150] sm:$0xff] %v520_v40 }
  0x81   : > { %550 = vst [vmem:[#allocation2 + $0x188] sm:$0xff] %v520_v40  ;;  %554 = vst [vmem:[#allocation2 + $0x1a8] sm:$0xff] %v520_v40 }
  0x82   : > { %558 = vst [vmem:[#allocation2 + $0xf8] sm:$0xff] %v520_v40  ;;  %562 = vst [vmem:[#allocation2] sm:$0xff] %v520_v40 }
  0x83   : > { %566 = vst [vmem:[#allocation2 + $0x1d0] sm:$0xff] %v520_v40  ;;  %570 = vst [vmem:[#allocation2 + $0x1f8] sm:$0xff] %v520_v40 }
  0x84   : > { %574 = vst [vmem:[#allocation2 + $0x1f0] sm:$0xff] %v520_v40  ;;  %578 = vst [vmem:[#allocation2 + $0x90] sm:$0xff] %v520_v40 }
  0x85   : > { %582 = vst [vmem:[#allocation2 + $0x88] sm:$0xff] %v520_v40  ;;  %586 = vst [vmem:[#allocation2 + $0x178] sm:$0xff] %v520_v40 }
  0x86   : > { %590 = vst [vmem:[#allocation2 + $0x38] sm:$0xff] %v520_v40  ;;  %594 = vst [vmem:[#allocation2 + $0x10] sm:$0xff] %v520_v40 }
  0x87   : > { %535 = vst [vmem:[#allocation2 + $0xd8] sm:$0xff] %v524_v41  ;;  %539 = vst [vmem:[#allocation2 + $0x130] sm:$0xff] %v524_v41 }
  0x88   : > { %543 = vst [vmem:[#allocation2 + $0x118] sm:$0xff] %v524_v41  ;;  %547 = vst [vmem:[#allocation2 + $0x108] sm:$0xff] %v524_v41 }
  0x89   : > { %551 = vst [vmem:[#allocation2 + $0x138] sm:$0xff] %v524_v41  ;;  %555 = vst [vmem:[#allocation2 + $0x1b8] sm:$0xff] %v524_v41 }
  0x8a   : > { %559 = vst [vmem:[#allocation2 + $0x160] sm:$0xff] %v524_v41  ;;  %563 = vst [vmem:[#allocation2 + $0xf0] sm:$0xff] %v524_v41 }
  0x8b   : > { %567 = vst [vmem:[#allocation2 + $0x100] sm:$0xff] %v524_v41  ;;  %571 = vst [vmem:[#allocation2 + $0x20] sm:$0xff] %v524_v41 }
  0x8c   : > { %575 = vst [vmem:[#allocation2 + $0xe8] sm:$0xff] %v524_v41  ;;  %579 = vst [vmem:[#allocation2 + $0x1d8] sm:$0xff] %v524_v41 }
  0x8d   : > { %583 = vst [vmem:[#allocation2 + $0xa8] sm:$0xff] %v524_v41  ;;  %587 = vst [vmem:[#allocation2 + $0x68] sm:$0xff] %v524_v41 }
  0x8e   : > { %591 = vst [vmem:[#allocation2 + $0xc0] sm:$0xff] %v524_v41  ;;  %595 = vst [vmem:[#allocation2 + $0x58] sm:$0xff] %v524_v41 }
  0x8f   : > { %536 = vst [vmem:[#allocation2 + $0x18] sm:$0xff] %v7536_v42  ;;  %540 = vst [vmem:[#allocation2 + $0x48] sm:$0xff] %v7536_v42 }
  0x90   : > { %544 = vst [vmem:[#allocation2 + $0x98] sm:$0xff] %v7536_v42  ;;  %548 = vst [vmem:[#allocation2 + $0x60] sm:$0xff] %v7536_v42 }
  0x91   : > { %552 = vst [vmem:[#allocation2 + $0x140] sm:$0xff] %v7536_v42  ;;  %556 = vst [vmem:[#allocation2 + $0x28] sm:$0xff] %v7536_v42 }
  0x92   : > { %560 = vst [vmem:[#allocation2 + $0x30] sm:$0xff] %v7536_v42  ;;  %564 = vst [vmem:[#allocation2 + $0x8] sm:$0xff] %v7536_v42 }
  0x93   : > { %568 = vst [vmem:[#allocation2 + $0xc8] sm:$0xff] %v7536_v42  ;;  %572 = vst [vmem:[#allocation2 + $0x128] sm:$0xff] %v7536_v42 }
  0x94   : > { %576 = vst [vmem:[#allocation2 + $0x78] sm:$0xff] %v7536_v42  ;;  %580 = vst [vmem:[#allocation2 + $0xd0] sm:$0xff] %v7536_v42 }
  0x95   : > { %584 = vst [vmem:[#allocation2 + $0x1c8] sm:$0xff] %v7536_v42  ;;  %588 = vst [vmem:[#allocation2 + $0x190] sm:$0xff] %v7536_v42 }
  0x96   : > { %592 = vst [vmem:[#allocation2 + $0x1c0] sm:$0xff] %v7536_v42  ;;  %596 = vst [vmem:[#allocation2 + $0xa0] sm:$0xff] %v7536_v42 }
  0x97 PF: > { %v6497_v43 = vld [vmem:[%s7522_s24 + $0xe4] ss:$16 sps:$4 sm:$0xff]   ;;  %v6501_v45 = vld [vmem:[%s7522_s24 + $0xe0] ss:$16 sps:$4 sm:$0xff]   ;;  %v7608_v30 = vld [vmem:[%s7520_s25 + $0xc] ss:$16 sps:$4 sm:$0xff]  }
  0x98   : > { %v6499_v44 = vld [vmem:[%s7522_s24 + $0x2e4] ss:$16 sps:$4 sm:$0xff]   ;;  %1621 = vmatprep.subr.bf16.mxu0 %v6497_v43  ;;  %v6502_v46 = vld [vmem:[%s7522_s24 + $0x2e0] ss:$16 sps:$4 sm:$0xff]   ;;  %1766 = vmatprep.mubr.bf16.mxu1 %v7608_v30  ;;  %p5997_p1 = scmp.ne.s32.totalorder %s7277_s12, 1 }
  0x99   : > { %1734 = vmatprep.subr.bf16.mxu1 %v6499_v44  ;;  %v6503_v47 = vld [vmem:[%s7522_s24 + $0xc4] ss:$16 sps:$4 sm:$0xff]   ;;  %1622 = vmatpush1.bf16.msra.mxu0 %v6501_v45  ;;  %v6507_v49 = vld [vmem:[%s7522_s24 + $0xc0] ss:$16 sps:$4 sm:$0xff]   ;;  %v6601_v45 = vld [vmem:[%s7522_s24 + $0xec] ss:$16 sps:$4 sm:$0xff]  }
  0x9a   : > { %1735 = vmatpush1.bf16.msra.mxu1 %v6502_v46  ;;  %v6505_v48 = vld [vmem:[%s7522_s24 + $0x2c4] ss:$16 sps:$4 sm:$0xff]   ;;  %1623 = vmatprep.subr.bf16.mxu0 %v6503_v47  ;;  %v6508_v50 = vld [vmem:[%s7522_s24 + $0x2c0] ss:$16 sps:$4 sm:$0xff]   ;;  %v6604_v46 = vld [vmem:[%s7522_s24 + $0x2ec] ss:$16 sps:$4 sm:$0xff]  }
  0x9b   : > { %1736 = vmatprep.subr.bf16.mxu1 %v6505_v48  ;;  %v6509_v51 = vld [vmem:[%s7522_s24 + $0xa4] ss:$16 sps:$4 sm:$0xff]   ;;  %v6513_v53 = vld [vmem:[%s7522_s24 + $0xa0] ss:$16 sps:$4 sm:$0xff]   ;;  %v7632_v48 = vld [vmem:[%s7520_s25 + $0x8] ss:$16 sps:$4 sm:$0xff]  }
  0x9c   : > { %v6511_v52 = vld [vmem:[%s7522_s24 + $0x2a4] ss:$16 sps:$4 sm:$0xff]   ;;  %v6514_v54 = vld [vmem:[%s7522_s24 + $0x2a0] ss:$16 sps:$4 sm:$0xff]  }
  0x9d   : > { %1624 = vmatpush1.bf16.msra.mxu0 %v6507_v49  ;;  %v6515_v55 = vld [vmem:[%s7522_s24 + $0x84] ss:$16 sps:$4 sm:$0xff]   ;;  %v6519_v57 = vld [vmem:[%s7522_s24 + $0x80] ss:$16 sps:$4 sm:$0xff]   ;;  %v6599_v49 = vld [vmem:[%s7522_s24 + $0xe8] ss:$16 sps:$4 sm:$0xff]  }
  0x9e   : > { %1737 = vmatpush1.bf16.msra.mxu1 %v6508_v50  ;;  %1625 = vmatprep.subr.bf16.mxu0 %v6509_v51  ;;  %v6517_v56 = vld [vmem:[%s7522_s24 + $0x284] ss:$16 sps:$4 sm:$0xff]   ;;  %v6520_v58 = vld [vmem:[%s7522_s24 + $0x280] ss:$16 sps:$4 sm:$0xff]   ;;  %v6602_v50 = vld [vmem:[%s7522_s24 + $0x2e8] ss:$16 sps:$4 sm:$0xff]  }
  0x9f   : > { %1738 = vmatprep.subr.bf16.mxu1 %v6511_v52  ;;  %v6521_v59 = vld [vmem:[%s7522_s24 + $0x64] ss:$16 sps:$4 sm:$0xff]   ;;  %v6525_v61 = vld [vmem:[%s7522_s24 + $0x60] ss:$16 sps:$4 sm:$0xff]   ;;  %v6607_v51 = vld [vmem:[%s7522_s24 + $0xcc] ss:$16 sps:$4 sm:$0xff]  }
  0xa0   : > { %v6523_v60 = vld [vmem:[%s7522_s24 + $0x264] ss:$16 sps:$4 sm:$0xff]   ;;  %v6526_v62 = vld [vmem:[%s7522_s24 + $0x260] ss:$16 sps:$4 sm:$0xff]   ;;  %v6610_v52 = vld [vmem:[%s7522_s24 + $0x2cc] ss:$16 sps:$4 sm:$0xff]  }
  0xa1   : > { %1626 = vmatpush1.bf16.msra.mxu0 %v6513_v53  ;;  %v6527_v63 = vld [vmem:[%s7522_s24 + $0x44] ss:$16 sps:$4 sm:$0xff]   ;;  %v6531_v1 = vld [vmem:[%s7522_s24 + $0x40] ss:$16 sps:$4 sm:$0xff]  }
  0xa2   : > { %1739 = vmatpush1.bf16.msra.mxu1 %v6514_v54  ;;  %1627 = vmatprep.subr.bf16.mxu0 %v6515_v55  ;;  %v6529_v0 = vld [vmem:[%s7522_s24 + $0x244] ss:$16 sps:$4 sm:$0xff]   ;;  %v6532_v2 = vld [vmem:[%s7522_s24 + $0x240] ss:$16 sps:$4 sm:$0xff]   ;;  %v7642_v54 = vld [vmem:[%s7520_s25 + $0x2c] ss:$16 sps:$4 sm:$0xff]  }
  0xa3   : > { %1740 = vmatprep.subr.bf16.mxu1 %v6517_v56  ;;  %v6533_v3 = vld [vmem:[%s7522_s24 + $0x24] ss:$16 sps:$4 sm:$0xff]   ;;  %v6537_v5 = vld [vmem:[%s7522_s24 + $0x20] ss:$16 sps:$4 sm:$0xff]   ;;  %v6605_v55 = vld [vmem:[%s7522_s24 + $0xc8] ss:$16 sps:$4 sm:$0xff]  }
  0xa4   : > { %v6535_v4 = vld [vmem:[%s7522_s24 + $0x224] ss:$16 sps:$4 sm:$0xff]   ;;  %v6538_v6 = vld [vmem:[%s7522_s24 + $0x220] ss:$16 sps:$4 sm:$0xff]   ;;  %v6608_v56 = vld [vmem:[%s7522_s24 + $0x2c8] ss:$16 sps:$4 sm:$0xff]  }
  0xa5   : > { %1628 = vmatpush1.bf16.msra.mxu0 %v6519_v57  ;;  %v6539_v7 = vld [vmem:[%s7522_s24 + $0x4] ss:$16 sps:$4 sm:$0xff]   ;;  %v6543_v9 = vld [vmem:[%s7522_s24] ss:$16 sps:$4 sm:$0xff]   ;;  %v6619_v57 = vld [vmem:[%s7522_s24 + $0xac] ss:$16 sps:$4 sm:$0xff]  }
  0xa6   : > { %1741 = vmatpush1.bf16.msra.mxu1 %v6520_v58  ;;  %1629 = vmatprep.subr.bf16.mxu0 %v6521_v59  ;;  %v6541_v8 = vld [vmem:[%s7522_s24 + $0x204] ss:$16 sps:$4 sm:$0xff]   ;;  %v6544_v10 = vld [vmem:[%s7522_s24 + $0x200] ss:$16 sps:$4 sm:$0xff]   ;;  %v6622_v58 = vld [vmem:[%s7522_s24 + $0x2ac] ss:$16 sps:$4 sm:$0xff]  }
  0xa7   : > { %1742 = vmatprep.subr.bf16.mxu1 %v6523_v60  ;;  %v6545_v11 = vld [vmem:[%s7522_s24 + $0x1e4] ss:$16 sps:$4 sm:$0xff]   ;;  %v6549_v13 = vld [vmem:[%s7522_s24 + $0x1e0] ss:$16 sps:$4 sm:$0xff]   ;;  %v7656_v60 = vld [vmem:[%s7520_s25 + $0x28] ss:$16 sps:$4 sm:$0xff]  }
  0xa8   : > { %v6547_v12 = vld [vmem:[%s7522_s24 + $0x3e4] ss:$16 sps:$4 sm:$0xff]   ;;  %v6550_v14 = vld [vmem:[%s7522_s24 + $0x3e0] ss:$16 sps:$4 sm:$0xff]  }
  0xa9   : > { %1630 = vmatpush1.bf16.msra.mxu0 %v6525_v61  ;;  %v6551_v15 = vld [vmem:[%s7522_s24 + $0x1c4] ss:$16 sps:$4 sm:$0xff]   ;;  %v6555_v17 = vld [vmem:[%s7522_s24 + $0x1c0] ss:$16 sps:$4 sm:$0xff]   ;;  %v6617_v61 = vld [vmem:[%s7522_s24 + $0xa8] ss:$16 sps:$4 sm:$0xff]  }
  0xaa   : > { %1743 = vmatpush1.bf16.msra.mxu1 %v6526_v62  ;;  %1631 = vmatprep.subr.bf16.mxu0 %v6527_v63  ;;  %v6553_v16 = vld [vmem:[%s7522_s24 + $0x3c4] ss:$16 sps:$4 sm:$0xff]   ;;  %v6556_v18 = vld [vmem:[%s7522_s24 + $0x3c0] ss:$16 sps:$4 sm:$0xff]   ;;  %v6620_v62 = vld [vmem:[%s7522_s24 + $0x2a8] ss:$16 sps:$4 sm:$0xff]  }
  0xab   : > { %1744 = vmatprep.subr.bf16.mxu1 %v6529_v0  ;;  %v6557_v19 = vld [vmem:[%s7522_s24 + $0x1a4] ss:$16 sps:$4 sm:$0xff]   ;;  %v6561_v21 = vld [vmem:[%s7522_s24 + $0x1a0] ss:$16 sps:$4 sm:$0xff]   ;;  %v6625_v63 = vld [vmem:[%s7522_s24 + $0x8c] ss:$16 sps:$4 sm:$0xff]  }
  0xac   : > { %v6559_v20 = vld [vmem:[%s7522_s24 + $0x3a4] ss:$16 sps:$4 sm:$0xff]   ;;  %v6562_v22 = vld [vmem:[%s7522_s24 + $0x3a0] ss:$16 sps:$4 sm:$0xff]   ;;  %v6628_v0 = vld [vmem:[%s7522_s24 + $0x28c] ss:$16 sps:$4 sm:$0xff]  }
  0xad   : > { %1632 = vmatpush1.bf16.msra.mxu0 %v6531_v1  ;;  %v6563_v23 = vld [vmem:[%s7522_s24 + $0x184] ss:$16 sps:$4 sm:$0xff]   ;;  %v6567_v25 = vld [vmem:[%s7522_s24 + $0x180] ss:$16 sps:$4 sm:$0xff]  }
  0xae   : > { %1745 = vmatpush1.bf16.msra.mxu1 %v6532_v2  ;;  %1633 = vmatprep.subr.bf16.mxu0 %v6533_v3  ;;  %v6565_v24 = vld [vmem:[%s7522_s24 + $0x384] ss:$16 sps:$4 sm:$0xff]   ;;  %v6568_v26 = vld [vmem:[%s7522_s24 + $0x380] ss:$16 sps:$4 sm:$0xff]   ;;  %v7666_v2 = vld [vmem:[%s7520_s25 + $0x4c] ss:$16 sps:$4 sm:$0xff]  }
  0xaf   : > { %1746 = vmatprep.subr.bf16.mxu1 %v6535_v4  ;;  %v6569_v27 = vld [vmem:[%s7522_s24 + $0x164] ss:$16 sps:$4 sm:$0xff]   ;;  %v6573_v31 = vld [vmem:[%s7522_s24 + $0x160] ss:$16 sps:$4 sm:$0xff]   ;;  %v6623_v3 = vld [vmem:[%s7522_s24 + $0x88] ss:$16 sps:$4 sm:$0xff]  }
  0xb0   : > { %v7604_v28 = vld [vmem:[%s7520_s25 + $0x4] ss:$16 sps:$4 sm:$0xff]   ;;  %v6574_v32 = vld [vmem:[%s7522_s24 + $0x360] ss:$16 sps:$4 sm:$0xff]   ;;  %v6626_v4 = vld [vmem:[%s7522_s24 + $0x288] ss:$16 sps:$4 sm:$0xff]  }
  0xb1   : > { %1634 = vmatpush1.bf16.msra.mxu0 %v6537_v5  ;;  %v6571_v29 = vld [vmem:[%s7522_s24 + $0x364] ss:$16 sps:$4 sm:$0xff]   ;;  %1653 = vmatprep.mubr.bf16.mxu0 %v7604_v28  ;;  %v6579_v35 = vld [vmem:[%s7522_s24 + $0x140] ss:$16 sps:$4 sm:$0xff]   ;;  %v6637_v5 = vld [vmem:[%s7522_s24 + $0x6c] ss:$16 sps:$4 sm:$0xff]  }
  0xb2   : > { %1747 = vmatpush1.bf16.msra.mxu1 %v6538_v6  ;;  %1635 = vmatprep.subr.bf16.mxu0 %v6539_v7  ;;  %v6575_v33 = vld [vmem:[%s7522_s24 + $0x144] ss:$16 sps:$4 sm:$0xff]   ;;  %v6580_v36 = vld [vmem:[%s7522_s24 + $0x340] ss:$16 sps:$4 sm:$0xff]   ;;  %v6640_v6 = vld [vmem:[%s7522_s24 + $0x26c] ss:$16 sps:$4 sm:$0xff]  }
  0xb3   : > { %1748 = vmatprep.subr.bf16.mxu1 %v6541_v8  ;;  %v6577_v34 = vld [vmem:[%s7522_s24 + $0x344] ss:$16 sps:$4 sm:$0xff]   ;;  %v6585_v39 = vld [vmem:[%s7522_s24 + $0x120] ss:$16 sps:$4 sm:$0xff]   ;;  %v7680_v8 = vld [vmem:[%s7520_s25 + $0x48] ss:$16 sps:$4 sm:$0xff]  }
  0xb4   : > { %v6581_v37 = vld [vmem:[%s7522_s24 + $0x124] ss:$16 sps:$4 sm:$0xff]   ;;  %v6586_v40 = vld [vmem:[%s7522_s24 + $0x320] ss:$16 sps:$4 sm:$0xff]  }
  0xb5   : > { %1636 = vmatpush1.bf16.msra.mxu0 %v6543_v9  ;;  %v6583_v38 = vld [vmem:[%s7522_s24 + $0x324] ss:$16 sps:$4 sm:$0xff]   ;;  %v6591_v43 = vld [vmem:[%s7522_s24 + $0x100] ss:$16 sps:$4 sm:$0xff]   ;;  %v6635_v9 = vld [vmem:[%s7522_s24 + $0x68] ss:$16 sps:$4 sm:$0xff]  }
  0xb6   : > { %1749 = vmatpush1.bf16.msra.mxu1 %v6544_v10  ;;  %1637 = vmatprep.subr.bf16.mxu0 %v6545_v11  ;;  %v6587_v41 = vld [vmem:[%s7522_s24 + $0x104] ss:$16 sps:$4 sm:$0xff]   ;;  %v6592_v44 = vld [vmem:[%s7522_s24 + $0x300] ss:$16 sps:$4 sm:$0xff]   ;;  %v6638_v10 = vld [vmem:[%s7522_s24 + $0x268] ss:$16 sps:$4 sm:$0xff]  }
  0xb7   : > { %1750 = vmatprep.subr.bf16.mxu1 %v6547_v12  ;;  %v6589_v42 = vld [vmem:[%s7522_s24 + $0x304] ss:$16 sps:$4 sm:$0xff]   ;;  %v7629_v47 = vld [vmem:[%s7520_s25] ss:$16 sps:$4 sm:$0xff]   ;;  %v6643_v11 = vld [vmem:[%s7522_s24 + $0x4c] ss:$16 sps:$4 sm:$0xff]  }
  0xb8   : > { %v7639_v53 = vld [vmem:[%s7520_s25 + $0x24] ss:$16 sps:$4 sm:$0xff]   ;;  %v7653_v59 = vld [vmem:[%s7520_s25 + $0x20] ss:$16 sps:$4 sm:$0xff]   ;;  %v6646_v12 = vld [vmem:[%s7522_s24 + $0x24c] ss:$16 sps:$4 sm:$0xff]  }
  0xb9   : > { %1638 = vmatpush2.bf16.msra.mxu0 %v6549_v13  ;;  %v7663_v1 = vld [vmem:[%s7520_s25 + $0x44] ss:$16 sps:$4 sm:$0xff]   ;;  %v7677_v7 = vld [vmem:[%s7520_s25 + $0x40] ss:$16 sps:$4 sm:$0xff]  }
  0xba   : > { %1751 = vmatpush2.bf16.msra.mxu1 %v6550_v14  ;;  %1639 = vmatprep.subr.bf16.mxu0 %v6551_v15  ;;  %v7687_v13 = vld [vmem:[%s7520_s25 + $0x64] ss:$16 sps:$4 sm:$0xff]   ;;  %v7690_v14 = vld [vmem:[%s7520_s25 + $0x6c] ss:$16 sps:$4 sm:$0xff]   ;;  %v6641_v15 = vld [vmem:[%s7522_s24 + $0x48] ss:$16 sps:$4 sm:$0xff]  }
  0xbb   : > { %1752 = vmatprep.subr.bf16.mxu1 %v6553_v16  ;;  %v6644_v16 = vld [vmem:[%s7522_s24 + $0x248] ss:$16 sps:$4 sm:$0xff]  }
  0xbd   : > { %1640 = vmatpush2.bf16.msra.mxu0 %v6555_v17  ;;  %v6655_v17 = vld [vmem:[%s7522_s24 + $0x2c] ss:$16 sps:$4 sm:$0xff]  }
  0xbe   : > { %1753 = vmatpush2.bf16.msra.mxu1 %v6556_v18  ;;  %1641 = vmatprep.subr.bf16.mxu0 %v6557_v19  ;;  %v6658_v18 = vld [vmem:[%s7522_s24 + $0x22c] ss:$16 sps:$4 sm:$0xff]   ;;  %v7701_v19 = vld [vmem:[%s7520_s25 + $0x60] ss:$16 sps:$4 sm:$0xff]  }
  0xbf   : > { %1754 = vmatprep.subr.bf16.mxu1 %v6559_v20  ;;  %v7704_v20 = vld [vmem:[%s7520_s25 + $0x68] ss:$16 sps:$4 sm:$0xff]  }
  0xc1   : > { %1642 = vmatpush2.bf16.msra.mxu0 %v6561_v21  ;;  %v6653_v21 = vld [vmem:[%s7522_s24 + $0x28] ss:$16 sps:$4 sm:$0xff]  }
  0xc2   : > { %1755 = vmatpush2.bf16.msra.mxu1 %v6562_v22  ;;  %1643 = vmatprep.subr.bf16.mxu0 %v6563_v23  ;;  %v6656_v22 = vld [vmem:[%s7522_s24 + $0x228] ss:$16 sps:$4 sm:$0xff]   ;;  %v6661_v23 = vld [vmem:[%s7522_s24 + $0xc] ss:$16 sps:$4 sm:$0xff]  }
  0xc3   : > { %1756 = vmatprep.subr.bf16.mxu1 %v6565_v24  ;;  %v6664_v24 = vld [vmem:[%s7522_s24 + $0x20c] ss:$16 sps:$4 sm:$0xff]  }
  0xc5   : > { %1644 = vmatpush2.bf16.msra.mxu0 %v6567_v25  ;;  %v7711_v25 = vld [vmem:[%s7520_s25 + $0x84] ss:$16 sps:$4 sm:$0xff]  }
  0xc6   : > { %1757 = vmatpush2.bf16.msra.mxu1 %v6568_v26  ;;  %1645 = vmatprep.subr.bf16.mxu0 %v6569_v27  ;;  %v7714_v26 = vld [vmem:[%s7520_s25 + $0x8c] ss:$16 sps:$4 sm:$0xff]   ;;  %v6659_v27 = vld [vmem:[%s7522_s24 + $0x8] ss:$16 sps:$4 sm:$0xff]  }
  0xc7   : > { %1758 = vmatprep.subr.bf16.mxu1 %v6571_v29  ;;  %v6662_v29 = vld [vmem:[%s7522_s24 + $0x208] ss:$16 sps:$4 sm:$0xff]  }
  0xc9   : > { %1646 = vmatpush2.bf16.msra.mxu0 %v6573_v31  ;;  %v6673_v31 = vld [vmem:[%s7522_s24 + $0x1ec] ss:$16 sps:$4 sm:$0xff]  }
  0xca   : > { %1759 = vmatpush2.bf16.msra.mxu1 %v6574_v32  ;;  %1647 = vmatprep.subr.bf16.mxu0 %v6575_v33  ;;  %v6676_v32 = vld [vmem:[%s7522_s24 + $0x3ec] ss:$16 sps:$4 sm:$0xff]   ;;  %v7725_v33 = vld [vmem:[%s7520_s25 + $0x80] ss:$16 sps:$4 sm:$0xff]  }
  0xcb   : > { %1760 = vmatprep.subr.bf16.mxu1 %v6577_v34  ;;  %v7728_v34 = vld [vmem:[%s7520_s25 + $0x88] ss:$16 sps:$4 sm:$0xff]  }
  0xcd   : > { %1648 = vmatpush2.bf16.msra.mxu0 %v6579_v35  ;;  %v6671_v35 = vld [vmem:[%s7522_s24 + $0x1e8] ss:$16 sps:$4 sm:$0xff]  }
  0xce   : > { %1761 = vmatpush2.bf16.msra.mxu1 %v6580_v36  ;;  %1649 = vmatprep.subr.bf16.mxu0 %v6581_v37  ;;  %v6674_v36 = vld [vmem:[%s7522_s24 + $0x3e8] ss:$16 sps:$4 sm:$0xff]   ;;  %v6679_v37 = vld [vmem:[%s7522_s24 + $0x1cc] ss:$16 sps:$4 sm:$0xff]  }
  0xcf   : > { %1762 = vmatprep.subr.bf16.mxu1 %v6583_v38  ;;  %v6682_v38 = vld [vmem:[%s7522_s24 + $0x3cc] ss:$16 sps:$4 sm:$0xff]  }
  0xd1   : > { %1650 = vmatpush2.bf16.msra.mxu0 %v6585_v39  ;;  %v7735_v39 = vld [vmem:[%s7520_s25 + $0xa4] ss:$16 sps:$4 sm:$0xff]  }
  0xd2   : > { %1763 = vmatpush2.bf16.msra.mxu1 %v6586_v40  ;;  %1651 = vmatprep.subr.bf16.mxu0 %v6587_v41  ;;  %v7738_v40 = vld [vmem:[%s7520_s25 + $0xac] ss:$16 sps:$4 sm:$0xff]   ;;  %v6677_v41 = vld [vmem:[%s7522_s24 + $0x1c8] ss:$16 sps:$4 sm:$0xff]  }
  0xd3   : > { %1764 = vmatprep.subr.bf16.mxu1 %v6589_v42  ;;  %v6680_v42 = vld [vmem:[%s7522_s24 + $0x3c8] ss:$16 sps:$4 sm:$0xff]  }
  0xd5   : > { %1652 = vmatpush2.bf16.msra.mxu0 %v6591_v43  ;;  %v6691_v43 = vld [vmem:[%s7522_s24 + $0x1ac] ss:$16 sps:$4 sm:$0xff]  }
  0xd6   : > { %1765 = vmatpush2.bf16.msra.mxu1 %v6592_v44  ;;  %1847 = vmatprep.subr.bf16.mxu0 %v6601_v45  ;;  %v6694_v44 = vld [vmem:[%s7522_s24 + $0x3ac] ss:$16 sps:$4 sm:$0xff]   ;;  %v7749_v45 = vld [vmem:[%s7520_s25 + $0xa0] ss:$16 sps:$4 sm:$0xff]  }
  0xd7   : > { %1960 = vmatprep.subr.bf16.mxu1 %v6604_v46  ;;  %v7752_v46 = vld [vmem:[%s7520_s25 + $0xa8] ss:$16 sps:$4 sm:$0xff]  }
  0xd8   : > { %1654 = vmatmul.mubr.bf16.vlgmr.msra.gmra.mxu0 %v7629_v47 }
  0xd9   : > { %1767 = vmatmul.mubr.bf16.vlgmr.msra.gmra.mxu1 %v7632_v48  ;;  %1848 = vmatpush1.bf16.msra.mxu0 %v6599_v49  ;;  %v6689_v49 = vld [vmem:[%s7522_s24 + $0x1a8] ss:$16 sps:$4 sm:$0xff]  }
  0xda   : > { %1961 = vmatpush1.bf16.msra.mxu1 %v6602_v50  ;;  %1849 = vmatprep.subr.bf16.mxu0 %v6607_v51  ;;  %v6692_v50 = vld [vmem:[%s7522_s24 + $0x3a8] ss:$16 sps:$4 sm:$0xff]   ;;  %v6697_v51 = vld [vmem:[%s7522_s24 + $0x18c] ss:$16 sps:$4 sm:$0xff]  }
  0xdb   : > { %1962 = vmatprep.subr.bf16.mxu1 %v6610_v52  ;;  %1663 = vmatprep.mubr.bf16.mxu0 %v7639_v53  ;;  %v6700_v52 = vld [vmem:[%s7522_s24 + $0x38c] ss:$16 sps:$4 sm:$0xff]  }
  0xdc   : > { %1776 = vmatprep.mubr.bf16.mxu1 %v7642_v54 }
  0xdd   : > { %1850 = vmatpush1.bf16.msra.mxu0 %v6605_v55  ;;  %v7759_v55 = vld [vmem:[%s7520_s25 + $0xc4] ss:$16 sps:$4 sm:$0xff]  }
  0xde   : > { %1963 = vmatpush1.bf16.msra.mxu1 %v6608_v56  ;;  %1851 = vmatprep.subr.bf16.mxu0 %v6619_v57  ;;  %v7762_v56 = vld [vmem:[%s7520_s25 + $0xcc] ss:$16 sps:$4 sm:$0xff]   ;;  %v6695_v57 = vld [vmem:[%s7522_s24 + $0x188] ss:$16 sps:$4 sm:$0xff]  }
  0xdf   : > { %1964 = vmatprep.subr.bf16.mxu1 %v6622_v58  ;;  %v6698_v58 = vld [vmem:[%s7522_s24 + $0x388] ss:$16 sps:$4 sm:$0xff]  }
  0xe0   : > { %1664 = vmatmul.mubr.bf16.gmra.mxu0 %v7653_v59 }
  0xe1   : > { %1777 = vmatmul.mubr.bf16.gmra.mxu1 %v7656_v60  ;;  %1852 = vmatpush1.bf16.msra.mxu0 %v6617_v61  ;;  %v6709_v61 = vld [vmem:[%s7522_s24 + $0x16c] ss:$16 sps:$4 sm:$0xff]  }
  0xe2   : > { %1965 = vmatpush1.bf16.msra.mxu1 %v6620_v62  ;;  %1853 = vmatprep.subr.bf16.mxu0 %v6625_v63  ;;  %v6712_v62 = vld [vmem:[%s7522_s24 + $0x36c] ss:$16 sps:$4 sm:$0xff]   ;;  %v7773_v63 = vld [vmem:[%s7520_s25 + $0xc0] ss:$16 sps:$4 sm:$0xff]  }
  0xe3   : > { %1966 = vmatprep.subr.bf16.mxu1 %v6628_v0  ;;  %1673 = vmatprep.mubr.bf16.mxu0 %v7663_v1  ;;  %v7776_v0 = vld [vmem:[%s7520_s25 + $0xc8] ss:$16 sps:$4 sm:$0xff]  }
  0xe4   : > { %1786 = vmatprep.mubr.bf16.mxu1 %v7666_v2 }
  0xe5   : > { %1854 = vmatpush1.bf16.msra.mxu0 %v6623_v3  ;;  %v6707_v3 = vld [vmem:[%s7522_s24 + $0x168] ss:$16 sps:$4 sm:$0xff]  }
  0xe6   : > { %1967 = vmatpush1.bf16.msra.mxu1 %v6626_v4  ;;  %1855 = vmatprep.subr.bf16.mxu0 %v6637_v5  ;;  %v6710_v4 = vld [vmem:[%s7522_s24 + $0x368] ss:$16 sps:$4 sm:$0xff]   ;;  %v6715_v5 = vld [vmem:[%s7522_s24 + $0x14c] ss:$16 sps:$4 sm:$0xff]  }
  0xe7   : > { %1968 = vmatprep.subr.bf16.mxu1 %v6640_v6  ;;  %v6718_v6 = vld [vmem:[%s7522_s24 + $0x34c] ss:$16 sps:$4 sm:$0xff]  }
  0xe8   : > { %1674 = vmatmul.mubr.bf16.gmra.mxu0 %v7677_v7 }
  0xe9   : > { %1787 = vmatmul.mubr.bf16.gmra.mxu1 %v7680_v8  ;;  %1856 = vmatpush1.bf16.msra.mxu0 %v6635_v9  ;;  %v6719_v9 = vld [vmem:[%s7520_s25 + $0xe4] ss:$16 sps:$4 sm:$0xff]  }
  0xea   : > { %1969 = vmatpush1.bf16.msra.mxu1 %v6638_v10  ;;  %1857 = vmatprep.subr.bf16.mxu0 %v6643_v11  ;;  %v6721_v10 = vld [vmem:[%s7520_s25 + $0xec] ss:$16 sps:$4 sm:$0xff]   ;;  %v6713_v11 = vld [vmem:[%s7522_s24 + $0x148] ss:$16 sps:$4 sm:$0xff]  }
  0xeb   : > { %1970 = vmatprep.subr.bf16.mxu1 %v6646_v12  ;;  %1683 = vmatprep.mubr.bf16.mxu0 %v7687_v13  ;;  %v6716_v12 = vld [vmem:[%s7522_s24 + $0x348] ss:$16 sps:$4 sm:$0xff]  }
  0xec   : > { %1796 = vmatprep.mubr.bf16.mxu1 %v7690_v14 }
  0xed   : > { %1858 = vmatpush1.bf16.msra.mxu0 %v6641_v15  ;;  %v6727_v15 = vld [vmem:[%s7522_s24 + $0x12c] ss:$16 sps:$4 sm:$0xff]  }
  0xee   : > { %1971 = vmatpush1.bf16.msra.mxu1 %v6644_v16  ;;  %1859 = vmatprep.subr.bf16.mxu0 %v6655_v17  ;;  %v6730_v16 = vld [vmem:[%s7522_s24 + $0x32c] ss:$16 sps:$4 sm:$0xff]   ;;  %v6723_v17 = vld [vmem:[%s7520_s25 + $0xe0] ss:$16 sps:$4 sm:$0xff]  }
  0xef   : > { %1972 = vmatprep.subr.bf16.mxu1 %v6658_v18  ;;  %v6724_v18 = vld [vmem:[%s7520_s25 + $0xe8] ss:$16 sps:$4 sm:$0xff]  }
  0xf0   : > { %1684 = vmatmul.mubr.bf16.gmra.mxu0 %v7701_v19 }
  0xf1   : > { %1797 = vmatmul.mubr.bf16.gmra.mxu1 %v7704_v20  ;;  %1860 = vmatpush1.bf16.msra.mxu0 %v6653_v21  ;;  %v6725_v21 = vld [vmem:[%s7522_s24 + $0x128] ss:$16 sps:$4 sm:$0xff]  }
  0xf2   : > { %1973 = vmatpush1.bf16.msra.mxu1 %v6656_v22  ;;  %1861 = vmatprep.subr.bf16.mxu0 %v6661_v23  ;;  %v6728_v22 = vld [vmem:[%s7522_s24 + $0x328] ss:$16 sps:$4 sm:$0xff]   ;;  %v6733_v23 = vld [vmem:[%s7522_s24 + $0x10c] ss:$16 sps:$4 sm:$0xff]  }
  0xf3   : > { %1974 = vmatprep.subr.bf16.mxu1 %v6664_v24  ;;  %1693 = vmatprep.mubr.bf16.mxu0 %v7711_v25  ;;  %v6736_v24 = vld [vmem:[%s7522_s24 + $0x30c] ss:$16 sps:$4 sm:$0xff]  }
  0xf4   : > { %1806 = vmatprep.mubr.bf16.mxu1 %v7714_v26 }
  0xf5   : > { %1862 = vmatpush1.bf16.msra.mxu0 %v6659_v27  ;;  %v6731_v27 = vld [vmem:[%s7522_s24 + $0x108] ss:$16 sps:$4 sm:$0xff]  }
  0xf6   : > { %1975 = vmatpush1.bf16.msra.mxu1 %v6662_v29  ;;  %1863 = vmatprep.subr.bf16.mxu0 %v6673_v31  ;;  %v6734_v29 = vld [vmem:[%s7522_s24 + $0x308] ss:$16 sps:$4 sm:$0xff]  }
  0xf7   : > { %1976 = vmatprep.subr.bf16.mxu1 %v6676_v32 }
  0xf8   : > { %1694 = vmatmul.mubr.bf16.gmra.mxu0 %v7725_v33 }
  0xf9   : > { %1807 = vmatmul.mubr.bf16.gmra.mxu1 %v7728_v34  ;;  %1864 = vmatpush2.bf16.msra.mxu0 %v6671_v35 }
  0xfa   : > { %1977 = vmatpush2.bf16.msra.mxu1 %v6674_v36  ;;  %1865 = vmatprep.subr.bf16.mxu0 %v6679_v37 }
  0xfb   : > { %1978 = vmatprep.subr.bf16.mxu1 %v6682_v38  ;;  %1703 = vmatprep.mubr.bf16.mxu0 %v7735_v39  ;;  %v606_v38 = vld [vmem:[#allocation2 + $0x110] sm:$0xff] }
  0xfc   : > { %1816 = vmatprep.mubr.bf16.mxu1 %v7738_v40 }
  0xfd   : > { %1866 = vmatpush2.bf16.msra.mxu0 %v6677_v41 }
  0xfe   : > { %1979 = vmatpush2.bf16.msra.mxu1 %v6680_v42  ;;  %1867 = vmatprep.subr.bf16.mxu0 %v6691_v43  ;;  %v609_v43 = vld [vmem:[#allocation2 + $0x120] sm:$0xff] }
  0xff   : > { %1980 = vmatprep.subr.bf16.mxu1 %v6694_v44 }
 0x100   : > { %1704 = vmatmul.mubr.bf16.gmra.mxu0 %v7749_v45 }
 0x101   : > { %1817 = vmatmul.mubr.bf16.gmra.mxu1 %v7752_v46  ;;  %1868 = vmatpush2.bf16.msra.mxu0 %v6689_v49 }
 0x102   : > { %1981 = vmatpush2.bf16.msra.mxu1 %v6692_v50  ;;  %1869 = vmatprep.subr.bf16.mxu0 %v6697_v51  ;;  %v610_v50 = vld [vmem:[#allocation2 + $0x150] sm:$0xff] }
 0x103   : > { %1982 = vmatprep.subr.bf16.mxu1 %v6700_v52  ;;  %1713 = vmatprep.mubr.bf16.mxu0 %v7759_v55 }
 0x104   : > { %1826 = vmatprep.mubr.bf16.mxu1 %v7762_v56 }
 0x105   : > { %1870 = vmatpush2.bf16.msra.mxu0 %v6695_v57  ;;  %v613_v57 = vld [vmem:[#allocation2 + $0xe0] sm:$0xff] }
 0x106   : > { %1983 = vmatpush2.bf16.msra.mxu1 %v6698_v58  ;;  %1871 = vmatprep.subr.bf16.mxu0 %v6709_v61 }
 0x107   : > { %1984 = vmatprep.subr.bf16.mxu1 %v6712_v62 }
 0x108   : > { %1714 = vmatmul.mubr.bf16.gmra.mxu0 %v7773_v63 }
 0x109   : > { %1827 = vmatmul.mubr.bf16.gmra.mxu1 %v7776_v0  ;;  %1872 = vmatpush2.bf16.msra.mxu0 %v6707_v3 }
 0x10a   : > { %1985 = vmatpush2.bf16.msra.mxu1 %v6710_v4  ;;  %1873 = vmatprep.subr.bf16.mxu0 %v6715_v5 }
 0x10b   : > { %1986 = vmatprep.subr.bf16.mxu1 %v6718_v6  ;;  %1723 = vmatprep.mubr.bf16.mxu0 %v6719_v9 }
 0x10c   : > { %1836 = vmatprep.mubr.bf16.mxu1 %v6721_v10 }
 0x10d   : > { %1874 = vmatpush2.bf16.msra.mxu0 %v6713_v11 }
 0x10e   : > { %1987 = vmatpush2.bf16.msra.mxu1 %v6716_v12  ;;  %1875 = vmatprep.subr.bf16.mxu0 %v6727_v15 }
 0x10f   : > { %1988 = vmatprep.subr.bf16.mxu1 %v6730_v16  ;;  %v618_v16 = vld [vmem:[#allocation2 + $0x1a8] sm:$0xff] }
 0x110   : > { %1724 = vmatmul.mubr.bf16.gmra.mxu0 %v6723_v17 }
 0x111   : > { %1837 = vmatmul.mubr.bf16.gmra.mxu1 %v6724_v18  ;;  %1876 = vmatpush2.bf16.msra.mxu0 %v6725_v21 }
 0x112   : > { %1989 = vmatpush2.bf16.msra.mxu1 %v6728_v22  ;;  %1877 = vmatprep.subr.bf16.mxu0 %v6733_v23  ;;  %v621_v23 = vld [vmem:[#allocation2 + $0x1e8] sm:$0xff] }
 0x113   : > { %1990 = vmatprep.subr.bf16.mxu1 %v6736_v24  ;;  %1879 = vmatprep.mubr.bf16.mxu0 %v7604_v28 }
 0x114   : > { %1992 = vmatprep.mubr.bf16.mxu1 %v7608_v30  ;;  %v597_v30 = vld [vmem:[#allocation2 + $0xb0] sm:$0xff] }
 0x115   : > { %1878 = vmatpush2.bf16.msra.mxu0 %v6731_v27 }
 0x116   : > { %1991 = vmatpush2.bf16.msra.mxu1 %v6734_v29 }
 0x118   : > { %1880 = vmatmul.mubr.bf16.vlgmr.msra.gmra.mxu0 %v7629_v47 }
 0x119   : > { %1993 = vmatmul.mubr.bf16.vlgmr.msra.gmra.mxu1 %v7632_v48  ;;  %1889 = vmatprep.mubr.bf16.mxu0 %v7639_v53 }
 0x11a   : > { %2002 = vmatprep.mubr.bf16.mxu1 %v7642_v54  ;;  %v598_v54 = vld [vmem:[#allocation2 + $0x1b0] sm:$0xff] }
 0x120   : > { %1890 = vmatmul.mubr.bf16.gmra.mxu0 %v7653_v59 }
 0x121   : > { %2003 = vmatmul.mubr.bf16.gmra.mxu1 %v7656_v60  ;;  %1899 = vmatprep.mubr.bf16.mxu0 %v7663_v1 }
 0x122   : > { %2012 = vmatprep.mubr.bf16.mxu1 %v7666_v2 }
 0x128   : > { %1900 = vmatmul.mubr.bf16.gmra.mxu0 %v7677_v7  ;;  %v601_v7 = vld [vmem:[#allocation2 + $0x50] sm:$0xff] }
 0x129   : > { %2013 = vmatmul.mubr.bf16.gmra.mxu1 %v7680_v8  ;;  %1909 = vmatprep.mubr.bf16.mxu0 %v7687_v13 }
 0x12a   : > { %2022 = vmatprep.mubr.bf16.mxu1 %v7690_v14 }
 0x130   : > { %1910 = vmatmul.mubr.bf16.gmra.mxu0 %v7701_v19 }
 0x131   : > { %2023 = vmatmul.mubr.bf16.gmra.mxu1 %v7704_v20  ;;  %1919 = vmatprep.mubr.bf16.mxu0 %v7711_v25  ;;  %v602_v20 = vld [vmem:[#allocation2 + $0x168] sm:$0xff] }
 0x132   : > { %2032 = vmatprep.mubr.bf16.mxu1 %v7714_v26 }
 0x138   : > { %1920 = vmatmul.mubr.bf16.gmra.mxu0 %v7725_v33  ;;  %v605_v33 = vld [vmem:[#allocation2 + $0x180] sm:$0xff] }
 0x139   : > { %2033 = vmatmul.mubr.bf16.gmra.mxu1 %v7728_v34  ;;  %1929 = vmatprep.mubr.bf16.mxu0 %v7735_v39 }
 0x13a   : > { %2042 = vmatprep.mubr.bf16.mxu1 %v7738_v40 }
 0x140   : > { %1930 = vmatmul.mubr.bf16.gmra.mxu0 %v7749_v45 }
 0x141   : > { %2043 = vmatmul.mubr.bf16.gmra.mxu1 %v7752_v46  ;;  %1939 = vmatprep.mubr.bf16.mxu0 %v7759_v55 }
 0x142   : > { %2052 = vmatprep.mubr.bf16.mxu1 %v7762_v56 }
 0x148   : > { %1940 = vmatmul.mubr.bf16.gmra.mxu0 %v7773_v63 }
 0x149   : > { %2053 = vmatmul.mubr.bf16.gmra.mxu1 %v7776_v0  ;;  %1949 = vmatprep.mubr.bf16.mxu0 %v6719_v9  ;;  %v614_v0 = vld [vmem:[#allocation2 + $0x188] sm:$0xff]  ;;  %v617_v9 = vld [vmem:[#allocation2 + $0x80] sm:$0xff] }
 0x14a   : > { %2062 = vmatprep.mubr.bf16.mxu1 %v6721_v10 }
 0x150   : > { %1950 = vmatmul.mubr.bf16.gmra.mxu0 %v6723_v17 }
 0x151   : > { %2063 = vmatmul.mubr.bf16.gmra.mxu1 %v6724_v18 }
 0x198   : > { %v1655_v28 = vpop.f32.mrf.mxu0 }
 0x199   : > { %v1768_v47 = vpop.f32.mrf.mxu1 }
 0x19a   : > { %v1769_v48 = vadd.f32 %v1768_v47, %v1655_v28  ;;  %v1657_v53 = vpop.f32.mrf.mxu0 }
 0x19b   : > { %v1770_v59 = vpop.f32.mrf.mxu1 }
 0x19c   : > { %v2073_v60 = vadd.f32 %v1769_v48, %v597_v30  ;;  %v1771_v1 = vadd.f32 %v1770_v59, %v1657_v53  ;;  %v1659_v2 = vpop.f32.mrf.mxu0  ;;  %v622_v30 = vld [vmem:[#allocation2 + $0xf8] sm:$0xff]  ;;  %v625_v59 = vld [vmem:[#allocation2 + $0x1e0] sm:$0xff] }
 0x19d   : > { %v1772_v8 = vpop.f32.mrf.mxu1 }
 0x19e   : > { %2137 = vst [vmem:[#allocation2 + $0xb0] sm:$0xff] %v2073_v60  ;;  %v2074_v13 = vadd.f32 %v1771_v1, %v598_v54  ;;  %v1773_v14 = vadd.f32 %v1772_v8, %v1659_v2  ;;  %v1661_v19 = vpop.f32.mrf.mxu0  ;;  %v626_v8 = vld [vmem:[#allocation2] sm:$0xff] }
 0x19f   : > { %v1774_v25 = vpop.f32.mrf.mxu1 }
 0x1a0   : > { %2138 = vst [vmem:[#allocation2 + $0x1b0] sm:$0xff] %v2074_v13  ;;  %v2077_v26 = vadd.f32 %v1773_v14, %v601_v7  ;;  %v1775_v31 = vadd.f32 %v1774_v25, %v1661_v19  ;;  %v1665_v32 = vpop.f32.mrf.mxu0  ;;  %v629_v25 = vld [vmem:[#allocation2 + $0x148] sm:$0xff] }
 0x1a1   : > { %v1778_v34 = vpop.f32.mrf.mxu1 }
 0x1a2   : > { %2141 = vst [vmem:[#allocation2 + $0x50] sm:$0xff] %v2077_v26  ;;  %v2078_v35 = vadd.f32 %v1775_v31, %v602_v20  ;;  %v1779_v36 = vadd.f32 %v1778_v34, %v1665_v32  ;;  %v1667_v37 = vpop.f32.mrf.mxu0  ;;  %v630_v34 = vld [vmem:[#allocation2 + $0x1d0] sm:$0xff] }
 0x1a3   : > { %v1780_v39 = vpop.f32.mrf.mxu1 }
 0x1a4   : > { %2142 = vst [vmem:[#allocation2 + $0x168] sm:$0xff] %v2078_v35  ;;  %v2081_v40 = vadd.f32 %v1779_v36, %v605_v33  ;;  %v1781_v41 = vadd.f32 %v1780_v39, %v1667_v37  ;;  %v1669_v42 = vpop.f32.mrf.mxu0  ;;  %v633_v39 = vld [vmem:[#allocation2 + $0x40] sm:$0xff] }
 0x1a5   : > { %v1782_v44 = vpop.f32.mrf.mxu1 }
 0x1a6   : > { %2145 = vst [vmem:[#allocation2 + $0x180] sm:$0xff] %v2081_v40  ;;  %v2082_v45 = vadd.f32 %v1781_v41, %v606_v38  ;;  %v1783_v46 = vadd.f32 %v1782_v44, %v1669_v42  ;;  %v1671_v49 = vpop.f32.mrf.mxu0  ;;  %v634_v44 = vld [vmem:[#allocation2 + $0x1f8] sm:$0xff] }
 0x1a7   : > { %v1784_v51 = vpop.f32.mrf.mxu1 }
 0x1a8   : > { %2146 = vst [vmem:[#allocation2 + $0x110] sm:$0xff] %v2082_v45  ;;  %v2085_v52 = vadd.f32 %v1783_v46, %v609_v43  ;;  %v1785_v55 = vadd.f32 %v1784_v51, %v1671_v49  ;;  %v1675_v56 = vpop.f32.mrf.mxu0  ;;  %v637_v51 = vld [vmem:[#allocation2 + $0x1a0] sm:$0xff] }
 0x1a9   : > { %v1788_v58 = vpop.f32.mrf.mxu1 }
 0x1aa   : > { %2149 = vst [vmem:[#allocation2 + $0x120] sm:$0xff] %v2085_v52  ;;  %v2086_v61 = vadd.f32 %v1785_v55, %v610_v50  ;;  %v1789_v62 = vadd.f32 %v1788_v58, %v1675_v56  ;;  %v1677_v63 = vpop.f32.mrf.mxu0  ;;  %v638_v58 = vld [vmem:[#allocation2 + $0x1f0] sm:$0xff] }
 0x1ab   : > { %v1790_v3 = vpop.f32.mrf.mxu1 }
 0x1ac   : > { %2150 = vst [vmem:[#allocation2 + $0x150] sm:$0xff] %v2086_v61  ;;  %v2089_v4 = vadd.f32 %v1789_v62, %v613_v57  ;;  %v1791_v5 = vadd.f32 %v1790_v3, %v1677_v63  ;;  %v1679_v6 = vpop.f32.mrf.mxu0  ;;  %v641_v3 = vld [vmem:[#allocation2 + $0x70] sm:$0xff] }
 0x1ad   : > { %v1792_v10 = vpop.f32.mrf.mxu1 }
 0x1ae   : > { %2153 = vst [vmem:[#allocation2 + $0xe0] sm:$0xff] %v2089_v4  ;;  %v2090_v11 = vadd.f32 %v1791_v5, %v614_v0  ;;  %v1793_v12 = vadd.f32 %v1792_v10, %v1679_v6  ;;  %v1681_v15 = vpop.f32.mrf.mxu0  ;;  %v642_v10 = vld [vmem:[#allocation2 + $0x90] sm:$0xff] }
 0x1af   : > { %v1794_v17 = vpop.f32.mrf.mxu1 }
 0x1b0   : > { %2154 = vst [vmem:[#allocation2 + $0x188] sm:$0xff] %v2090_v11  ;;  %v2093_v18 = vadd.f32 %v1793_v12, %v617_v9  ;;  %v1795_v21 = vadd.f32 %v1794_v17, %v1681_v15  ;;  %v1685_v22 = vpop.f32.mrf.mxu0  ;;  %v645_v17 = vld [vmem:[#allocation2 + $0xb8] sm:$0xff] }
 0x1b1   : > { %v1798_v24 = vpop.f32.mrf.mxu1 }
 0x1b2   : > { %2157 = vst [vmem:[#allocation2 + $0x80] sm:$0xff] %v2093_v18  ;;  %v2094_v27 = vadd.f32 %v1795_v21, %v618_v16  ;;  %v1799_v29 = vadd.f32 %v1798_v24, %v1685_v22  ;;  %v1687_v28 = vpop.f32.mrf.mxu0  ;;  %v646_v24 = vld [vmem:[#allocation2 + $0x88] sm:$0xff] }
 0x1b3   : > { %v1800_v47 = vpop.f32.mrf.mxu1 }
 0x1b4   : > { %2158 = vst [vmem:[#allocation2 + $0x1a8] sm:$0xff] %v2094_v27  ;;  %v2097_v48 = vadd.f32 %v1799_v29, %v621_v23  ;;  %v1801_v53 = vadd.f32 %v1800_v47, %v1687_v28  ;;  %v1689_v54 = vpop.f32.mrf.mxu0  ;;  %v649_v47 = vld [vmem:[#allocation2 + $0x170] sm:$0xff] }
 0x1b5   : > { %v1802_v60 = vpop.f32.mrf.mxu1 }
 0x1b6   : > { %2161 = vst [vmem:[#allocation2 + $0x1e8] sm:$0xff] %v2097_v48  ;;  %v2098_v1 = vadd.f32 %v1801_v53, %v622_v30  ;;  %v1803_v2 = vadd.f32 %v1802_v60, %v1689_v54  ;;  %v1691_v7 = vpop.f32.mrf.mxu0  ;;  %v650_v60 = vld [vmem:[#allocation2 + $0x178] sm:$0xff] }
 0x1b7   : > { %v1804_v13 = vpop.f32.mrf.mxu1 }
 0x1b8   : > { %2162 = vst [vmem:[#allocation2 + $0xf8] sm:$0xff] %v2098_v1  ;;  %v2101_v14 = vadd.f32 %v1803_v2, %v625_v59  ;;  %v1805_v19 = vadd.f32 %v1804_v13, %v1691_v7  ;;  %v1695_v20 = vpop.f32.mrf.mxu0  ;;  %v653_v13 = vld [vmem:[#allocation2 + $0x198] sm:$0xff] }
 0x1b9   : > { %v1808_v26 = vpop.f32.mrf.mxu1 }
 0x1ba   : > { %2165 = vst [vmem:[#allocation2 + $0x1e0] sm:$0xff] %v2101_v14  ;;  %v2102_v31 = vadd.f32 %v1805_v19, %v626_v8  ;;  %v1809_v32 = vadd.f32 %v1808_v26, %v1695_v20  ;;  %v1697_v33 = vpop.f32.mrf.mxu0  ;;  %v654_v26 = vld [vmem:[#allocation2 + $0x38] sm:$0xff] }
 0x1bb   : > { %v1810_v35 = vpop.f32.mrf.mxu1 }
 0x1bc   : > { %2166 = vst [vmem:[#allocation2] sm:$0xff] %v2102_v31  ;;  %v2105_v36 = vadd.f32 %v1809_v32, %v629_v25  ;;  %v1811_v37 = vadd.f32 %v1810_v35, %v1697_v33  ;;  %v1699_v38 = vpop.f32.mrf.mxu0  ;;  %v657_v35 = vld [vmem:[#allocation2 + $0x158] sm:$0xff] }
 0x1bd   : > { %v1812_v40 = vpop.f32.mrf.mxu1 }
 0x1be   : > { %2169 = vst [vmem:[#allocation2 + $0x148] sm:$0xff] %v2105_v36  ;;  %v2106_v41 = vadd.f32 %v1811_v37, %v630_v34  ;;  %v1813_v42 = vadd.f32 %v1812_v40, %v1699_v38  ;;  %v1701_v43 = vpop.f32.mrf.mxu0  ;;  %v658_v40 = vld [vmem:[#allocation2 + $0x10] sm:$0xff] }
 0x1bf   : > { %v1814_v45 = vpop.f32.mrf.mxu1 }
 0x1c0   : > { %2170 = vst [vmem:[#allocation2 + $0x1d0] sm:$0xff] %v2106_v41  ;;  %v2109_v46 = vadd.f32 %v1813_v42, %v633_v39  ;;  %v1815_v49 = vadd.f32 %v1814_v45, %v1701_v43  ;;  %v1705_v50 = vpop.f32.mrf.mxu0  ;;  %v599_v45 = vld [vmem:[#allocation2 + $0xd8] sm:$0xff] }
 0x1c1   : > { %v1818_v52 = vpop.f32.mrf.mxu1 }
 0x1c2   : > { %2173 = vst [vmem:[#allocation2 + $0x40] sm:$0xff] %v2109_v46  ;;  %v2110_v55 = vadd.f32 %v1815_v49, %v634_v44  ;;  %v1819_v56 = vadd.f32 %v1818_v52, %v1705_v50  ;;  %v1707_v57 = vpop.f32.mrf.mxu0  ;;  %v600_v52 = vld [vmem:[#allocation2 + $0x18] sm:$0xff] }
 0x1c3   : > { %v1820_v61 = vpop.f32.mrf.mxu1 }
 0x1c4   : > { %2174 = vst [vmem:[#allocation2 + $0x1f8] sm:$0xff] %v2110_v55  ;;  %v2113_v62 = vadd.f32 %v1819_v56, %v637_v51  ;;  %v1821_v63 = vadd.f32 %v1820_v61, %v1707_v57  ;;  %v1709_v0 = vpop.f32.mrf.mxu0  ;;  %v603_v61 = vld [vmem:[#allocation2 + $0x130] sm:$0xff] }
 0x1c5   : > { %v1822_v4 = vpop.f32.mrf.mxu1 }
 0x1c6   : > { %2177 = vst [vmem:[#allocation2 + $0x1a0] sm:$0xff] %v2113_v62  ;;  %v2114_v5 = vadd.f32 %v1821_v63, %v638_v58  ;;  %v1823_v6 = vadd.f32 %v1822_v4, %v1709_v0  ;;  %v1711_v9 = vpop.f32.mrf.mxu0  ;;  %v604_v4 = vld [vmem:[#allocation2 + $0x48] sm:$0xff] }
 0x1c7   : > { %v1824_v11 = vpop.f32.mrf.mxu1 }
 0x1c8   : > { %2178 = vst [vmem:[#allocation2 + $0x1f0] sm:$0xff] %v2114_v5  ;;  %v2117_v12 = vadd.f32 %v1823_v6, %v641_v3  ;;  %v1825_v15 = vadd.f32 %v1824_v11, %v1711_v9  ;;  %v1715_v16 = vpop.f32.mrf.mxu0  ;;  %v607_v11 = vld [vmem:[#allocation2 + $0x118] sm:$0xff] }
 0x1c9   : > { %v1828_v18 = vpop.f32.mrf.mxu1 }
 0x1ca   : > { %2181 = vst [vmem:[#allocation2 + $0x70] sm:$0xff] %v2117_v12  ;;  %v2118_v21 = vadd.f32 %v1825_v15, %v642_v10  ;;  %v1829_v22 = vadd.f32 %v1828_v18, %v1715_v16  ;;  %v1717_v23 = vpop.f32.mrf.mxu0  ;;  %v608_v18 = vld [vmem:[#allocation2 + $0x98] sm:$0xff] }
 0x1cb   : > { %v1830_v27 = vpop.f32.mrf.mxu1 }
 0x1cc   : > { %2182 = vst [vmem:[#allocation2 + $0x90] sm:$0xff] %v2118_v21  ;;  %v2121_v29 = vadd.f32 %v1829_v22, %v645_v17  ;;  %v1831_v28 = vadd.f32 %v1830_v27, %v1717_v23  ;;  %v1719_v30 = vpop.f32.mrf.mxu0  ;;  %v611_v27 = vld [vmem:[#allocation2 + $0x108] sm:$0xff] }
 0x1cd   : > { %v1832_v48 = vpop.f32.mrf.mxu1 }
 0x1ce   : > { %2185 = vst [vmem:[#allocation2 + $0xb8] sm:$0xff] %v2121_v29  ;;  %v2122_v53 = vadd.f32 %v1831_v28, %v646_v24  ;;  %v1833_v54 = vadd.f32 %v1832_v48, %v1719_v30  ;;  %v1721_v59 = vpop.f32.mrf.mxu0  ;;  %v612_v48 = vld [vmem:[#allocation2 + $0x60] sm:$0xff] }
 0x1cf   : > { %v1834_v1 = vpop.f32.mrf.mxu1 }
 0x1d0   : > { %2186 = vst [vmem:[#allocation2 + $0x88] sm:$0xff] %v2122_v53  ;;  %v2125_v2 = vadd.f32 %v1833_v54, %v649_v47  ;;  %v1835_v7 = vadd.f32 %v1834_v1, %v1721_v59  ;;  %v1725_v8 = vpop.f32.mrf.mxu0  ;;  %v615_v1 = vld [vmem:[#allocation2 + $0x138] sm:$0xff] }
 0x1d1   : > { %v1838_v14 = vpop.f32.mrf.mxu1 }
 0x1d2   : > { %2189 = vst [vmem:[#allocation2 + $0x170] sm:$0xff] %v2125_v2  ;;  %v2126_v19 = vadd.f32 %v1835_v7, %v650_v60  ;;  %v1839_v20 = vadd.f32 %v1838_v14, %v1725_v8  ;;  %v1727_v25 = vpop.f32.mrf.mxu0  ;;  %v616_v14 = vld [vmem:[#allocation2 + $0x140] sm:$0xff] }
 0x1d3   : > { %v1840_v31 = vpop.f32.mrf.mxu1 }
 0x1d4   : > { %2190 = vst [vmem:[#allocation2 + $0x178] sm:$0xff] %v2126_v19  ;;  %v2129_v32 = vadd.f32 %v1839_v20, %v653_v13  ;;  %v1841_v33 = vadd.f32 %v1840_v31, %v1727_v25  ;;  %v1729_v34 = vpop.f32.mrf.mxu0  ;;  %v619_v31 = vld [vmem:[#allocation2 + $0x1b8] sm:$0xff] }
 0x1d5   : > { %v1842_v36 = vpop.f32.mrf.mxu1 }
 0x1d6   : > { %2193 = vst [vmem:[#allocation2 + $0x198] sm:$0xff] %v2129_v32  ;;  %v2130_v37 = vadd.f32 %v1841_v33, %v654_v26  ;;  %v1843_v38 = vadd.f32 %v1842_v36, %v1729_v34  ;;  %v1731_v39 = vpop.f32.mrf.mxu0  ;;  %v620_v36 = vld [vmem:[#allocation2 + $0x28] sm:$0xff] }
 0x1d7   : > { %v1844_v41 = vpop.f32.mrf.mxu1 }
 0x1d8   : > { %2194 = vst [vmem:[#allocation2 + $0x38] sm:$0xff] %v2130_v37  ;;  %v2133_v42 = vadd.f32 %v1843_v38, %v657_v35  ;;  %v1845_v43 = vadd.f32 %v1844_v41, %v1731_v39  ;;  %v1881_v44 = vpop.f32.mrf.mxu0  ;;  %v623_v41 = vld [vmem:[#allocation2 + $0x160] sm:$0xff] }
 0x1d9   : > { %v1994_v46 = vpop.f32.mrf.mxu1 }
 0x1da   : > { %2197 = vst [vmem:[#allocation2 + $0x158] sm:$0xff] %v2133_v42  ;;  %v2134_v49 = vadd.f32 %v1845_v43, %v658_v40  ;;  %v1995_v50 = vadd.f32 %v1994_v46, %v1881_v44  ;;  %v1883_v51 = vpop.f32.mrf.mxu0  ;;  %v624_v46 = vld [vmem:[#allocation2 + $0x30] sm:$0xff] }
 0x1db   : > { %v1996_v55 = vpop.f32.mrf.mxu1 }
 0x1dc   : > { %2198 = vst [vmem:[#allocation2 + $0x10] sm:$0xff] %v2134_v49  ;;  %v2075_v56 = vadd.f32 %v1995_v50, %v599_v45  ;;  %v1997_v57 = vadd.f32 %v1996_v55, %v1883_v51  ;;  %v1885_v58 = vpop.f32.mrf.mxu0  ;;  %v627_v55 = vld [vmem:[#allocation2 + $0xf0] sm:$0xff] }
 0x1dd   : > { %v1998_v62 = vpop.f32.mrf.mxu1 }
 0x1de   : > { %2139 = vst [vmem:[#allocation2 + $0xd8] sm:$0xff] %v2075_v56  ;;  %v2076_v63 = vadd.f32 %v1997_v57, %v600_v52  ;;  %v1999_v0 = vadd.f32 %v1998_v62, %v1885_v58  ;;  %v1887_v3 = vpop.f32.mrf.mxu0  ;;  %v628_v62 = vld [vmem:[#allocation2 + $0x8] sm:$0xff] }
 0x1df   : > { %v2000_v5 = vpop.f32.mrf.mxu1 }
 0x1e0   : > { %2140 = vst [vmem:[#allocation2 + $0x18] sm:$0xff] %v2076_v63  ;;  %v2079_v6 = vadd.f32 %v1999_v0, %v603_v61  ;;  %v2001_v9 = vadd.f32 %v2000_v5, %v1887_v3  ;;  %v1891_v10 = vpop.f32.mrf.mxu0  ;;  %v631_v5 = vld [vmem:[#allocation2 + $0x100] sm:$0xff] }
 0x1e1   : > { %v2004_v12 = vpop.f32.mrf.mxu1 }
 0x1e2   : > { %2143 = vst [vmem:[#allocation2 + $0x130] sm:$0xff] %v2079_v6  ;;  %v2080_v15 = vadd.f32 %v2001_v9, %v604_v4  ;;  %v2005_v16 = vadd.f32 %v2004_v12, %v1891_v10  ;;  %v1893_v17 = vpop.f32.mrf.mxu0  ;;  %v632_v12 = vld [vmem:[#allocation2 + $0xc8] sm:$0xff] }
 0x1e3   : > { %v2006_v21 = vpop.f32.mrf.mxu1 }
 0x1e4   : > { %2144 = vst [vmem:[#allocation2 + $0x48] sm:$0xff] %v2080_v15  ;;  %v2083_v22 = vadd.f32 %v2005_v16, %v607_v11  ;;  %v2007_v23 = vadd.f32 %v2006_v21, %v1893_v17  ;;  %v1895_v24 = vpop.f32.mrf.mxu0  ;;  %v635_v21 = vld [vmem:[#allocation2 + $0x20] sm:$0xff] }
 0x1e5   : > { %v2008_v29 = vpop.f32.mrf.mxu1 }
 0x1e6   : > { %2147 = vst [vmem:[#allocation2 + $0x118] sm:$0xff] %v2083_v22  ;;  %v2084_v28 = vadd.f32 %v2007_v23, %v608_v18  ;;  %v2009_v30 = vadd.f32 %v2008_v29, %v1895_v24  ;;  %v1897_v47 = vpop.f32.mrf.mxu0  ;;  %v636_v29 = vld [vmem:[#allocation2 + $0x128] sm:$0xff] }
 0x1e7   : > { %v2010_v53 = vpop.f32.mrf.mxu1 }
 0x1e8   : > { %2148 = vst [vmem:[#allocation2 + $0x98] sm:$0xff] %v2084_v28  ;;  %v2087_v54 = vadd.f32 %v2009_v30, %v611_v27  ;;  %v2011_v59 = vadd.f32 %v2010_v53, %v1897_v47  ;;  %v1901_v60 = vpop.f32.mrf.mxu0  ;;  %v639_v53 = vld [vmem:[#allocation2 + $0xe8] sm:$0xff] }
 0x1e9   : > { %v2014_v2 = vpop.f32.mrf.mxu1 }
 0x1ea   : > { %2151 = vst [vmem:[#allocation2 + $0x108] sm:$0xff] %v2087_v54  ;;  %v2088_v7 = vadd.f32 %v2011_v59, %v612_v48  ;;  %v2015_v8 = vadd.f32 %v2014_v2, %v1901_v60  ;;  %v1903_v13 = vpop.f32.mrf.mxu0  ;;  %v640_v2 = vld [vmem:[#allocation2 + $0x78] sm:$0xff] }
 0x1eb   : > { %v2016_v19 = vpop.f32.mrf.mxu1 }
 0x1ec   : > { %2152 = vst [vmem:[#allocation2 + $0x60] sm:$0xff] %v2088_v7  ;;  %v2091_v20 = vadd.f32 %v2015_v8, %v615_v1  ;;  %v2017_v25 = vadd.f32 %v2016_v19, %v1903_v13  ;;  %v1905_v26 = vpop.f32.mrf.mxu0  ;;  %v643_v19 = vld [vmem:[#allocation2 + $0x1d8] sm:$0xff] }
 0x1ed   : > { %v2018_v32 = vpop.f32.mrf.mxu1 }
 0x1ee   : > { %2155 = vst [vmem:[#allocation2 + $0x138] sm:$0xff] %v2091_v20  ;;  %v2092_v33 = vadd.f32 %v2017_v25, %v616_v14  ;;  %v2019_v34 = vadd.f32 %v2018_v32, %v1905_v26  ;;  %v1907_v35 = vpop.f32.mrf.mxu0  ;;  %v644_v32 = vld [vmem:[#allocation2 + $0xd0] sm:$0xff] }
 0x1ef   : > { %v2020_v37 = vpop.f32.mrf.mxu1 }
 0x1f0   : > { %2156 = vst [vmem:[#allocation2 + $0x140] sm:$0xff] %v2092_v33  ;;  %v2095_v38 = vadd.f32 %v2019_v34, %v619_v31  ;;  %v2021_v39 = vadd.f32 %v2020_v37, %v1907_v35  ;;  %v1911_v40 = vpop.f32.mrf.mxu0  ;;  %v647_v37 = vld [vmem:[#allocation2 + $0xa8] sm:$0xff] }
 0x1f1   : > { %v2024_v42 = vpop.f32.mrf.mxu1 }
 0x1f2   : > { %2159 = vst [vmem:[#allocation2 + $0x1b8] sm:$0xff] %v2095_v38  ;;  %v2096_v43 = vadd.f32 %v2021_v39, %v620_v36  ;;  %v2025_v44 = vadd.f32 %v2024_v42, %v1911_v40  ;;  %v1913_v45 = vpop.f32.mrf.mxu0  ;;  %v648_v42 = vld [vmem:[#allocation2 + $0x1c8] sm:$0xff] }
 0x1f3   : > { %v2026_v49 = vpop.f32.mrf.mxu1 }
 0x1f4   : > { %2160 = vst [vmem:[#allocation2 + $0x28] sm:$0xff] %v2096_v43  ;;  %v2099_v50 = vadd.f32 %v2025_v44, %v623_v41  ;;  %v2027_v51 = vadd.f32 %v2026_v49, %v1913_v45  ;;  %v1915_v52 = vpop.f32.mrf.mxu0  ;;  %v651_v49 = vld [vmem:[#allocation2 + $0x68] sm:$0xff] }
 0x1f5   : > { %v2028_v56 = vpop.f32.mrf.mxu1 }
 0x1f6   : > { %2163 = vst [vmem:[#allocation2 + $0x160] sm:$0xff] %v2099_v50  ;;  %v2100_v57 = vadd.f32 %v2027_v51, %v624_v46  ;;  %v2029_v58 = vadd.f32 %v2028_v56, %v1915_v52  ;;  %v1917_v61 = vpop.f32.mrf.mxu0  ;;  %v652_v56 = vld [vmem:[#allocation2 + $0x190] sm:$0xff] }
 0x1f7   : > { %v2030_v63 = vpop.f32.mrf.mxu1 }
 0x1f8   : > { %2164 = vst [vmem:[#allocation2 + $0x30] sm:$0xff] %v2100_v57  ;;  %v2103_v0 = vadd.f32 %v2029_v58, %v627_v55  ;;  %v2031_v3 = vadd.f32 %v2030_v63, %v1917_v61  ;;  %v1921_v4 = vpop.f32.mrf.mxu0  ;;  %v655_v63 = vld [vmem:[#allocation2 + $0xc0] sm:$0xff] }
 0x1f9   : > { %v2034_v6 = vpop.f32.mrf.mxu1 }
 0x1fa   : > { %2167 = vst [vmem:[#allocation2 + $0xf0] sm:$0xff] %v2103_v0  ;;  %v2104_v9 = vadd.f32 %v2031_v3, %v628_v62  ;;  %v2035_v10 = vadd.f32 %v2034_v6, %v1921_v4  ;;  %v1923_v11 = vpop.f32.mrf.mxu0  ;;  %v656_v6 = vld [vmem:[#allocation2 + $0x1c0] sm:$0xff] }
 0x1fb   : > { %v2036_v15 = vpop.f32.mrf.mxu1 }
 0x1fc   : > { %2168 = vst [vmem:[#allocation2 + $0x8] sm:$0xff] %v2104_v9  ;;  %v2107_v16 = vadd.f32 %v2035_v10, %v631_v5  ;;  %v2037_v17 = vadd.f32 %v2036_v15, %v1923_v11  ;;  %v1925_v18 = vpop.f32.mrf.mxu0  ;;  %v659_v15 = vld [vmem:[#allocation2 + $0x58] sm:$0xff] }
 0x1fd   : > { %v2038_v22 = vpop.f32.mrf.mxu1 }
 0x1fe   : > { %2171 = vst [vmem:[#allocation2 + $0x100] sm:$0xff] %v2107_v16  ;;  %v2108_v23 = vadd.f32 %v2037_v17, %v632_v12  ;;  %v2039_v24 = vadd.f32 %v2038_v22, %v1925_v18  ;;  %v1927_v27 = vpop.f32.mrf.mxu0  ;;  %v660_v22 = vld [vmem:[#allocation2 + $0xa0] sm:$0xff] }
 0x1ff   : > { %v2040_v28 = vpop.f32.mrf.mxu1 }
 0x200   : > { %2172 = vst [vmem:[#allocation2 + $0xc8] sm:$0xff] %v2108_v23  ;;  %v2111_v30 = vadd.f32 %v2039_v24, %v635_v21  ;;  %v2041_v47 = vadd.f32 %v2040_v28, %v1927_v27  ;;  %v1931_v48 = vpop.f32.mrf.mxu0 }
 0x201   : > { %v2044_v54 = vpop.f32.mrf.mxu1 }
 0x202   : > { %2175 = vst [vmem:[#allocation2 + $0x20] sm:$0xff] %v2111_v30  ;;  %v2112_v59 = vadd.f32 %v2041_v47, %v636_v29  ;;  %v2045_v60 = vadd.f32 %v2044_v54, %v1931_v48  ;;  %v1933_v1 = vpop.f32.mrf.mxu0 }
 0x203   : > { %v2046_v7 = vpop.f32.mrf.mxu1 }
 0x204   : > { %2176 = vst [vmem:[#allocation2 + $0x128] sm:$0xff] %v2112_v59  ;;  %v2115_v8 = vadd.f32 %v2045_v60, %v639_v53  ;;  %v2047_v13 = vadd.f32 %v2046_v7, %v1933_v1  ;;  %v1935_v14 = vpop.f32.mrf.mxu0 }
 0x205   : > { %v2048_v20 = vpop.f32.mrf.mxu1 }
 0x206   : > { %2179 = vst [vmem:[#allocation2 + $0xe8] sm:$0xff] %v2115_v8  ;;  %v2116_v25 = vadd.f32 %v2047_v13, %v640_v2  ;;  %v2049_v26 = vadd.f32 %v2048_v20, %v1935_v14  ;;  %v1937_v31 = vpop.f32.mrf.mxu0 }
 0x207   : > { %v2050_v33 = vpop.f32.mrf.mxu1 }
 0x208   : > { %2180 = vst [vmem:[#allocation2 + $0x78] sm:$0xff] %v2116_v25  ;;  %v2119_v34 = vadd.f32 %v2049_v26, %v643_v19  ;;  %v2051_v35 = vadd.f32 %v2050_v33, %v1937_v31  ;;  %v1941_v36 = vpop.f32.mrf.mxu0 }
 0x209   : > { %v2054_v38 = vpop.f32.mrf.mxu1 }
 0x20a   : > { %2183 = vst [vmem:[#allocation2 + $0x1d8] sm:$0xff] %v2119_v34  ;;  %v2120_v39 = vadd.f32 %v2051_v35, %v644_v32  ;;  %v2055_v40 = vadd.f32 %v2054_v38, %v1941_v36  ;;  %v1943_v41 = vpop.f32.mrf.mxu0 }
 0x20b   : > { %v2056_v43 = vpop.f32.mrf.mxu1 }
 0x20c   : > { %2184 = vst [vmem:[#allocation2 + $0xd0] sm:$0xff] %v2120_v39  ;;  %v2123_v44 = vadd.f32 %v2055_v40, %v647_v37  ;;  %v2057_v45 = vadd.f32 %v2056_v43, %v1943_v41  ;;  %v1945_v46 = vpop.f32.mrf.mxu0 }
 0x20d   : > { %v2058_v50 = vpop.f32.mrf.mxu1 }
 0x20e   : > { %2187 = vst [vmem:[#allocation2 + $0xa8] sm:$0xff] %v2123_v44  ;;  %v2124_v51 = vadd.f32 %v2057_v45, %v648_v42  ;;  %v2059_v52 = vadd.f32 %v2058_v50, %v1945_v46  ;;  %v1947_v55 = vpop.f32.mrf.mxu0 }
 0x20f   : > { %v2060_v57 = vpop.f32.mrf.mxu1 }
 0x210   : > { %2188 = vst [vmem:[#allocation2 + $0x1c8] sm:$0xff] %v2124_v51  ;;  %v2127_v58 = vadd.f32 %v2059_v52, %v651_v49  ;;  %v2061_v61 = vadd.f32 %v2060_v57, %v1947_v55  ;;  %v1951_v62 = vpop.f32.mrf.mxu0 }
 0x211   : > { %v2064_v0 = vpop.f32.mrf.mxu1 }
 0x212   : > { %2191 = vst [vmem:[#allocation2 + $0x68] sm:$0xff] %v2127_v58  ;;  %v2128_v3 = vadd.f32 %v2061_v61, %v652_v56  ;;  %v2065_v4 = vadd.f32 %v2064_v0, %v1951_v62  ;;  %v1953_v5 = vpop.f32.mrf.mxu0 }
 0x213   : > { %v2066_v9 = vpop.f32.mrf.mxu1 }
 0x214   : > { %2192 = vst [vmem:[#allocation2 + $0x190] sm:$0xff] %v2128_v3  ;;  %v2131_v10 = vadd.f32 %v2065_v4, %v655_v63  ;;  %v2067_v11 = vadd.f32 %v2066_v9, %v1953_v5  ;;  %v1955_v12 = vpop.f32.mrf.mxu0 }
 0x215   : > { %v2068_v16 = vpop.f32.mrf.mxu1 }
 0x216   : > { %2195 = vst [vmem:[#allocation2 + $0xc0] sm:$0xff] %v2131_v10  ;;  %v2132_v17 = vadd.f32 %v2067_v11, %v656_v6  ;;  %v2069_v18 = vadd.f32 %v2068_v16, %v1955_v12  ;;  %v1957_v21 = vpop.f32.mrf.mxu0 }
 0x217   : > { %v2070_v23 = vpop.f32.mrf.mxu1 }
 0x218   : > { %2196 = vst [vmem:[#allocation2 + $0x1c0] sm:$0xff] %v2132_v17  ;;  %v2135_v24 = vadd.f32 %v2069_v18, %v659_v15  ;;  %v2071_v27 = vadd.f32 %v2070_v23, %v1957_v21  ;;  %2204 = sbr.rel (%p5997_p1) target bundleno = 1412 (0x584), region = 99 }
 0x21a   : > { %2199 = vst [vmem:[#allocation2 + $0x58] sm:$0xff] %v2135_v24  ;;  %v2136_v29 = vadd.f32 %v2071_v27, %v660_v22 }
 0x21c   : > { %2200 = vst [vmem:[#allocation2 + $0xa0] sm:$0xff] %v2136_v29 }
 0x21d   : > { %v6737_v28 = vld [vmem:[#allocation6 + $0xe4] ss:$16 sps:$4 sm:$0xff]   ;;  %v6741_v47 = vld [vmem:[#allocation6 + $0xe0] ss:$16 sps:$4 sm:$0xff]   ;;  %v2210_v6 = vld [vmem:[#allocation2 + $0x168] sm:$0xff] }
 0x21e   : > { %v6739_v30 = vld [vmem:[#allocation6 + $0x2e4] ss:$16 sps:$4 sm:$0xff]   ;;  %3219 = vmatprep.subr.bf16.mxu0 %v6737_v28  ;;  %v6742_v48 = vld [vmem:[#allocation6 + $0x2e0] ss:$16 sps:$4 sm:$0xff]   ;;  %v2208_v10 = vld [vmem:[#allocation2 + $0x18] sm:$0xff] }
 0x21f   : > { %3332 = vmatprep.subr.bf16.mxu1 %v6739_v30  ;;  %v6743_v53 = vld [vmem:[#allocation6 + $0xc4] ss:$16 sps:$4 sm:$0xff]   ;;  %3220 = vmatpush1.bf16.msra.mxu0 %v6741_v47  ;;  %v6747_v59 = vld [vmem:[#allocation6 + $0xc0] ss:$16 sps:$4 sm:$0xff]   ;;  %v2212_v11 = vld [vmem:[#allocation2 + $0x48] sm:$0xff] }
 0x220   : > { %3333 = vmatpush1.bf16.msra.mxu1 %v6742_v48  ;;  %v6745_v54 = vld [vmem:[#allocation6 + $0x2c4] ss:$16 sps:$4 sm:$0xff]   ;;  %3221 = vmatprep.subr.bf16.mxu0 %v6743_v53  ;;  %v6748_v60 = vld [vmem:[#allocation6 + $0x2c0] ss:$16 sps:$4 sm:$0xff]   ;;  %v2274_v12 = vmul.f32 0.2, %v2210_v6 }
 0x221   : > { %3334 = vmatprep.subr.bf16.mxu1 %v6745_v54  ;;  %v6749_v1 = vld [vmem:[#allocation6 + $0xa4] ss:$16 sps:$4 sm:$0xff]   ;;  %v6753_v7 = vld [vmem:[#allocation6 + $0xa0] ss:$16 sps:$4 sm:$0xff]   ;;  %v2272_v15 = vmul.f32 0.2, %v2208_v10 }
 0x222   : > { %v6751_v2 = vld [vmem:[#allocation6 + $0x2a4] ss:$16 sps:$4 sm:$0xff]   ;;  %v6754_v8 = vld [vmem:[#allocation6 + $0x2a0] ss:$16 sps:$4 sm:$0xff]   ;;  %v2276_v16 = vmul.f32 0.2, %v2212_v11  ;;  %v2338_v22 = vmax.f32 %v2210_v6, %v2274_v12 }
 0x223   : > { %3222 = vmatpush1.bf16.msra.mxu0 %v6747_v59  ;;  %v6755_v13 = vld [vmem:[#allocation6 + $0x84] ss:$16 sps:$4 sm:$0xff]   ;;  %v6759_v19 = vld [vmem:[#allocation6 + $0x80] ss:$16 sps:$4 sm:$0xff]   ;;  %v2336_v23 = vmax.f32 %v2208_v10, %v2272_v15  ;;  %v2222_v6 = vld [vmem:[#allocation2 + $0x188] sm:$0xff] }
 0x224   : > { %3335 = vmatpush1.bf16.msra.mxu1 %v6748_v60  ;;  %3223 = vmatprep.subr.bf16.mxu0 %v6749_v1  ;;  %v6757_v14 = vld [vmem:[#allocation6 + $0x284] ss:$16 sps:$4 sm:$0xff]   ;;  %v6760_v20 = vld [vmem:[#allocation6 + $0x280] ss:$16 sps:$4 sm:$0xff]   ;;  %v2340_v24 = vmax.f32 %v2212_v11, %v2276_v16  ;;  %v2207_v1 = vld [vmem:[#allocation2 + $0xd8] sm:$0xff] }
 0x225   : > { %3336 = vmatprep.subr.bf16.mxu1 %v6751_v2  ;;  %v6761_v25 = vld [vmem:[#allocation6 + $0x64] ss:$16 sps:$4 sm:$0xff]   ;;  %v6765_v31 = vld [vmem:[#allocation6 + $0x60] ss:$16 sps:$4 sm:$0xff]   ;;  %v2226_v12 = vld [vmem:[#allocation2 + $0x1a8] sm:$0xff] }
 0x226   : > { %v6763_v26 = vld [vmem:[#allocation6 + $0x264] ss:$16 sps:$4 sm:$0xff]   ;;  %v6766_v32 = vld [vmem:[#allocation6 + $0x260] ss:$16 sps:$4 sm:$0xff]   ;;  %v7829_v30 = vpack.c.bf16 %v2340_v24, %v2336_v23  ;;  %v2228_v16 = vld [vmem:[#allocation2 + $0x28] sm:$0xff] }
 0x227   : > { %3224 = vmatpush1.bf16.msra.mxu0 %v6753_v7  ;;  %v6767_v33 = vld [vmem:[#allocation6 + $0x44] ss:$16 sps:$4 sm:$0xff]   ;;  %v6771_v35 = vld [vmem:[#allocation6 + $0x40] ss:$16 sps:$4 sm:$0xff]   ;;  %v2292_v24 = vmul.f32 0.2, %v2228_v16 }
 0x228   : > { %3337 = vmatpush1.bf16.msra.mxu1 %v6754_v8  ;;  %3225 = vmatprep.subr.bf16.mxu0 %v6755_v13  ;;  %v6769_v34 = vld [vmem:[#allocation6 + $0x244] ss:$16 sps:$4 sm:$0xff]   ;;  %v6772_v36 = vld [vmem:[#allocation6 + $0x240] ss:$16 sps:$4 sm:$0xff]  }
 0x229   : > { %3338 = vmatprep.subr.bf16.mxu1 %v6757_v14  ;;  %v6773_v37 = vld [vmem:[#allocation6 + $0x24] ss:$16 sps:$4 sm:$0xff]   ;;  %v6777_v39 = vld [vmem:[#allocation6 + $0x20] ss:$16 sps:$4 sm:$0xff]   ;;  %3364 = vmatprep.mubr.bf16.mxu1 %v7829_v30 }
 0x22a   : > { %v6775_v38 = vld [vmem:[#allocation6 + $0x224] ss:$16 sps:$4 sm:$0xff]   ;;  %v6778_v40 = vld [vmem:[#allocation6 + $0x220] ss:$16 sps:$4 sm:$0xff]  }
 0x22b   : > { %3226 = vmatpush1.bf16.msra.mxu0 %v6759_v19  ;;  %v6779_v41 = vld [vmem:[#allocation6 + $0x4] ss:$16 sps:$4 sm:$0xff]   ;;  %v6783_v43 = vld [vmem:[#allocation6] ss:$16 sps:$4 sm:$0xff]  }
 0x22c   : > { %3339 = vmatpush1.bf16.msra.mxu1 %v6760_v20  ;;  %3227 = vmatprep.subr.bf16.mxu0 %v6761_v25  ;;  %v6781_v42 = vld [vmem:[#allocation6 + $0x204] ss:$16 sps:$4 sm:$0xff]   ;;  %v6784_v44 = vld [vmem:[#allocation6 + $0x200] ss:$16 sps:$4 sm:$0xff]  }
 0x22d   : > { %3340 = vmatprep.subr.bf16.mxu1 %v6763_v26  ;;  %v6785_v45 = vld [vmem:[#allocation6 + $0x1e4] ss:$16 sps:$4 sm:$0xff]   ;;  %v6789_v49 = vld [vmem:[#allocation6 + $0x1e0] ss:$16 sps:$4 sm:$0xff]  }
 0x22e   : > { %v6787_v46 = vld [vmem:[#allocation6 + $0x3e4] ss:$16 sps:$4 sm:$0xff]   ;;  %v6790_v50 = vld [vmem:[#allocation6 + $0x3e0] ss:$16 sps:$4 sm:$0xff]  }
 0x22f   : > { %3228 = vmatpush1.bf16.msra.mxu0 %v6765_v31  ;;  %v6791_v51 = vld [vmem:[#allocation6 + $0x1c4] ss:$16 sps:$4 sm:$0xff]   ;;  %v6795_v55 = vld [vmem:[#allocation6 + $0x1c0] ss:$16 sps:$4 sm:$0xff]   ;;  %v2271_v31 = vmul.f32 0.2, %v2207_v1 }
 0x230   : > { %3341 = vmatpush1.bf16.msra.mxu1 %v6766_v32  ;;  %3229 = vmatprep.subr.bf16.mxu0 %v6767_v33  ;;  %v6793_v52 = vld [vmem:[#allocation6 + $0x3c4] ss:$16 sps:$4 sm:$0xff]   ;;  %v6796_v56 = vld [vmem:[#allocation6 + $0x3c0] ss:$16 sps:$4 sm:$0xff]   ;;  %v2216_v33 = vld [vmem:[#allocation2 + $0x98] sm:$0xff] }
 0x231   : > { %3342 = vmatprep.subr.bf16.mxu1 %v6769_v34  ;;  %v6797_v57 = vld [vmem:[#allocation6 + $0x1a4] ss:$16 sps:$4 sm:$0xff]   ;;  %v6801_v61 = vld [vmem:[#allocation6 + $0x1a0] ss:$16 sps:$4 sm:$0xff]  }
 0x232   : > { %v6799_v58 = vld [vmem:[#allocation6 + $0x3a4] ss:$16 sps:$4 sm:$0xff]   ;;  %v6802_v62 = vld [vmem:[#allocation6 + $0x3a0] ss:$16 sps:$4 sm:$0xff]  }
 0x233   : > { %3230 = vmatpush1.bf16.msra.mxu0 %v6771_v35  ;;  %v6803_v63 = vld [vmem:[#allocation6 + $0x184] ss:$16 sps:$4 sm:$0xff]   ;;  %v6807_v3 = vld [vmem:[#allocation6 + $0x180] ss:$16 sps:$4 sm:$0xff]  }
 0x234   : > { %3343 = vmatpush1.bf16.msra.mxu1 %v6772_v36  ;;  %3231 = vmatprep.subr.bf16.mxu0 %v6773_v37  ;;  %v6805_v0 = vld [vmem:[#allocation6 + $0x384] ss:$16 sps:$4 sm:$0xff]   ;;  %v6808_v4 = vld [vmem:[#allocation6 + $0x380] ss:$16 sps:$4 sm:$0xff]  }
 0x235   : > { %3344 = vmatprep.subr.bf16.mxu1 %v6775_v38  ;;  %v2206_v5 = vld [vmem:[#allocation2 + $0x1b0] sm:$0xff]  ;;  %v2220_v34 = vld [vmem:[#allocation2 + $0x60] sm:$0xff] }
 0x236   : > { %v2270_v9 = vmul.f32 0.2, %v2206_v5  ;;  %v6809_v17 = vld [vmem:[#allocation6 + $0x164] ss:$16 sps:$4 sm:$0xff]   ;;  %v6813_v27 = vld [vmem:[#allocation6 + $0x160] ss:$16 sps:$4 sm:$0xff]  }
 0x237   : > { %3232 = vmatpush1.bf16.msra.mxu0 %v6777_v39  ;;  %v6811_v18 = vld [vmem:[#allocation6 + $0x364] ss:$16 sps:$4 sm:$0xff]   ;;  %v6814_v29 = vld [vmem:[#allocation6 + $0x360] ss:$16 sps:$4 sm:$0xff]  }
 0x238   : > { %3345 = vmatpush1.bf16.msra.mxu1 %v6778_v40  ;;  %3233 = vmatprep.subr.bf16.mxu0 %v6779_v41  ;;  %v2334_v21 = vmax.f32 %v2206_v5, %v2270_v9  ;;  %v6815_v47 = vld [vmem:[#allocation6 + $0x144] ss:$16 sps:$4 sm:$0xff]   ;;  %v6819_v53 = vld [vmem:[#allocation6 + $0x140] ss:$16 sps:$4 sm:$0xff]   ;;  %v2280_v41 = vmul.f32 0.2, %v2216_v33 }
 0x239   : > { %3346 = vmatprep.subr.bf16.mxu1 %v6781_v42  ;;  %v6817_v48 = vld [vmem:[#allocation6 + $0x344] ss:$16 sps:$4 sm:$0xff]   ;;  %v6820_v60 = vld [vmem:[#allocation6 + $0x340] ss:$16 sps:$4 sm:$0xff]   ;;  %v2284_v42 = vmul.f32 0.2, %v2220_v34 }
 0x23a   : > { %v7827_v28 = vpack.c.bf16 %v2338_v22, %v2334_v21  ;;  %v2205_v54 = vld [vmem:[#allocation2 + $0xb0] sm:$0xff]  ;;  %v2224_v15 = vld [vmem:[#allocation2 + $0x140] sm:$0xff]  ;;  %v2286_v21 = vmul.f32 0.2, %v2222_v6  ;;  %v2290_v22 = vmul.f32 0.2, %v2226_v12 }
 0x23b   : > { %3234 = vmatpush1.bf16.msra.mxu0 %v6783_v43  ;;  %v2209_v59 = vld [vmem:[#allocation2 + $0x50] sm:$0xff]  ;;  %v2269_v19 = vmul.f32 0.2, %v2205_v54  ;;  %v7833_v43 = vld [vmem:[#allocation2 + $0x180] sm:$0xff]  ;;  %v2288_v23 = vmul.f32 0.2, %v2224_v15 }
 0x23c   : > { %3347 = vmatpush1.bf16.msra.mxu1 %v6784_v44  ;;  %3235 = vmatprep.subr.bf16.mxu0 %v6785_v45  ;;  %v2211_v2 = vld [vmem:[#allocation2 + $0x130] sm:$0xff]  ;;  %v2273_v20 = vmul.f32 0.2, %v2209_v59 }
 0x23d   : > { %3348 = vmatprep.subr.bf16.mxu1 %v6787_v46  ;;  %3251 = vmatprep.mubr.bf16.mxu0 %v7827_v28  ;;  %v6821_v7 = vld [vmem:[#allocation6 + $0x124] ss:$16 sps:$4 sm:$0xff]   ;;  %v6825_v13 = vld [vmem:[#allocation6 + $0x120] ss:$16 sps:$4 sm:$0xff]   ;;  %v2275_v32 = vmul.f32 0.2, %v2211_v2  ;;  %v2333_v44 = vmax.f32 %v2205_v54, %v2269_v19  ;;  %v2335_v46 = vmax.f32 %v2207_v1, %v2271_v31 }
 0x23e   : > { %v6823_v8 = vld [vmem:[#allocation6 + $0x324] ss:$16 sps:$4 sm:$0xff]   ;;  %v6826_v14 = vld [vmem:[#allocation6 + $0x320] ss:$16 sps:$4 sm:$0xff]   ;;  %v2337_v45 = vmax.f32 %v2209_v59, %v2273_v20  ;;  %v6850_v19 = vld [vmem:[#allocation6 + $0x2ac] ss:$16 sps:$4 sm:$0xff]   ;;  %v2354_v20 = vmax.f32 %v2226_v12, %v2290_v22 }
 0x23f   : > { %3236 = vmatpush2.bf16.msra.mxu0 %v6789_v49  ;;  %v2214_v25 = vld [vmem:[#allocation2 + $0x110] sm:$0xff]  ;;  %v2339_v49 = vmax.f32 %v2211_v2, %v2275_v32  ;;  %v7855_v1 = vld [vmem:[#allocation2 + $0xe0] sm:$0xff]  ;;  %v6845_v31 = vld [vmem:[#allocation6 + $0xa8] ss:$16 sps:$4 sm:$0xff]  }
 0x240   : > { %3349 = vmatpush2.bf16.msra.mxu1 %v6790_v50  ;;  %3237 = vmatprep.subr.bf16.mxu0 %v6791_v51  ;;  %v2218_v26 = vld [vmem:[#allocation2 + $0x150] sm:$0xff]  ;;  %v2278_v37 = vmul.f32 0.2, %v2214_v25  ;;  %v6835_v50 = vld [vmem:[#allocation6 + $0xec] ss:$16 sps:$4 sm:$0xff]   ;;  %v7835_v51 = vld [vmem:[#allocation2 + $0x120] sm:$0xff]  ;;  %v7842_v9 = vpack.c.bf16 %v2337_v45, %v2333_v44 }
 0x241   : > { %3350 = vmatprep.subr.bf16.mxu1 %v6793_v52  ;;  %v6827_v35 = vld [vmem:[#allocation6 + $0x104] ss:$16 sps:$4 sm:$0xff]   ;;  %v2282_v38 = vmul.f32 0.2, %v2218_v26  ;;  %v6831_v39 = vld [vmem:[#allocation6 + $0x100] ss:$16 sps:$4 sm:$0xff]   ;;  %v7844_v10 = vpack.c.bf16 %v2339_v49, %v2335_v46 }
 0x242   : > { %v6829_v36 = vld [vmem:[#allocation6 + $0x304] ss:$16 sps:$4 sm:$0xff]   ;;  %v6832_v40 = vld [vmem:[#allocation6 + $0x300] ss:$16 sps:$4 sm:$0xff]   ;;  %v7837_v52 = vld [vmem:[#allocation2 + $0x118] sm:$0xff] }
 0x243   : > { %3238 = vmatpush2.bf16.msra.mxu0 %v6795_v55  ;;  %v2219_v55 = vld [vmem:[#allocation2 + $0x108] sm:$0xff]  ;;  %v2279_v5 = vmul.f32 0.2, %v7837_v52  ;;  %v7857_v2 = vld [vmem:[#allocation2 + $0x80] sm:$0xff]  ;;  %v2232_v46 = vld [vmem:[#allocation2 + $0x30] sm:$0xff] }
 0x244   : > { %3351 = vmatpush2.bf16.msra.mxu1 %v6796_v56  ;;  %3239 = vmatprep.subr.bf16.mxu0 %v6797_v57  ;;  %v6838_v56 = vld [vmem:[#allocation6 + $0x2ec] ss:$16 sps:$4 sm:$0xff]   ;;  %v2342_v57 = vmax.f32 %v2214_v25, %v2278_v37  ;;  %v2283_v11 = vmul.f32 0.2, %v2219_v55  ;;  %v2352_v25 = vmax.f32 %v2224_v15, %v2288_v23  ;;  %v6848_v32 = vld [vmem:[#allocation6 + $0x2a8] ss:$16 sps:$4 sm:$0xff]  }
 0x245   : > { %3352 = vmatprep.subr.bf16.mxu1 %v6799_v58  ;;  %v2346_v58 = vmax.f32 %v2218_v26, %v2282_v38  ;;  %v2343_v59 = vmax.f32 %v7837_v52, %v2279_v5  ;;  %v2356_v26 = vmax.f32 %v2228_v16, %v2292_v24  ;;  %v2234_v44 = vld [vmem:[#allocation2] sm:$0xff]  ;;  %v2236_v49 = vld [vmem:[#allocation2 + $0x8] sm:$0xff]  ;;  %v2235_v5 = vld [vmem:[#allocation2 + $0xf0] sm:$0xff] }
 0x246   : > { %v6857_v16 = vld [vmem:[#allocation6 + $0x68] ss:$16 sps:$4 sm:$0xff]  }
 0x247   : > { %3240 = vmatpush2.bf16.msra.mxu0 %v6801_v61  ;;  %v2277_v61 = vmul.f32 0.2, %v7833_v43 }
 0x248   : > { %3353 = vmatpush2.bf16.msra.mxu1 %v6802_v62  ;;  %3241 = vmatprep.subr.bf16.mxu0 %v6803_v63  ;;  %v6833_v62 = vld [vmem:[#allocation6 + $0xe8] ss:$16 sps:$4 sm:$0xff]  }
 0x249   : > { %3354 = vmatprep.subr.bf16.mxu1 %v6805_v0  ;;  %v6836_v63 = vld [vmem:[#allocation6 + $0x2e8] ss:$16 sps:$4 sm:$0xff]   ;;  %v2344_v0 = vmax.f32 %v2216_v33, %v2280_v41  ;;  %v2285_v33 = vmul.f32 0.2, %v7855_v1 }
 0x24a   : > { %v2230_v41 = vld [vmem:[#allocation2 + $0xf8] sm:$0xff] }
 0x24b   : > { %3242 = vmatpush2.bf16.msra.mxu0 %v6807_v3  ;;  %v2348_v3 = vmax.f32 %v2220_v34, %v2284_v42  ;;  %v2289_v34 = vmul.f32 0.2, %v7857_v2  ;;  %v2294_v45 = vmul.f32 0.2, %v2230_v41  ;;  %v2349_v52 = vmax.f32 %v7855_v1, %v2285_v33  ;;  %v6863_v1 = vld [vmem:[#allocation6 + $0x48] ss:$16 sps:$4 sm:$0xff]  }
 0x24c   : > { %3355 = vmatpush2.bf16.msra.mxu1 %v6808_v4  ;;  %3243 = vmatprep.subr.bf16.mxu0 %v6809_v17  ;;  %v2281_v4 = vmul.f32 0.2, %v7835_v51  ;;  %v6841_v17 = vld [vmem:[#allocation6 + $0xcc] ss:$16 sps:$4 sm:$0xff]  }
 0x24d   : > { %3356 = vmatprep.subr.bf16.mxu1 %v6811_v18  ;;  %v6844_v18 = vld [vmem:[#allocation6 + $0x2cc] ss:$16 sps:$4 sm:$0xff]  }
 0x24e   : > { %v2345_v54 = vmax.f32 %v7835_v51, %v2281_v4  ;;  %v6854_v51 = vld [vmem:[#allocation6 + $0x288] ss:$16 sps:$4 sm:$0xff]   ;;  %v7883_v4 = vld [vmem:[#allocation2 + $0x160] sm:$0xff] }
 0x24f   : > { %3244 = vmatpush2.bf16.msra.mxu0 %v6813_v27  ;;  %v6839_v27 = vld [vmem:[#allocation6 + $0xc8] ss:$16 sps:$4 sm:$0xff]  }
 0x250   : > { %3357 = vmatpush2.bf16.msra.mxu1 %v6814_v29  ;;  %3245 = vmatprep.subr.bf16.mxu0 %v6815_v47  ;;  %v7846_v29 = vpack.c.bf16 %v2346_v58, %v2342_v57  ;;  %v7848_v47 = vpack.c.bf16 %v2348_v3, %v2344_v0  ;;  %v2300_v57 = vmul.f32 0.2, %v2236_v49  ;;  %v2353_v58 = vmax.f32 %v7857_v2, %v2289_v34  ;;  %v2229_v0 = vld [vmem:[#allocation2 + $0x1e8] sm:$0xff]  ;;  %v2233_v3 = vld [vmem:[#allocation2 + $0x1e0] sm:$0xff] }
 0x251   : > { %3358 = vmatprep.subr.bf16.mxu1 %v6817_v48  ;;  %v2341_v48 = vmax.f32 %v7833_v43, %v2277_v61  ;;  %v7875_v43 = vpack.c.bf16 %v2356_v26, %v2352_v25  ;;  %v2293_v12 = vmul.f32 0.2, %v2229_v0  ;;  %v2297_v15 = vmul.f32 0.2, %v2233_v3  ;;  %v6866_v2 = vld [vmem:[#allocation6 + $0x248] ss:$16 sps:$4 sm:$0xff]  }
 0x252   : > { %v2364_v22 = vmax.f32 %v2236_v49, %v2300_v57  ;;  %v7887_v23 = vpack.c.bf16 %v2353_v58, %v2349_v52  ;;  %v6874_v25 = vld [vmem:[#allocation6 + $0x22c] ss:$16 sps:$4 sm:$0xff]   ;;  %v2243_v52 = vld [vmem:[#allocation2 + $0x20] sm:$0xff] }
 0x253   : > { %3246 = vmatpush2.bf16.msra.mxu0 %v6819_v53  ;;  %v6842_v53 = vld [vmem:[#allocation6 + $0x2c8] ss:$16 sps:$4 sm:$0xff]   ;;  %v2307_v58 = vmul.f32 0.2, %v2243_v52 }
 0x254   : > { %3359 = vmatpush2.bf16.msra.mxu1 %v6820_v60  ;;  %3247 = vmatprep.subr.bf16.mxu0 %v6821_v7  ;;  %v2347_v60 = vmax.f32 %v2219_v55, %v2283_v11  ;;  %v2350_v7 = vmax.f32 %v2222_v6, %v2286_v21  ;;  %v2298_v55 = vmul.f32 0.2, %v2234_v44  ;;  %v6862_v6 = vld [vmem:[#allocation6 + $0x26c] ss:$16 sps:$4 sm:$0xff]   ;;  %v2358_v11 = vmax.f32 %v2230_v41, %v2294_v45  ;;  %v2239_v45 = vld [vmem:[#allocation2 + $0x100] sm:$0xff] }
 0x255   : > { %3360 = vmatprep.subr.bf16.mxu1 %v6823_v8  ;;  %v7859_v8 = vld [vmem:[#allocation2 + $0x138] sm:$0xff]  ;;  %v2244_v33 = vld [vmem:[#allocation2 + $0x128] sm:$0xff]  ;;  %v2303_v57 = vmul.f32 0.2, %v2239_v45 }
 0x256   : > { %v2287_v37 = vmul.f32 0.2, %v7859_v8  ;;  %v7873_v42 = vpack.c.bf16 %v2354_v20, %v2350_v7  ;;  %v6871_v20 = vld [vmem:[#allocation6 + $0x2c] ss:$16 sps:$4 sm:$0xff]  }
 0x257   : > { %3248 = vmatpush2.bf16.msra.mxu0 %v6825_v13  ;;  %v7861_v13 = vld [vmem:[#allocation2 + $0x1b8] sm:$0xff]  ;;  %v2237_v41 = vld [vmem:[#allocation2 + $0x148] sm:$0xff] }
 0x258   : > { %3361 = vmatpush2.bf16.msra.mxu1 %v6826_v14  ;;  %3249 = vmatprep.subr.bf16.mxu0 %v6827_v35  ;;  %v6847_v14 = vld [vmem:[#allocation6 + $0xac] ss:$16 sps:$4 sm:$0xff]   ;;  %v7867_v35 = vpack.c.bf16 %v2345_v54, %v2341_v48  ;;  %v2291_v38 = vmul.f32 0.2, %v7861_v13  ;;  %v2351_v61 = vmax.f32 %v7859_v8, %v2287_v37  ;;  %v2299_v48 = vmul.f32 0.2, %v2235_v5 }
 0x259   : > { %3362 = vmatprep.subr.bf16.mxu1 %v6829_v36  ;;  %v7869_v36 = vpack.c.bf16 %v2347_v60, %v2343_v59  ;;  %v6868_v54 = vld [vmem:[#allocation6 + $0x24c] ss:$16 sps:$4 sm:$0xff]   ;;  %v2357_v59 = vmax.f32 %v2229_v0, %v2293_v12  ;;  %v2361_v60 = vmax.f32 %v2233_v3, %v2297_v15  ;;  %v6875_v3 = vld [vmem:[#allocation6 + $0x8] ss:$16 sps:$4 sm:$0xff]   ;;  %v2367_v15 = vmax.f32 %v2239_v45, %v2303_v57 }
 0x25a   : > { %v2242_v26 = vld [vmem:[#allocation2 + $0x1f8] sm:$0xff] }
 0x25b   : > { %3250 = vmatpush2.bf16.msra.mxu0 %v6831_v39  ;;  %v6853_v39 = vld [vmem:[#allocation6 + $0x8c] ss:$16 sps:$4 sm:$0xff]   ;;  %v2306_v34 = vmul.f32 0.2, %v2242_v26 }
 0x25c   : > { %3363 = vmatpush2.bf16.msra.mxu1 %v6832_v40  ;;  %3445 = vmatprep.subr.bf16.mxu0 %v6835_v50  ;;  %v6856_v40 = vld [vmem:[#allocation6 + $0x28c] ss:$16 sps:$4 sm:$0xff]   ;;  %v6851_v50 = vld [vmem:[#allocation6 + $0x88] ss:$16 sps:$4 sm:$0xff]  }
 0x25d   : > { %3558 = vmatprep.subr.bf16.mxu1 %v6838_v56  ;;  %v2296_v56 = vmul.f32 0.2, %v2232_v46  ;;  %v6880_v0 = vld [vmem:[#allocation6 + $0x20c] ss:$16 sps:$4 sm:$0xff]  }
 0x25e   : > { %3252 = vmatmul.mubr.bf16.vlgmr.msra.gmra.mxu0 %v7842_v9 }
 0x25f   : > { %3365 = vmatmul.mubr.bf16.vlgmr.msra.gmra.mxu1 %v7844_v10  ;;  %3446 = vmatpush1.bf16.msra.mxu0 %v6833_v62  ;;  %v2355_v62 = vmax.f32 %v7861_v13, %v2291_v38  ;;  %v2360_v21 = vmax.f32 %v2232_v46, %v2296_v56  ;;  %v2238_v13 = vld [vmem:[#allocation2 + $0x1d0] sm:$0xff]  ;;  %v2308_v38 = vmul.f32 0.2, %v2244_v33  ;;  %v2370_v46 = vmax.f32 %v2242_v26, %v2306_v34  ;;  %v2245_v26 = vld [vmem:[#allocation2 + $0x1a0] sm:$0xff] }
 0x260   : > { %3559 = vmatpush1.bf16.msra.mxu1 %v6836_v63  ;;  %3447 = vmatprep.subr.bf16.mxu0 %v6841_v17  ;;  %v6859_v63 = vld [vmem:[#allocation6 + $0x6c] ss:$16 sps:$4 sm:$0xff]   ;;  %v6860_v17 = vld [vmem:[#allocation6 + $0x268] ss:$16 sps:$4 sm:$0xff]  }
 0x261   : > { %3560 = vmatprep.subr.bf16.mxu1 %v6844_v18  ;;  %3261 = vmatprep.mubr.bf16.mxu0 %v7846_v29  ;;  %v2362_v18 = vmax.f32 %v2234_v44, %v2298_v55  ;;  %v7889_v24 = vpack.c.bf16 %v2355_v62, %v2351_v61  ;;  %v7894_v8 = vpack.c.bf16 %v2364_v22, %v2360_v21  ;;  %v2241_v44 = vld [vmem:[#allocation2 + $0x40] sm:$0xff]  ;;  %v6869_v61 = vld [vmem:[#allocation6 + $0x28] ss:$16 sps:$4 sm:$0xff]   ;;  %v2246_v21 = vld [vmem:[#allocation2 + $0x1f0] sm:$0xff] }
 0x262   : > { %3374 = vmatprep.mubr.bf16.mxu1 %v7848_v47  ;;  %v2305_v56 = vmul.f32 0.2, %v2241_v44  ;;  %v6872_v62 = vld [vmem:[#allocation6 + $0x228] ss:$16 sps:$4 sm:$0xff]   ;;  %v2250_v22 = vld [vmem:[#allocation2 + $0x90] sm:$0xff] }
 0x263   : > { %3448 = vmatpush1.bf16.msra.mxu0 %v6839_v27  ;;  %v2295_v27 = vmul.f32 0.2, %v7883_v4  ;;  %v7892_v7 = vpack.c.bf16 %v2362_v18, %v2358_v11  ;;  %v6878_v11 = vld [vmem:[#allocation6 + $0x208] ss:$16 sps:$4 sm:$0xff]   ;;  %v6886_v18 = vld [vmem:[#allocation6 + $0x3ec] ss:$16 sps:$4 sm:$0xff]  }
 0x264   : > { %3561 = vmatpush1.bf16.msra.mxu1 %v6842_v53  ;;  %3449 = vmatprep.subr.bf16.mxu0 %v6847_v14  ;;  %v6865_v53 = vld [vmem:[#allocation6 + $0x4c] ss:$16 sps:$4 sm:$0xff]   ;;  %v2369_v12 = vmax.f32 %v2241_v44, %v2305_v56 }
 0x265   : > { %3562 = vmatprep.subr.bf16.mxu1 %v6850_v19  ;;  %v2359_v14 = vmax.f32 %v7883_v4, %v2295_v27  ;;  %v2363_v19 = vmax.f32 %v2235_v5, %v2299_v48  ;;  %v2310_v27 = vmul.f32 0.2, %v2246_v21  ;;  %v2248_v48 = vld [vmem:[#allocation2 + $0x78] sm:$0xff] }
 0x266   : > { %3262 = vmatmul.mubr.bf16.gmra.mxu0 %v7867_v35 }
 0x267   : > { %3375 = vmatmul.mubr.bf16.gmra.mxu1 %v7869_v36  ;;  %3450 = vmatpush1.bf16.msra.mxu0 %v6845_v31  ;;  %v2302_v31 = vmul.f32 0.2, %v2238_v13  ;;  %v7903_v55 = vpack.c.bf16 %v2363_v19, %v2359_v14  ;;  %v6889_v19 = vld [vmem:[#allocation6 + $0x1cc] ss:$16 sps:$4 sm:$0xff]  }
 0x268   : > { %3563 = vmatpush1.bf16.msra.mxu1 %v6848_v32  ;;  %3451 = vmatprep.subr.bf16.mxu0 %v6853_v39  ;;  %v2240_v32 = vld [vmem:[#allocation2 + $0xc8] sm:$0xff]  ;;  %v7899_v39 = vpack.c.bf16 %v2361_v60, %v2357_v59  ;;  %v2314_v60 = vmul.f32 0.2, %v2250_v22 }
 0x269   : > { %3564 = vmatprep.subr.bf16.mxu1 %v6856_v40  ;;  %3271 = vmatprep.mubr.bf16.mxu0 %v7873_v42  ;;  %v2304_v37 = vmul.f32 0.2, %v2240_v32  ;;  %v2366_v40 = vmax.f32 %v2238_v13, %v2302_v31  ;;  %v6884_v59 = vld [vmem:[#allocation6 + $0x3e8] ss:$16 sps:$4 sm:$0xff]   ;;  %v2249_v31 = vld [vmem:[#allocation2 + $0x70] sm:$0xff] }
 0x26a   : > { %3384 = vmatprep.mubr.bf16.mxu1 %v7875_v43 }
 0x26b   : > { %3452 = vmatpush1.bf16.msra.mxu0 %v6851_v50  ;;  %v2368_v49 = vmax.f32 %v2240_v32, %v2304_v37  ;;  %v2372_v50 = vmax.f32 %v2244_v33, %v2308_v38  ;;  %v7905_v4 = vpack.c.bf16 %v2370_v46, %v2366_v40  ;;  %v2247_v32 = vld [vmem:[#allocation2 + $0xe8] sm:$0xff]  ;;  %v2378_v33 = vmax.f32 %v2250_v22, %v2314_v60  ;;  %v2251_v40 = vld [vmem:[#allocation2 + $0x1d8] sm:$0xff] }
 0x26c   : > { %3565 = vmatpush1.bf16.msra.mxu1 %v6854_v51  ;;  %3453 = vmatprep.subr.bf16.mxu0 %v6859_v63  ;;  %v2301_v51 = vmul.f32 0.2, %v2237_v41  ;;  %v6877_v63 = vld [vmem:[#allocation6 + $0xc] ss:$16 sps:$4 sm:$0xff]   ;;  %v2309_v38 = vmul.f32 0.2, %v2245_v26 }
 0x26d   : > { %3566 = vmatprep.subr.bf16.mxu1 %v6862_v6  ;;  %v7907_v5 = vpack.c.bf16 %v2372_v50, %v2368_v49  ;;  %v2311_v44 = vmul.f32 0.2, %v2247_v32  ;;  %v2315_v45 = vmul.f32 0.2, %v2251_v40  ;;  %v2255_v60 = vld [vmem:[#allocation2 + $0xa8] sm:$0xff] }
 0x26e   : > { %3272 = vmatmul.mubr.bf16.gmra.mxu0 %v7887_v23  ;;  %v2365_v6 = vmax.f32 %v2237_v41, %v2301_v51  ;;  %v2313_v41 = vmul.f32 0.2, %v2249_v31  ;;  %v2373_v50 = vmax.f32 %v2245_v26, %v2309_v38  ;;  %v6887_v51 = vld [vmem:[#allocation6 + $0x1c8] ss:$16 sps:$4 sm:$0xff]  }
 0x26f   : > { %3385 = vmatmul.mubr.bf16.gmra.mxu1 %v7889_v24  ;;  %3454 = vmatpush1.bf16.msra.mxu0 %v6857_v16  ;;  %v2371_v16 = vmax.f32 %v2243_v52, %v2307_v58  ;;  %v6890_v52 = vld [vmem:[#allocation6 + $0x3c8] ss:$16 sps:$4 sm:$0xff]   ;;  %v2375_v57 = vmax.f32 %v2247_v32, %v2311_v44  ;;  %v2379_v58 = vmax.f32 %v2251_v40, %v2315_v45 }
 0x270   : > { %3567 = vmatpush1.bf16.msra.mxu1 %v6860_v17  ;;  %3455 = vmatprep.subr.bf16.mxu0 %v6865_v53  ;;  %v6883_v17 = vld [vmem:[#allocation6 + $0x1ec] ss:$16 sps:$4 sm:$0xff]   ;;  %v2252_v53 = vld [vmem:[#allocation2 + $0xd0] sm:$0xff]  ;;  %v7913_v13 = vpack.c.bf16 %v2369_v12, %v2365_v6  ;;  %v2377_v56 = vmax.f32 %v2249_v31, %v2313_v41  ;;  %v2319_v31 = vmul.f32 0.2, %v2255_v60 }
 0x271   : > { %3568 = vmatprep.subr.bf16.mxu1 %v6868_v54  ;;  %3281 = vmatprep.mubr.bf16.mxu0 %v7892_v7  ;;  %v6881_v54 = vld [vmem:[#allocation6 + $0x1e8] ss:$16 sps:$4 sm:$0xff]   ;;  %v7915_v14 = vpack.c.bf16 %v2371_v16, %v2367_v15  ;;  %v6901_v12 = vld [vmem:[#allocation6 + $0x18c] ss:$16 sps:$4 sm:$0xff]  }
 0x272   : > { %3394 = vmatprep.mubr.bf16.mxu1 %v7894_v8  ;;  %v7925_v6 = vpack.c.bf16 %v2377_v56, %v2373_v50  ;;  %v6904_v15 = vld [vmem:[#allocation6 + $0x38c] ss:$16 sps:$4 sm:$0xff]   ;;  %v2383_v44 = vmax.f32 %v2255_v60, %v2319_v31 }
 0x273   : > { %3456 = vmatpush1.bf16.msra.mxu0 %v6863_v1  ;;  %v2312_v1 = vmul.f32 0.2, %v2248_v48  ;;  %v2258_v16 = vld [vmem:[#allocation2 + $0x178] sm:$0xff] }
 0x274   : > { %3569 = vmatpush1.bf16.msra.mxu1 %v6866_v2  ;;  %3457 = vmatprep.subr.bf16.mxu0 %v6871_v20  ;;  %v2316_v2 = vmul.f32 0.2, %v2252_v53  ;;  %v6892_v20 = vld [vmem:[#allocation6 + $0x3cc] ss:$16 sps:$4 sm:$0xff]   ;;  %v2322_v22 = vmul.f32 0.2, %v2258_v16 }
 0x275   : > { %3570 = vmatprep.subr.bf16.mxu1 %v6874_v25  ;;  %v2374_v25 = vmax.f32 %v2246_v21, %v2310_v27  ;;  %v2376_v34 = vmax.f32 %v2248_v48, %v2312_v1  ;;  %v2260_v21 = vld [vmem:[#allocation2 + $0x190] sm:$0xff]  ;;  %v6907_v50 = vld [vmem:[#allocation6 + $0x16c] ss:$16 sps:$4 sm:$0xff]  }
 0x276   : > { %3282 = vmatmul.mubr.bf16.gmra.mxu0 %v7899_v39  ;;  %v2380_v37 = vmax.f32 %v2252_v53, %v2316_v2  ;;  %v2324_v48 = vmul.f32 0.2, %v2260_v21  ;;  %v2386_v1 = vmax.f32 %v2258_v16, %v2322_v22  ;;  %v6911_v16 = vld [vmem:[#allocation6 + $0x148] ss:$16 sps:$4 sm:$0xff]  }
 0x277   : > { %3395 = vmatmul.mubr.bf16.gmra.mxu1 %v7903_v55  ;;  %3458 = vmatpush1.bf16.msra.mxu0 %v6869_v61  ;;  %v7917_v46 = vpack.c.bf16 %v2378_v33, %v2374_v25  ;;  %v6895_v61 = vld [vmem:[#allocation6 + $0x1ac] ss:$16 sps:$4 sm:$0xff]   ;;  %v6899_v33 = vld [vmem:[#allocation6 + $0x188] ss:$16 sps:$4 sm:$0xff]  }
 0x278   : > { %3571 = vmatpush1.bf16.msra.mxu1 %v6872_v62  ;;  %3459 = vmatprep.subr.bf16.mxu0 %v6877_v63  ;;  %v7919_v49 = vpack.c.bf16 %v2380_v37, %v2376_v34  ;;  %v6898_v62 = vld [vmem:[#allocation6 + $0x3ac] ss:$16 sps:$4 sm:$0xff]   ;;  %v6893_v63 = vld [vmem:[#allocation6 + $0x1a8] ss:$16 sps:$4 sm:$0xff]  }
 0x279   : > { %3572 = vmatprep.subr.bf16.mxu1 %v6880_v0  ;;  %3291 = vmatprep.mubr.bf16.mxu0 %v7905_v4  ;;  %v6896_v0 = vld [vmem:[#allocation6 + $0x3a8] ss:$16 sps:$4 sm:$0xff]  }
 0x27a   : > { %3404 = vmatprep.mubr.bf16.mxu1 %v7907_v5  ;;  %v2259_v25 = vld [vmem:[#allocation2 + $0x68] sm:$0xff] }
 0x27b   : > { %3460 = vmatpush1.bf16.msra.mxu0 %v6875_v3  ;;  %v2254_v3 = vld [vmem:[#allocation2 + $0x88] sm:$0xff]  ;;  %v2323_v32 = vmul.f32 0.2, %v2259_v25 }
 0x27c   : > { %3573 = vmatpush1.bf16.msra.mxu1 %v6878_v11  ;;  %3461 = vmatprep.subr.bf16.mxu0 %v6883_v17  ;;  %v7927_v11 = vpack.c.bf16 %v2379_v58, %v2375_v57  ;;  %v2318_v17 = vmul.f32 0.2, %v2254_v3  ;;  %v6902_v34 = vld [vmem:[#allocation6 + $0x388] ss:$16 sps:$4 sm:$0xff]  }
 0x27d   : > { %3574 = vmatprep.subr.bf16.mxu1 %v6886_v18  ;;  %v2256_v18 = vld [vmem:[#allocation2 + $0x1c8] sm:$0xff]  ;;  %v2387_v45 = vmax.f32 %v2259_v25, %v2323_v32 }
 0x27e   : > { %3292 = vmatmul.mubr.bf16.gmra.mxu0 %v7913_v13  ;;  %v2320_v27 = vmul.f32 0.2, %v2256_v18  ;;  %v2382_v53 = vmax.f32 %v2254_v3, %v2318_v17  ;;  %v6908_v58 = vld [vmem:[#allocation6 + $0x368] ss:$16 sps:$4 sm:$0xff]  }
 0x27f   : > { %3405 = vmatmul.mubr.bf16.gmra.mxu1 %v7915_v14  ;;  %3462 = vmatpush2.bf16.msra.mxu0 %v6881_v54  ;;  %v2253_v54 = vld [vmem:[#allocation2 + $0xb8] sm:$0xff]  ;;  %v7939_v57 = vpack.c.bf16 %v2387_v45, %v2383_v44 }
 0x280   : > { %3575 = vmatpush2.bf16.msra.mxu1 %v6884_v59  ;;  %3463 = vmatprep.subr.bf16.mxu0 %v6889_v19  ;;  %v2257_v59 = vld [vmem:[#allocation2 + $0x170] sm:$0xff]  ;;  %v2384_v2 = vmax.f32 %v2256_v18, %v2320_v27  ;;  %v2388_v19 = vmax.f32 %v2260_v21, %v2324_v48  ;;  %v7931_v37 = vpack.c.bf16 %v2386_v1, %v2382_v53  ;;  %v6914_v17 = vld [vmem:[#allocation6 + $0x348] ss:$16 sps:$4 sm:$0xff]  }
 0x281   : > { %3576 = vmatprep.subr.bf16.mxu1 %v6892_v20  ;;  %3301 = vmatprep.mubr.bf16.mxu0 %v7917_v46  ;;  %v2317_v20 = vmul.f32 0.2, %v2253_v54  ;;  %v2321_v26 = vmul.f32 0.2, %v2257_v59  ;;  %v2261_v48 = vld [vmem:[#allocation2 + $0x198] sm:$0xff] }
 0x282   : > { %3414 = vmatprep.mubr.bf16.mxu1 %v7919_v49  ;;  %v7933_v38 = vpack.c.bf16 %v2388_v19, %v2384_v2  ;;  %v2265_v53 = vld [vmem:[#allocation2 + $0x158] sm:$0xff]  ;;  %v2325_v2 = vmul.f32 0.2, %v2261_v48 }
 0x283   : > { %3464 = vmatpush2.bf16.msra.mxu0 %v6887_v51  ;;  %v2381_v40 = vmax.f32 %v2253_v54, %v2317_v20  ;;  %v2385_v41 = vmax.f32 %v2257_v59, %v2321_v26  ;;  %v6910_v51 = vld [vmem:[#allocation6 + $0x36c] ss:$16 sps:$4 sm:$0xff]   ;;  %v2263_v54 = vld [vmem:[#allocation2 + $0xc0] sm:$0xff]  ;;  %v2329_v20 = vmul.f32 0.2, %v2265_v53 }
 0x284   : > { %3577 = vmatpush2.bf16.msra.mxu1 %v6890_v52  ;;  %3465 = vmatprep.subr.bf16.mxu0 %v6895_v61  ;;  %v6905_v52 = vld [vmem:[#allocation6 + $0x168] ss:$16 sps:$4 sm:$0xff]   ;;  %v6913_v61 = vld [vmem:[#allocation6 + $0x14c] ss:$16 sps:$4 sm:$0xff]   ;;  %v2327_v25 = vmul.f32 0.2, %v2263_v54 }
 0x285   : > { %3578 = vmatprep.subr.bf16.mxu1 %v6898_v62  ;;  %v7937_v56 = vpack.c.bf16 %v2385_v41, %v2381_v40  ;;  %v6916_v62 = vld [vmem:[#allocation6 + $0x34c] ss:$16 sps:$4 sm:$0xff]   ;;  %v2393_v40 = vmax.f32 %v2265_v53, %v2329_v20  ;;  %v6917_v45 = vld [vmem:[#allocation6 + $0x128] ss:$16 sps:$4 sm:$0xff]   ;;  %v6997_v53 = vld [vmem:[#allocation8 + $0x284] ss:$16 sps:$4 sm:$0xff]  }
 0x286   : > { %3302 = vmatmul.mubr.bf16.gmra.mxu0 %v7925_v6  ;;  %v2267_v19 = vld [vmem:[#allocation2 + $0x58] sm:$0xff]  ;;  %v2391_v41 = vmax.f32 %v2263_v54, %v2327_v25  ;;  %v6958_v54 = vld [vmem:[#allocation8 + $0x1c4] ss:$16 sps:$4 sm:$0xff]   ;;  %v6965_v20 = vld [vmem:[#allocation8 + $0x160] ss:$16 sps:$4 sm:$0xff]  }
 0x287   : > { %3415 = vmatmul.mubr.bf16.gmra.mxu1 %v7927_v11  ;;  %3466 = vmatpush2.bf16.msra.mxu0 %v6893_v63  ;;  %v2262_v63 = vld [vmem:[#allocation2 + $0x38] sm:$0xff]  ;;  %v2331_v26 = vmul.f32 0.2, %v2267_v19  ;;  %v7021_v25 = vld [vmem:[#allocation8 + $0x204] ss:$16 sps:$4 sm:$0xff]  }
 0x288   : > { %3579 = vmatpush2.bf16.msra.mxu1 %v6896_v0  ;;  %3467 = vmatprep.subr.bf16.mxu0 %v6901_v12  ;;  %v2266_v0 = vld [vmem:[#allocation2 + $0x10] sm:$0xff]  ;;  %v2326_v3 = vmul.f32 0.2, %v2262_v63  ;;  %v2264_v12 = vld [vmem:[#allocation2 + $0x1c0] sm:$0xff] }
 0x289   : > { %3580 = vmatprep.subr.bf16.mxu1 %v6904_v15  ;;  %3311 = vmatprep.mubr.bf16.mxu0 %v7931_v37  ;;  %v2268_v15 = vld [vmem:[#allocation2 + $0xa0] sm:$0xff]  ;;  %v2330_v18 = vmul.f32 0.2, %v2266_v0  ;;  %v2328_v21 = vmul.f32 0.2, %v2264_v12  ;;  %v2395_v44 = vmax.f32 %v2267_v19, %v2331_v26 }
 0x28a   : > { %3424 = vmatprep.mubr.bf16.mxu1 %v7933_v38  ;;  %v2332_v22 = vmul.f32 0.2, %v2268_v15  ;;  %v2390_v27 = vmax.f32 %v2262_v63, %v2326_v3  ;;  %v6923_v63 = vld [vmem:[#allocation6 + $0x108] ss:$16 sps:$4 sm:$0xff]   ;;  %v6931_v3 = vld [vmem:[#allocation8 + $0xe4] ss:$16 sps:$4 sm:$0xff]  }
 0x28b   : > { %3468 = vmatpush2.bf16.msra.mxu0 %v6899_v33  ;;  %v2394_v59 = vmax.f32 %v2266_v0, %v2330_v18  ;;  %v2392_v60 = vmax.f32 %v2264_v12, %v2328_v21  ;;  %v2389_v33 = vmax.f32 %v2261_v48, %v2325_v2  ;;  %v6926_v0 = vld [vmem:[#allocation6 + $0x308] ss:$16 sps:$4 sm:$0xff]   ;;  %v6929_v12 = vld [vmem:[#allocation8 + $0xe0] ss:$16 sps:$4 sm:$0xff]   ;;  %v6985_v21 = vld [vmem:[#allocation8 + $0x2c4] ss:$16 sps:$4 sm:$0xff]  }
 0x28c   : > { %3581 = vmatpush2.bf16.msra.mxu1 %v6902_v34  ;;  %3469 = vmatprep.subr.bf16.mxu0 %v6907_v50  ;;  %v2396_v1 = vmax.f32 %v2268_v15, %v2332_v22  ;;  %v6919_v34 = vld [vmem:[#allocation6 + $0x12c] ss:$16 sps:$4 sm:$0xff]   ;;  %v6934_v15 = vld [vmem:[#allocation8 + $0xc4] ss:$16 sps:$4 sm:$0xff]   ;;  %v6947_v18 = vld [vmem:[#allocation8 + $0x20] ss:$16 sps:$4 sm:$0xff]  }
 0x28d   : > { %3582 = vmatprep.subr.bf16.mxu1 %v6910_v51  ;;  %v7943_v31 = vpack.c.bf16 %v2394_v59, %v2390_v27  ;;  %v6922_v50 = vld [vmem:[#allocation6 + $0x32c] ss:$16 sps:$4 sm:$0xff]   ;;  %v6920_v51 = vld [vmem:[#allocation6 + $0x328] ss:$16 sps:$4 sm:$0xff]   ;;  %v6952_v22 = vld [vmem:[#allocation8 + $0x4] ss:$16 sps:$4 sm:$0xff]  }
 0x28e   : > { %3312 = vmatmul.mubr.bf16.gmra.mxu0 %v7937_v56  ;;  %v7945_v32 = vpack.c.bf16 %v2396_v1, %v2392_v60  ;;  %v6983_v27 = vld [vmem:[#allocation8 + $0x2c0] ss:$16 sps:$4 sm:$0xff]   ;;  %v7009_v1 = vld [vmem:[#allocation8 + $0x244] ss:$16 sps:$4 sm:$0xff]  }
 0x28f   : > { %3425 = vmatmul.mubr.bf16.gmra.mxu1 %v7939_v57  ;;  %3470 = vmatpush2.bf16.msra.mxu0 %v6905_v52  ;;  %v7949_v52 = vpack.c.bf16 %v2393_v40, %v2389_v33  ;;  %v6953_v48 = vld [vmem:[#allocation8 + $0x1e0] ss:$16 sps:$4 sm:$0xff]   ;;  %v6964_v2 = vld [vmem:[#allocation8 + $0x184] ss:$16 sps:$4 sm:$0xff]  }
 0x290   : > { %3583 = vmatpush2.bf16.msra.mxu1 %v6908_v58  ;;  %3471 = vmatprep.subr.bf16.mxu0 %v6913_v61  ;;  %v7951_v58 = vpack.c.bf16 %v2395_v44, %v2391_v41  ;;  %v6925_v61 = vld [vmem:[#allocation6 + $0x10c] ss:$16 sps:$4 sm:$0xff]   ;;  %v7001_v59 = vld [vmem:[#allocation8 + $0x260] ss:$16 sps:$4 sm:$0xff]   ;;  %v6970_v26 = vld [vmem:[#allocation8 + $0x144] ss:$16 sps:$4 sm:$0xff]  }
 0x291   : > { %3584 = vmatprep.subr.bf16.mxu1 %v6916_v62  ;;  %3321 = vmatprep.mubr.bf16.mxu0 %v7943_v31  ;;  %v6928_v62 = vld [vmem:[#allocation6 + $0x30c] ss:$16 sps:$4 sm:$0xff]   ;;  %v6959_v60 = vld [vmem:[#allocation8 + $0x1a0] ss:$16 sps:$4 sm:$0xff]   ;;  %v7033_v40 = vld [vmem:[#allocation8 + $0x3c4] ss:$16 sps:$4 sm:$0xff]  }
 0x292   : > { %3434 = vmatprep.mubr.bf16.mxu1 %v7945_v32  ;;  %v7013_v19 = vld [vmem:[#allocation8 + $0x220] ss:$16 sps:$4 sm:$0xff]   ;;  %v6976_v41 = vld [vmem:[#allocation8 + $0x104] ss:$16 sps:$4 sm:$0xff]  }
 0x293   : > { %3472 = vmatpush2.bf16.msra.mxu0 %v6911_v16  ;;  %v6932_v16 = vld [vmem:[#allocation8 + $0xc0] ss:$16 sps:$4 sm:$0xff]  }
 0x294   : > { %3585 = vmatpush2.bf16.msra.mxu1 %v6914_v17  ;;  %3473 = vmatprep.subr.bf16.mxu0 %v6919_v34  ;;  %v6937_v17 = vld [vmem:[#allocation8 + $0xa4] ss:$16 sps:$4 sm:$0xff]   ;;  %v7025_v33 = vld [vmem:[#allocation8 + $0x3e0] ss:$16 sps:$4 sm:$0xff]  }
 0x295   : > { %3586 = vmatprep.subr.bf16.mxu1 %v6922_v50  ;;  %v6971_v34 = vld [vmem:[#allocation8 + $0x120] ss:$16 sps:$4 sm:$0xff]  }
 0x296   : > { %3322 = vmatmul.mubr.bf16.gmra.mxu0 %v7949_v52  ;;  %v7037_v44 = vld [vmem:[#allocation8 + $0x3a0] ss:$16 sps:$4 sm:$0xff]  }
 0x297   : > { %3435 = vmatmul.mubr.bf16.gmra.mxu1 %v7951_v58  ;;  %3474 = vmatpush2.bf16.msra.mxu0 %v6917_v45  ;;  %v7045_v45 = vld [vmem:[#allocation8 + $0x384] ss:$16 sps:$4 sm:$0xff]   ;;  %v7043_v50 = vld [vmem:[#allocation8 + $0x380] ss:$16 sps:$4 sm:$0xff]  }
 0x298   : > { %3587 = vmatpush2.bf16.msra.mxu1 %v6920_v51  ;;  %3475 = vmatprep.subr.bf16.mxu0 %v6925_v61  ;;  %v7051_v51 = vld [vmem:[#allocation8 + $0x364] ss:$16 sps:$4 sm:$0xff]   ;;  %v7049_v61 = vld [vmem:[#allocation8 + $0x360] ss:$16 sps:$4 sm:$0xff]  }
 0x299   : > { %3588 = vmatprep.subr.bf16.mxu1 %v6928_v62  ;;  %3477 = vmatprep.mubr.bf16.mxu0 %v7827_v28  ;;  %v6935_v28 = vld [vmem:[#allocation8 + $0xa0] ss:$16 sps:$4 sm:$0xff]   ;;  %v7063_v62 = vld [vmem:[#allocation8 + $0x324] ss:$16 sps:$4 sm:$0xff]  }
 0x29a   : > { %3590 = vmatprep.mubr.bf16.mxu1 %v7829_v30  ;;  %v6940_v30 = vld [vmem:[#allocation8 + $0x84] ss:$16 sps:$4 sm:$0xff]  }
 0x29b   : > { %3476 = vmatpush2.bf16.msra.mxu0 %v6923_v63  ;;  %v7061_v63 = vld [vmem:[#allocation8 + $0x320] ss:$16 sps:$4 sm:$0xff]  }
 0x29c   : > { %3589 = vmatpush2.bf16.msra.mxu1 %v6926_v0  ;;  %4621 = vmatprep.subr.bf16.mxu0 %v6931_v3  ;;  %v7069_v0 = vld [vmem:[#allocation8 + $0x304] ss:$16 sps:$4 sm:$0xff]   ;;  %v7067_v3 = vld [vmem:[#allocation8 + $0x300] ss:$16 sps:$4 sm:$0xff]  }
 0x29e   : > { %3478 = vmatmul.mubr.bf16.vlgmr.msra.gmra.mxu0 %v7842_v9  ;;  %v6938_v9 = vld [vmem:[#allocation8 + $0x80] ss:$16 sps:$4 sm:$0xff]  }
 0x29f   : > { %3591 = vmatmul.mubr.bf16.vlgmr.msra.gmra.mxu1 %v7844_v10  ;;  %3487 = vmatprep.mubr.bf16.mxu0 %v7846_v29  ;;  %v6943_v10 = vld [vmem:[#allocation8 + $0x64] ss:$16 sps:$4 sm:$0xff]   ;;  %v6941_v29 = vld [vmem:[#allocation8 + $0x60] ss:$16 sps:$4 sm:$0xff]  }
 0x2a0   : > { %3600 = vmatprep.mubr.bf16.mxu1 %v7848_v47  ;;  %4622 = vmatpush1.bf16.msra.mxu0 %v6929_v12  ;;  %v6946_v47 = vld [vmem:[#allocation8 + $0x44] ss:$16 sps:$4 sm:$0xff]   ;;  %v7075_v12 = vld [vmem:[#allocation8 + $0x2ec] ss:$16 sps:$4 sm:$0xff]  }
 0x2a1   : > { %4623 = vmatprep.subr.bf16.mxu0 %v6934_v15  ;;  %v2559_v15 = vlaneseq }
 0x2a4   : > { %4624 = vmatpush1.bf16.msra.mxu0 %v6932_v16  ;;  %v7987_v16 = vshrl.u32 %v2559_v15, 7  ;;  %v6994_v15 = vld [vmem:[#allocation8 + $0xac] ss:$16 sps:$4 sm:$0xff]  }
 0x2a5   : > { %4625 = vmatprep.subr.bf16.mxu0 %v6937_v17 }
 0x2a6   : > { %3488 = vmatmul.mubr.bf16.gmra.mxu0 %v7867_v35  ;;  %v6944_v35 = vld [vmem:[#allocation8 + $0x40] ss:$16 sps:$4 sm:$0xff]   ;;  %v2561_v17 = vsub.s32 0, %v7987_v16 }
 0x2a7   : > { %3601 = vmatmul.mubr.bf16.gmra.mxu1 %v7869_v36  ;;  %3497 = vmatprep.mubr.bf16.mxu0 %v7873_v42  ;;  %v6979_v36 = vld [vmem:[#allocation8 + $0x2e4] ss:$16 sps:$4 sm:$0xff]  }
 0x2a8   : > { %3610 = vmatprep.mubr.bf16.mxu1 %v7875_v43  ;;  %4626 = vmatpush1.bf16.msra.mxu0 %v6935_v28  ;;  %v6949_v42 = vld [vmem:[#allocation8 + $0x24] ss:$16 sps:$4 sm:$0xff]   ;;  %v6977_v43 = vld [vmem:[#allocation8 + $0x2e0] ss:$16 sps:$4 sm:$0xff]  }
 0x2a9   : > { %4627 = vmatprep.subr.bf16.mxu0 %v6940_v30  ;;  %4734 = vmatprep.subr.bf16.mxu1 %v6979_v36  ;;  %v7993_v28 = vld [vmem:[%s8630_s4] sm:$0xf]  ;;  %v2565_v30 = vsub.s32 1, %v7987_v16 }
 0x2aa   : > { %4735 = vmatpush1.bf16.msra.mxu1 %v6977_v43 }
 0x2ab   : > { %4736 = vmatprep.subr.bf16.mxu1 %v6985_v21 }
 0x2ac   : > { %4628 = vmatpush1.bf16.msra.mxu0 %v6938_v9  ;;  %v7999_v9 = vrot.slane %v7993_v28, %v2561_v17 }
 0x2ad   : > { %4629 = vmatprep.subr.bf16.mxu0 %v6943_v10  ;;  %v8004_v10 = vrot.slane %v7993_v28, %v2565_v30 }
 0x2ae   : > { %3498 = vmatmul.mubr.bf16.gmra.mxu0 %v7887_v23  ;;  %v6950_v23 = vld [vmem:[#allocation8] ss:$16 sps:$4 sm:$0xff]   ;;  %4737 = vmatpush1.bf16.msra.mxu1 %v6983_v27 }
 0x2af   : > { %3611 = vmatmul.mubr.bf16.gmra.mxu1 %v7889_v24  ;;  %3507 = vmatprep.mubr.bf16.mxu0 %v7892_v7  ;;  %v6991_v24 = vld [vmem:[#allocation8 + $0x2a4] ss:$16 sps:$4 sm:$0xff]  }
 0x2b0   : > { %3620 = vmatprep.mubr.bf16.mxu1 %v7894_v8  ;;  %4630 = vmatpush1.bf16.msra.mxu0 %v6941_v29  ;;  %v6955_v7 = vld [vmem:[#allocation8 + $0x1e4] ss:$16 sps:$4 sm:$0xff]   ;;  %v6989_v8 = vld [vmem:[#allocation8 + $0x2a0] ss:$16 sps:$4 sm:$0xff]  }
 0x2b1   : > { %4631 = vmatprep.subr.bf16.mxu0 %v6946_v47  ;;  %4738 = vmatprep.subr.bf16.mxu1 %v6991_v24 }
 0x2b2   : > { %4739 = vmatpush1.bf16.msra.mxu1 %v6989_v8 }
 0x2b3   : > { %4740 = vmatprep.subr.bf16.mxu1 %v6997_v53 }
 0x2b4   : > { %4632 = vmatpush1.bf16.msra.mxu0 %v6944_v35 }
 0x2b5   : > { %4633 = vmatprep.subr.bf16.mxu0 %v6949_v42 }
 0x2b6   : > { %3508 = vmatmul.mubr.bf16.gmra.mxu0 %v7899_v39  ;;  %v6995_v39 = vld [vmem:[#allocation8 + $0x280] ss:$16 sps:$4 sm:$0xff]  }
 0x2b7   : > { %3621 = vmatmul.mubr.bf16.gmra.mxu1 %v7903_v55  ;;  %3517 = vmatprep.mubr.bf16.mxu0 %v7905_v4  ;;  %v6956_v55 = vld [vmem:[#allocation8 + $0x1c0] ss:$16 sps:$4 sm:$0xff]   ;;  %v7003_v4 = vld [vmem:[#allocation8 + $0x264] ss:$16 sps:$4 sm:$0xff]  }
 0x2b8   : > { %3630 = vmatprep.mubr.bf16.mxu1 %v7907_v5  ;;  %4634 = vmatpush1.bf16.msra.mxu0 %v6947_v18  ;;  %v6961_v5 = vld [vmem:[#allocation8 + $0x1a4] ss:$16 sps:$4 sm:$0xff]  }
 0x2b9   : > { %4635 = vmatprep.subr.bf16.mxu0 %v6952_v22  ;;  %4741 = vmatpush1.bf16.msra.mxu1 %v6995_v39 }
 0x2ba   : > { %4742 = vmatprep.subr.bf16.mxu1 %v7003_v4 }
 0x2bc   : > { %4636 = vmatpush1.bf16.msra.mxu0 %v6950_v23 }
 0x2bd   : > { %4637 = vmatprep.subr.bf16.mxu0 %v6955_v7  ;;  %4743 = vmatpush1.bf16.msra.mxu1 %v7001_v59 }
 0x2be   : > { %3518 = vmatmul.mubr.bf16.gmra.mxu0 %v7913_v13  ;;  %v7007_v13 = vld [vmem:[#allocation8 + $0x240] ss:$16 sps:$4 sm:$0xff]   ;;  %4744 = vmatprep.subr.bf16.mxu1 %v7009_v1 }
 0x2bf   : > { %3631 = vmatmul.mubr.bf16.gmra.mxu1 %v7915_v14  ;;  %3527 = vmatprep.mubr.bf16.mxu0 %v7917_v46  ;;  %v6962_v14 = vld [vmem:[#allocation8 + $0x180] ss:$16 sps:$4 sm:$0xff]   ;;  %v7015_v46 = vld [vmem:[#allocation8 + $0x224] ss:$16 sps:$4 sm:$0xff]  }
 0x2c0   : > { %3640 = vmatprep.mubr.bf16.mxu1 %v7919_v49  ;;  %4638 = vmatpush2.bf16.msra.mxu0 %v6953_v48  ;;  %v6967_v49 = vld [vmem:[#allocation8 + $0x164] ss:$16 sps:$4 sm:$0xff]  }
 0x2c1   : > { %4639 = vmatprep.subr.bf16.mxu0 %v6958_v54  ;;  %4745 = vmatpush1.bf16.msra.mxu1 %v7007_v13 }
 0x2c2   : > { %4746 = vmatprep.subr.bf16.mxu1 %v7015_v46 }
 0x2c4   : > { %4640 = vmatpush2.bf16.msra.mxu0 %v6956_v55 }
 0x2c5   : > { %4641 = vmatprep.subr.bf16.mxu0 %v6961_v5  ;;  %4747 = vmatpush1.bf16.msra.mxu1 %v7013_v19 }
 0x2c6   : > { %3528 = vmatmul.mubr.bf16.gmra.mxu0 %v7925_v6  ;;  %v7019_v6 = vld [vmem:[#allocation8 + $0x200] ss:$16 sps:$4 sm:$0xff]   ;;  %4748 = vmatprep.subr.bf16.mxu1 %v7021_v25 }
 0x2c7   : > { %3641 = vmatmul.mubr.bf16.gmra.mxu1 %v7927_v11  ;;  %3537 = vmatprep.mubr.bf16.mxu0 %v7931_v37  ;;  %v6968_v11 = vld [vmem:[#allocation8 + $0x140] ss:$16 sps:$4 sm:$0xff]   ;;  %v7027_v37 = vld [vmem:[#allocation8 + $0x3e4] ss:$16 sps:$4 sm:$0xff]  }
 0x2c8   : > { %3650 = vmatprep.mubr.bf16.mxu1 %v7933_v38  ;;  %4642 = vmatpush2.bf16.msra.mxu0 %v6959_v60  ;;  %v6973_v38 = vld [vmem:[#allocation8 + $0x124] ss:$16 sps:$4 sm:$0xff]  }
 0x2c9   : > { %4643 = vmatprep.subr.bf16.mxu0 %v6964_v2  ;;  %4749 = vmatpush1.bf16.msra.mxu1 %v7019_v6 }
 0x2ca   : > { %4750 = vmatprep.subr.bf16.mxu1 %v7027_v37 }
 0x2cc   : > { %4644 = vmatpush2.bf16.msra.mxu0 %v6962_v14 }
 0x2cd   : > { %4645 = vmatprep.subr.bf16.mxu0 %v6967_v49  ;;  %4751 = vmatpush2.bf16.msra.mxu1 %v7025_v33 }
 0x2ce   : > { %3538 = vmatmul.mubr.bf16.gmra.mxu0 %v7937_v56  ;;  %v7031_v56 = vld [vmem:[#allocation8 + $0x3c0] ss:$16 sps:$4 sm:$0xff]   ;;  %4752 = vmatprep.subr.bf16.mxu1 %v7033_v40  ;;  %v6980_v40 = vld [vmem:[#allocation8 + $0xe8] ss:$16 sps:$4 sm:$0xff]  }
 0x2cf   : > { %3651 = vmatmul.mubr.bf16.gmra.mxu1 %v7939_v57  ;;  %3547 = vmatprep.mubr.bf16.mxu0 %v7943_v31  ;;  %v6974_v57 = vld [vmem:[#allocation8 + $0x100] ss:$16 sps:$4 sm:$0xff]   ;;  %v7039_v31 = vld [vmem:[#allocation8 + $0x3a4] ss:$16 sps:$4 sm:$0xff]  }
 0x2d0   : > { %3660 = vmatprep.mubr.bf16.mxu1 %v7945_v32  ;;  %4646 = vmatpush2.bf16.msra.mxu0 %v6965_v20  ;;  %v6982_v32 = vld [vmem:[#allocation8 + $0xec] ss:$16 sps:$4 sm:$0xff]  }
 0x2d1   : > { %4647 = vmatprep.subr.bf16.mxu0 %v6970_v26  ;;  %4753 = vmatpush2.bf16.msra.mxu1 %v7031_v56 }
 0x2d2   : > { %4754 = vmatprep.subr.bf16.mxu1 %v7039_v31 }
 0x2d4   : > { %4648 = vmatpush2.bf16.msra.mxu0 %v6968_v11 }
 0x2d5   : > { %4649 = vmatprep.subr.bf16.mxu0 %v6973_v38  ;;  %4755 = vmatpush2.bf16.msra.mxu1 %v7037_v44 }
 0x2d6   : > { %3548 = vmatmul.mubr.bf16.gmra.mxu0 %v7949_v52  ;;  %4756 = vmatprep.subr.bf16.mxu1 %v7045_v45  ;;  %v7057_v52 = vld [vmem:[#allocation8 + $0x344] ss:$16 sps:$4 sm:$0xff]  }
 0x2d7   : > { %3661 = vmatmul.mubr.bf16.gmra.mxu1 %v7951_v58  ;;  %v7055_v58 = vld [vmem:[#allocation8 + $0x340] ss:$16 sps:$4 sm:$0xff]  }
 0x2d8   : > { %4650 = vmatpush2.bf16.msra.mxu0 %v6971_v34 }
 0x2d9   : > { %4651 = vmatprep.subr.bf16.mxu0 %v6976_v41  ;;  %4757 = vmatpush2.bf16.msra.mxu1 %v7043_v50 }
 0x2da   : > { %4758 = vmatprep.subr.bf16.mxu1 %v7051_v51 }
 0x2dc   : > { %4652 = vmatpush2.bf16.msra.mxu0 %v6974_v57 }
 0x2dd   : > { %4847 = vmatprep.subr.bf16.mxu0 %v6982_v32  ;;  %4759 = vmatpush2.bf16.msra.mxu1 %v7049_v61  ;;  %v6988_v32 = vld [vmem:[#allocation8 + $0xcc] ss:$16 sps:$4 sm:$0xff]  }
 0x2de   : > { %4760 = vmatprep.subr.bf16.mxu1 %v7057_v52 }
 0x2e1   : > { %4761 = vmatpush2.bf16.msra.mxu1 %v7055_v58 }
 0x2e2   : > { %4762 = vmatprep.subr.bf16.mxu1 %v7063_v62 }
 0x2e5   : > { %4763 = vmatpush2.bf16.msra.mxu1 %v7061_v63 }
 0x2e6   : > { %4764 = vmatprep.subr.bf16.mxu1 %v7069_v0  ;;  %v6986_v0 = vld [vmem:[#allocation8 + $0xc8] ss:$16 sps:$4 sm:$0xff]  }
 0x2e9   : > { %4765 = vmatpush2.bf16.msra.mxu1 %v7067_v3 }
 0x2ea   : > { %4960 = vmatprep.subr.bf16.mxu1 %v7075_v12 }
 0x31e   : > { %v3253_v29 = vpop.f32.mrf.mxu0 }
 0x31f   : > { %v3366_v47 = vpop.f32.mrf.mxu1  ;;  %v3254_v35 = vadd.f32 %v3253_v29, %v7999_v9 }
 0x320   : > { %v3255_v36 = vpop.f32.mrf.mxu0 }
 0x321   : > { %v3368_v42 = vpop.f32.mrf.mxu1  ;;  %v3256_v43 = vadd.f32 %v3255_v36, %v8004_v10  ;;  %v3367_v23 = vadd.f32 %v3366_v47, %v3254_v35 }
 0x322   : > { %v3257_v18 = vpop.f32.mrf.mxu0 }
 0x323   : > { %v3370_v21 = vpop.f32.mrf.mxu1  ;;  %v3369_v22 = vadd.f32 %v3368_v42, %v3256_v43  ;;  %v3258_v27 = vadd.f32 %v3257_v18, %v7999_v9  ;;  %v3671_v5 = vmul.f32 0.2, %v3367_v23 }
 0x324   : > { %v3259_v24 = vpop.f32.mrf.mxu0 }
 0x325   : > { %v3372_v7 = vpop.f32.mrf.mxu1  ;;  %v3371_v8 = vadd.f32 %v3370_v21, %v3258_v27  ;;  %v3260_v48 = vadd.f32 %v3259_v24, %v8004_v10  ;;  %v3672_v39 = vmul.f32 0.2, %v3369_v22  ;;  %v3735_v25 = vmax.f32 %v3367_v23, %v3671_v5 }
 0x326   : > { %v3263_v53 = vpop.f32.mrf.mxu0 }
 0x327   : > { %v3376_v54 = vpop.f32.mrf.mxu1  ;;  %v3675_v55 = vmul.f32 0.2, %v3371_v8  ;;  %v3373_v4 = vadd.f32 %v3372_v7, %v3260_v48  ;;  %v3264_v2 = vadd.f32 %v3263_v53, %v7999_v9  ;;  %v3736_v19 = vmax.f32 %v3369_v22, %v3672_v39  ;;  %v6992_v48 = vld [vmem:[#allocation8 + $0xa8] ss:$16 sps:$4 sm:$0xff]  }
 0x328   : > { %v3265_v59 = vpop.f32.mrf.mxu0 }
 0x329   : > { %v3378_v60 = vpop.f32.mrf.mxu1  ;;  %v3676_v1 = vmul.f32 0.2, %v3373_v4  ;;  %v3266_v13 = vadd.f32 %v3265_v59, %v8004_v10  ;;  %v3739_v14 = vmax.f32 %v3371_v8, %v3675_v55  ;;  %v3377_v38 = vadd.f32 %v3376_v54, %v3264_v2  ;;  %v7000_v55 = vld [vmem:[#allocation8 + $0x8c] ss:$16 sps:$4 sm:$0xff]  }
 0x32a   : > { %v3267_v46 = vpop.f32.mrf.mxu0 }
 0x32b   : > { %v3380_v49 = vpop.f32.mrf.mxu1  ;;  %v3740_v20 = vmax.f32 %v3373_v4, %v3676_v1  ;;  %v3379_v26 = vadd.f32 %v3378_v60, %v3266_v13  ;;  %v3268_v6 = vadd.f32 %v3267_v46, %v7999_v9  ;;  %v8016_v41 = vpack.c.bf16 %v3739_v14, %v3735_v25 }
 0x32c   : > { %v3269_v11 = vpop.f32.mrf.mxu0  ;;  %v3679_v52 = vmul.f32 0.2, %v3377_v38 }
 0x32d   : > { %v3382_v37 = vpop.f32.mrf.mxu1  ;;  %v3270_v33 = vadd.f32 %v3269_v11, %v8004_v10  ;;  %v8014_v34 = vpack.c.bf16 %v3740_v20, %v3736_v19  ;;  %v3381_v56 = vadd.f32 %v3380_v49, %v3268_v6  ;;  %v3680_v45 = vmul.f32 0.2, %v3379_v26  ;;  %v6998_v49 = vld [vmem:[#allocation8 + $0x88] ss:$16 sps:$4 sm:$0xff]  }
 0x32e   : > { %v3273_v57 = vpop.f32.mrf.mxu0  ;;  %v3743_v21 = vmax.f32 %v3377_v38, %v3679_v52  ;;  %v7012_v52 = vld [vmem:[#allocation8 + $0x4c] ss:$16 sps:$4 sm:$0xff]  }
 0x32f   : > { %v3386_v31 = vpop.f32.mrf.mxu1  ;;  %v3383_v44 = vadd.f32 %v3382_v37, %v3270_v33  ;;  %4653 = vmatprep.mubr.bf16.mxu0 %v8014_v34  ;;  %v3683_v50 = vmul.f32 0.2, %v3381_v56  ;;  %v3274_v62 = vadd.f32 %v3273_v57, %v7999_v9  ;;  %v3744_v36 = vmax.f32 %v3379_v26, %v3680_v45  ;;  %v7006_v26 = vld [vmem:[#allocation8 + $0x6c] ss:$16 sps:$4 sm:$0xff]   ;;  %v7004_v45 = vld [vmem:[#allocation8 + $0x68] ss:$16 sps:$4 sm:$0xff]  }
 0x330   : > { %v3275_v51 = vpop.f32.mrf.mxu0  ;;  %4654 = vmatmul.mubr.bf16.vlgmr.msra.gmra.mxu0 %v8016_v41 }
 0x331   : > { %v3388_v61 = vpop.f32.mrf.mxu1  ;;  %v3684_v58 = vmul.f32 0.2, %v3383_v44  ;;  %v3276_v63 = vadd.f32 %v3275_v51, %v8004_v10  ;;  %4848 = vmatpush1.bf16.msra.mxu0 %v6980_v40  ;;  %v3747_v29 = vmax.f32 %v3381_v56, %v3683_v50  ;;  %v3387_v22 = vadd.f32 %v3386_v31, %v3274_v62 }
 0x332   : > { %v3277_v3 = vpop.f32.mrf.mxu0  ;;  %4849 = vmatprep.subr.bf16.mxu0 %v6988_v32 }
 0x333   : > { %v3390_v12 = vpop.f32.mrf.mxu1  ;;  %v3748_v47 = vmax.f32 %v3383_v44, %v3684_v58  ;;  %v3278_v35 = vadd.f32 %v3277_v3, %v7999_v9  ;;  %v3389_v42 = vadd.f32 %v3388_v61, %v3276_v63  ;;  %v8026_v39 = vpack.c.bf16 %v3747_v29, %v3743_v21 }
 0x334   : > { %v3279_v43 = vpop.f32.mrf.mxu0  ;;  %v3687_v60 = vmul.f32 0.2, %v3387_v22 }
 0x335   : > { %v3392_v18 = vpop.f32.mrf.mxu1  ;;  %v3391_v27 = vadd.f32 %v3390_v12, %v3278_v35  ;;  %v3280_v23 = vadd.f32 %v3279_v43, %v8004_v10  ;;  %4850 = vmatpush1.bf16.msra.mxu0 %v6986_v0  ;;  %v8024_v8 = vpack.c.bf16 %v3748_v47, %v3744_v36  ;;  %v3688_v4 = vmul.f32 0.2, %v3389_v42  ;;  %v7010_v35 = vld [vmem:[#allocation8 + $0x48] ss:$16 sps:$4 sm:$0xff]  }
 0x336   : > { %v3283_v24 = vpop.f32.mrf.mxu0  ;;  %4851 = vmatprep.subr.bf16.mxu0 %v6994_v15  ;;  %v3751_v33 = vmax.f32 %v3387_v22, %v3687_v60 }
 0x337   : > { %v3396_v7 = vpop.f32.mrf.mxu1  ;;  %v3691_v53 = vmul.f32 0.2, %v3391_v27  ;;  %v3393_v54 = vadd.f32 %v3392_v18, %v3280_v23  ;;  %4663 = vmatprep.mubr.bf16.mxu0 %v8024_v8  ;;  %v3284_v2 = vadd.f32 %v3283_v24, %v7999_v9  ;;  %v3752_v6 = vmax.f32 %v3389_v42, %v3688_v4  ;;  %v7018_v18 = vld [vmem:[#allocation8 + $0x2c] ss:$16 sps:$4 sm:$0xff]  }
 0x338   : > { %v3285_v5 = vpop.f32.mrf.mxu0  ;;  %4664 = vmatmul.mubr.bf16.gmra.mxu0 %v8026_v39 }
 0x339   : > { %v3398_v59 = vpop.f32.mrf.mxu1  ;;  %v3692_v1 = vmul.f32 0.2, %v3393_v54  ;;  %v3286_v13 = vadd.f32 %v3285_v5, %v8004_v10  ;;  %4852 = vmatpush1.bf16.msra.mxu0 %v6992_v48  ;;  %v3755_v19 = vmax.f32 %v3391_v27, %v3691_v53  ;;  %v3397_v40 = vadd.f32 %v3396_v7, %v3284_v2  ;;  %v7016_v5 = vld [vmem:[#allocation8 + $0x28] ss:$16 sps:$4 sm:$0xff]   ;;  %v7024_v2 = vld [vmem:[#allocation8 + $0xc] ss:$16 sps:$4 sm:$0xff]  }
 0x33a   : > { %v3287_v14 = vpop.f32.mrf.mxu0  ;;  %4853 = vmatprep.subr.bf16.mxu0 %v7000_v55 }
 0x33b   : > { %v3400_v46 = vpop.f32.mrf.mxu1  ;;  %v3756_v20 = vmax.f32 %v3393_v54, %v3692_v1  ;;  %v3288_v25 = vadd.f32 %v3287_v14, %v7999_v9  ;;  %v3399_v11 = vadd.f32 %v3398_v59, %v3286_v13  ;;  %v8036_v61 = vpack.c.bf16 %v3755_v19, %v3751_v33 }
 0x33c   : > { %v3289_v37 = vpop.f32.mrf.mxu0  ;;  %v3695_v0 = vmul.f32 0.2, %v3397_v40 }
 0x33d   : > { %v3402_v38 = vpop.f32.mrf.mxu1  ;;  %v3401_v56 = vadd.f32 %v3400_v46, %v3288_v25  ;;  %v3290_v57 = vadd.f32 %v3289_v37, %v8004_v10  ;;  %4854 = vmatpush1.bf16.msra.mxu0 %v6998_v49  ;;  %v8034_v44 = vpack.c.bf16 %v3756_v20, %v3752_v6  ;;  %v3696_v58 = vmul.f32 0.2, %v3399_v11 }
 0x33e   : > { %v3293_v31 = vpop.f32.mrf.mxu0  ;;  %4855 = vmatprep.subr.bf16.mxu0 %v7006_v26  ;;  %v3759_v24 = vmax.f32 %v3397_v40, %v3695_v0  ;;  %v7030_v40 = vld [vmem:[#allocation8 + $0x1ec] ss:$16 sps:$4 sm:$0xff]   ;;  %v7028_v0 = vld [vmem:[#allocation8 + $0x1e8] ss:$16 sps:$4 sm:$0xff]  }
 0x33f   : > { %v3406_v32 = vpop.f32.mrf.mxu1  ;;  %v3699_v50 = vmul.f32 0.2, %v3401_v56  ;;  %v3403_v51 = vadd.f32 %v3402_v38, %v3290_v57  ;;  %4673 = vmatprep.mubr.bf16.mxu0 %v8034_v44  ;;  %v3294_v12 = vadd.f32 %v3293_v31, %v7999_v9  ;;  %v3760_v21 = vmax.f32 %v3399_v11, %v3696_v58  ;;  %v7022_v11 = vld [vmem:[#allocation8 + $0x8] ss:$16 sps:$4 sm:$0xff]  }
 0x340   : > { %v3295_v62 = vpop.f32.mrf.mxu0  ;;  %4674 = vmatmul.mubr.bf16.gmra.mxu0 %v8036_v61 }
 0x341   : > { %v3408_v63 = vpop.f32.mrf.mxu1  ;;  %v3700_v3 = vmul.f32 0.2, %v3403_v51  ;;  %v3296_v15 = vadd.f32 %v3295_v62, %v8004_v10  ;;  %4856 = vmatpush1.bf16.msra.mxu0 %v7004_v45  ;;  %v3763_v36 = vmax.f32 %v3401_v56, %v3699_v50  ;;  %v3407_v7 = vadd.f32 %v3406_v32, %v3294_v12 }
 0x342   : > { %v3297_v29 = vpop.f32.mrf.mxu0  ;;  %4857 = vmatprep.subr.bf16.mxu0 %v7012_v52 }
 0x343   : > { %v3410_v47 = vpop.f32.mrf.mxu1  ;;  %v3764_v42 = vmax.f32 %v3403_v51, %v3700_v3  ;;  %v3298_v43 = vadd.f32 %v3297_v29, %v7999_v9  ;;  %v3409_v22 = vadd.f32 %v3408_v63, %v3296_v15  ;;  %v8046_v1 = vpack.c.bf16 %v3763_v36, %v3759_v24  ;;  %v7036_v29 = vld [vmem:[#allocation8 + $0x1cc] ss:$16 sps:$4 sm:$0xff]  }
 0x344   : > { %v3299_v27 = vpop.f32.mrf.mxu0  ;;  %v3703_v49 = vmul.f32 0.2, %v3407_v7 }
 0x345   : > { %v3412_v23 = vpop.f32.mrf.mxu1  ;;  %v3411_v48 = vadd.f32 %v3410_v47, %v3298_v43  ;;  %v3300_v53 = vadd.f32 %v3299_v27, %v8004_v10  ;;  %4858 = vmatpush1.bf16.msra.mxu0 %v7010_v35  ;;  %v8044_v4 = vpack.c.bf16 %v3764_v42, %v3760_v21  ;;  %v3704_v13 = vmul.f32 0.2, %v3409_v22 }
 0x346   : > { %v3303_v54 = vpop.f32.mrf.mxu0  ;;  %4859 = vmatprep.subr.bf16.mxu0 %v7018_v18  ;;  %v3767_v45 = vmax.f32 %v3407_v7, %v3703_v49 }
 0x347   : > { %v3416_v55 = vpop.f32.mrf.mxu1  ;;  %v3707_v59 = vmul.f32 0.2, %v3411_v48  ;;  %v3413_v60 = vadd.f32 %v3412_v23, %v3300_v53  ;;  %4683 = vmatprep.mubr.bf16.mxu0 %v8044_v4  ;;  %v3304_v20 = vadd.f32 %v3303_v54, %v7999_v9  ;;  %v3768_v56 = vmax.f32 %v3409_v22, %v3704_v13  ;;  %v7034_v23 = vld [vmem:[#allocation8 + $0x1c8] ss:$16 sps:$4 sm:$0xff]   ;;  %v7042_v53 = vld [vmem:[#allocation8 + $0x1ac] ss:$16 sps:$4 sm:$0xff]  }
 0x348   : > { %v3305_v14 = vpop.f32.mrf.mxu0  ;;  %4684 = vmatmul.mubr.bf16.gmra.mxu0 %v8046_v1 }
 0x349   : > { %v3418_v46 = vpop.f32.mrf.mxu1  ;;  %v3708_v19 = vmul.f32 0.2, %v3413_v60  ;;  %v3306_v25 = vadd.f32 %v3305_v14, %v8004_v10  ;;  %4860 = vmatpush1.bf16.msra.mxu0 %v7016_v5  ;;  %v3771_v37 = vmax.f32 %v3411_v48, %v3707_v59  ;;  %v3417_v50 = vadd.f32 %v3416_v55, %v3304_v20  ;;  %v7040_v20 = vld [vmem:[#allocation8 + $0x1a8] ss:$16 sps:$4 sm:$0xff]  }
 0x34a   : > { %v3307_v26 = vpop.f32.mrf.mxu0  ;;  %4861 = vmatprep.subr.bf16.mxu0 %v7024_v2 }
 0x34b   : > { %v3420_v6 = vpop.f32.mrf.mxu1  ;;  %v3772_v38 = vmax.f32 %v3413_v60, %v3708_v19  ;;  %v3308_v33 = vadd.f32 %v3307_v26, %v7999_v9  ;;  %v3419_v57 = vadd.f32 %v3418_v46, %v3306_v25  ;;  %v8056_v15 = vpack.c.bf16 %v3771_v37, %v3767_v45 }
 0x34c   : > { %v3309_v31 = vpop.f32.mrf.mxu0  ;;  %v3711_v42 = vmul.f32 0.2, %v3417_v50 }
 0x34d   : > { %v3422_v32 = vpop.f32.mrf.mxu1  ;;  %v3421_v51 = vadd.f32 %v3420_v6, %v3308_v33  ;;  %v3310_v52 = vadd.f32 %v3309_v31, %v8004_v10  ;;  %4862 = vmatpush1.bf16.msra.mxu0 %v7022_v11  ;;  %v8054_v63 = vpack.c.bf16 %v3772_v38, %v3768_v56  ;;  %v3712_v47 = vmul.f32 0.2, %v3419_v57  ;;  %v7048_v11 = vld [vmem:[#allocation8 + $0x18c] ss:$16 sps:$4 sm:$0xff]  }
 0x34e   : > { %v3313_v58 = vpop.f32.mrf.mxu0  ;;  %4863 = vmatprep.subr.bf16.mxu0 %v7030_v40  ;;  %v3775_v60 = vmax.f32 %v3417_v50, %v3711_v42  ;;  %v2569_v40 = vsub.s32 2, %v7987_v16  ;;  %v2573_v56 = vsub.s32 3, %v7987_v16 }
 0x34f   : > { %v3426_v62 = vpop.f32.mrf.mxu1  ;;  %v3715_v3 = vmul.f32 0.2, %v3421_v51  ;;  %v3423_v12 = vadd.f32 %v3422_v32, %v3310_v52  ;;  %4693 = vmatprep.mubr.bf16.mxu0 %v8054_v63  ;;  %v3314_v18 = vadd.f32 %v3313_v58, %v7999_v9  ;;  %v3776_v54 = vmax.f32 %v3419_v57, %v3712_v47  ;;  %v7046_v52 = vld [vmem:[#allocation8 + $0x188] ss:$16 sps:$4 sm:$0xff]  }
 0x350   : > { %v3315_v35 = vpop.f32.mrf.mxu0  ;;  %4694 = vmatmul.mubr.bf16.gmra.mxu0 %v8056_v15  ;;  %v8083_v42 = vrot.slane %v7993_v28, %v2573_v56 }
 0x351   : > { %v3428_v36 = vpop.f32.mrf.mxu1  ;;  %v3716_v43 = vmul.f32 0.2, %v3423_v12  ;;  %v3316_v21 = vadd.f32 %v3315_v35, %v8004_v10  ;;  %4864 = vmatpush2.bf16.msra.mxu0 %v7028_v0  ;;  %v3779_v24 = vmax.f32 %v3421_v51, %v3715_v3  ;;  %v3427_v2 = vadd.f32 %v3426_v62, %v3314_v18  ;;  %v7054_v3 = vld [vmem:[#allocation8 + $0x16c] ss:$16 sps:$4 sm:$0xff]  }
 0x352   : > { %v3317_v22 = vpop.f32.mrf.mxu0  ;;  %4865 = vmatprep.subr.bf16.mxu0 %v7036_v29 }
 0x353   : > { %v3430_v27 = vpop.f32.mrf.mxu1  ;;  %v3780_v7 = vmax.f32 %v3423_v12, %v3716_v43  ;;  %v3318_v48 = vadd.f32 %v3317_v22, %v7999_v9  ;;  %v3429_v55 = vadd.f32 %v3428_v36, %v3316_v21  ;;  %v8066_v6 = vpack.c.bf16 %v3779_v24, %v3775_v60  ;;  %v7052_v24 = vld [vmem:[#allocation8 + $0x168] ss:$16 sps:$4 sm:$0xff]  }
 0x354   : > { %v3319_v5 = vpop.f32.mrf.mxu0  ;;  %v3719_v57 = vmul.f32 0.2, %v3427_v2  ;;  %v8078_v36 = vrot.slane %v7993_v28, %v2569_v40 }
 0x355   : > { %v3432_v59 = vpop.f32.mrf.mxu1  ;;  %v3431_v13 = vadd.f32 %v3430_v27, %v3318_v48  ;;  %v3320_v14 = vadd.f32 %v3319_v5, %v8004_v10  ;;  %4866 = vmatpush2.bf16.msra.mxu0 %v7034_v23  ;;  %v8064_v19 = vpack.c.bf16 %v3780_v7, %v3776_v54  ;;  %v3720_v37 = vmul.f32 0.2, %v3429_v55  ;;  %v7060_v54 = vld [vmem:[#allocation8 + $0x14c] ss:$16 sps:$4 sm:$0xff]  }
 0x356   : > { %v3323_v46 = vpop.f32.mrf.mxu0  ;;  %4867 = vmatprep.subr.bf16.mxu0 %v7042_v53  ;;  %v3783_v43 = vmax.f32 %v3427_v2, %v3719_v57 }
 0x357   : > { %v3436_v49 = vpop.f32.mrf.mxu1  ;;  %v3723_v25 = vmul.f32 0.2, %v3431_v13  ;;  %v3433_v26 = vadd.f32 %v3432_v59, %v3320_v14  ;;  %4703 = vmatprep.mubr.bf16.mxu0 %v8064_v19  ;;  %v3324_v32 = vadd.f32 %v3323_v46, %v7999_v9  ;;  %v3784_v12 = vmax.f32 %v3429_v55, %v3720_v37  ;;  %v7058_v46 = vld [vmem:[#allocation8 + $0x148] ss:$16 sps:$4 sm:$0xff]  }
 0x358   : > { %v3325_v38 = vpop.f32.mrf.mxu0  ;;  %4704 = vmatmul.mubr.bf16.gmra.mxu0 %v8066_v6 }
 0x359   : > { %v3438_v33 = vpop.f32.mrf.mxu1  ;;  %v3724_v31 = vmul.f32 0.2, %v3433_v26  ;;  %v3326_v45 = vadd.f32 %v3325_v38, %v8004_v10  ;;  %4868 = vmatpush2.bf16.msra.mxu0 %v7040_v20  ;;  %v3787_v58 = vmax.f32 %v3431_v13, %v3723_v25  ;;  %v3437_v18 = vadd.f32 %v3436_v49, %v3324_v32 }
 0x35a   : > { %v3327_v50 = vpop.f32.mrf.mxu0  ;;  %4869 = vmatprep.subr.bf16.mxu0 %v7048_v11  ;;  %v7066_v11 = vld [vmem:[#allocation8 + $0x12c] ss:$16 sps:$4 sm:$0xff]  }
 0x35b   : > { %v3440_v51 = vpop.f32.mrf.mxu1  ;;  %v3788_v62 = vmax.f32 %v3433_v26, %v3724_v31  ;;  %v3328_v0 = vadd.f32 %v3327_v50, %v7999_v9  ;;  %v3439_v29 = vadd.f32 %v3438_v33, %v3326_v45  ;;  %v8088_v53 = vpack.c.bf16 %v3787_v58, %v3783_v43  ;;  %v7064_v58 = vld [vmem:[#allocation8 + $0x128] ss:$16 sps:$4 sm:$0xff]  }
 0x35c   : > { %v3329_v47 = vpop.f32.mrf.mxu0 }
 0x35d   : > { %v3442_v35 = vpop.f32.mrf.mxu1  ;;  %v3441_v21 = vadd.f32 %v3440_v51, %v3328_v0  ;;  %v3330_v9 = vadd.f32 %v3329_v47, %v8004_v10  ;;  %4870 = vmatpush2.bf16.msra.mxu0 %v7046_v52  ;;  %v8086_v23 = vpack.c.bf16 %v3788_v62, %v3784_v12  ;;  %v3728_v55 = vmul.f32 0.2, %v3439_v29 }
 0x35e   : > { %v3479_v22 = vpop.f32.mrf.mxu0  ;;  %4871 = vmatprep.subr.bf16.mxu0 %v7054_v3  ;;  %v3727_v10 = vmul.f32 0.2, %v3437_v18 }
 0x35f   : > { %v3592_v27 = vpop.f32.mrf.mxu1  ;;  %v3731_v7 = vmul.f32 0.2, %v3441_v21  ;;  %v3443_v48 = vadd.f32 %v3442_v35, %v3330_v9  ;;  %v3480_v28 = vadd.f32 %v3479_v22, %v8078_v36  ;;  %4713 = vmatprep.mubr.bf16.mxu0 %v8086_v23  ;;  %v3792_v37 = vmax.f32 %v3439_v29, %v3728_v55  ;;  %v7072_v29 = vld [vmem:[#allocation8 + $0x10c] ss:$16 sps:$4 sm:$0xff]  }
 0x360   : > { %v3481_v5 = vpop.f32.mrf.mxu0  ;;  %4714 = vmatmul.mubr.bf16.gmra.mxu0 %v8088_v53  ;;  %v3791_v31 = vmax.f32 %v3437_v18, %v3727_v10 }
 0x361   : > { %v3594_v59 = vpop.f32.mrf.mxu1  ;;  %v3732_v60 = vmul.f32 0.2, %v3443_v48  ;;  %v3482_v2 = vadd.f32 %v3481_v5, %v8083_v42  ;;  %4872 = vmatpush2.bf16.msra.mxu0 %v7052_v24  ;;  %v3795_v49 = vmax.f32 %v3441_v21, %v3731_v7  ;;  %v3593_v38 = vadd.f32 %v3592_v27, %v3480_v28  ;;  %v7070_v7 = vld [vmem:[#allocation8 + $0x108] ss:$16 sps:$4 sm:$0xff]  }
 0x362   : > { %v3483_v13 = vpop.f32.mrf.mxu0  ;;  %4873 = vmatprep.subr.bf16.mxu0 %v7060_v54 }
 0x363   : > { %v3596_v14 = vpop.f32.mrf.mxu1  ;;  %v3796_v20 = vmax.f32 %v3443_v48, %v3732_v60  ;;  %v3595_v25 = vadd.f32 %v3594_v59, %v3482_v2  ;;  %v3484_v26 = vadd.f32 %v3483_v13, %v8078_v36  ;;  %v8098_v12 = vpack.c.bf16 %v3795_v49, %v3791_v31 }
 0x364   : > { %v3485_v33 = vpop.f32.mrf.mxu0  ;;  %v3673_v47 = vmul.f32 0.2, %v3593_v38 }
 0x365   : > { %v3598_v57 = vpop.f32.mrf.mxu1  ;;  %v3597_v32 = vadd.f32 %v3596_v14, %v3484_v26  ;;  %v3486_v45 = vadd.f32 %v3485_v33, %v8083_v42  ;;  %4874 = vmatpush2.bf16.msra.mxu0 %v7058_v46  ;;  %v8096_v52 = vpack.c.bf16 %v3796_v20, %v3792_v37  ;;  %v3674_v62 = vmul.f32 0.2, %v3595_v25  ;;  %v7073_v14 = vld [vmem:[#allocation8 + $0x2e8] ss:$16 sps:$4 sm:$0xff]  }
 0x366   : > { %v3489_v50 = vpop.f32.mrf.mxu0  ;;  %4875 = vmatprep.subr.bf16.mxu0 %v7066_v11  ;;  %v3737_v55 = vmax.f32 %v3593_v38, %v3673_v47 }
 0x367   : > { %v3602_v51 = vpop.f32.mrf.mxu1  ;;  %v3677_v0 = vmul.f32 0.2, %v3597_v32  ;;  %v3599_v3 = vadd.f32 %v3598_v57, %v3486_v45  ;;  %4723 = vmatprep.mubr.bf16.mxu0 %v8096_v52  ;;  %v3490_v21 = vadd.f32 %v3489_v50, %v8078_v36  ;;  %v3738_v48 = vmax.f32 %v3595_v25, %v3674_v62  ;;  %v7078_v25 = vld [vmem:[#allocation8 + $0x2cc] ss:$16 sps:$4 sm:$0xff]   ;;  %v7076_v50 = vld [vmem:[#allocation8 + $0x2c8] ss:$16 sps:$4 sm:$0xff]  }
 0x368   : > { %v3491_v35 = vpop.f32.mrf.mxu0  ;;  %4724 = vmatmul.mubr.bf16.gmra.mxu0 %v8098_v12  ;;  %v7081_v62 = vld [vmem:[#allocation8 + $0x2ac] ss:$16 sps:$4 sm:$0xff]  }
 0x369   : > { %v3604_v43 = vpop.f32.mrf.mxu1  ;;  %v3678_v18 = vmul.f32 0.2, %v3599_v3  ;;  %v3492_v9 = vadd.f32 %v3491_v35, %v8083_v42  ;;  %v3741_v22 = vmax.f32 %v3597_v32, %v3677_v0  ;;  %4876 = vmatpush2.bf16.msra.mxu0 %v7064_v58  ;;  %4879 = vmatprep.mubr.bf16.mxu0 %v8014_v34  ;;  %v3603_v60 = vadd.f32 %v3602_v51, %v3490_v21 }
 0x36a   : > { %v3493_v27 = vpop.f32.mrf.mxu0  ;;  %4877 = vmatprep.subr.bf16.mxu0 %v7072_v29 }
 0x36b   : > { %v3606_v24 = vpop.f32.mrf.mxu1  ;;  %v3742_v54 = vmax.f32 %v3599_v3, %v3678_v18  ;;  %v3605_v28 = vadd.f32 %v3604_v43, %v3492_v9  ;;  %v3494_v5 = vadd.f32 %v3493_v27, %v8078_v36  ;;  %v8109_v46 = vpack.c.bf16 %v3741_v22, %v3737_v55 }
 0x36c   : > { %v3495_v59 = vpop.f32.mrf.mxu0  ;;  %v3681_v57 = vmul.f32 0.2, %v3603_v60 }
 0x36d   : > { %v3608_v10 = vpop.f32.mrf.mxu1  ;;  %v3496_v2 = vadd.f32 %v3495_v59, %v8083_v42  ;;  %v8107_v13 = vpack.c.bf16 %v3742_v54, %v3738_v48  ;;  %v3607_v34 = vadd.f32 %v3606_v24, %v3494_v5  ;;  %4878 = vmatpush2.bf16.msra.mxu0 %v7070_v7  ;;  %v3682_v11 = vmul.f32 0.2, %v3605_v28  ;;  %v7079_v7 = vld [vmem:[#allocation8 + $0x2a8] ss:$16 sps:$4 sm:$0xff]  }
 0x36e   : > { %v3499_v49 = vpop.f32.mrf.mxu0  ;;  %v3745_v21 = vmax.f32 %v3603_v60, %v3681_v57 }
 0x36f   : > { %v3612_v20 = vpop.f32.mrf.mxu1  ;;  %v3609_v26 = vadd.f32 %v3608_v10, %v3496_v2  ;;  %4766 = vmatprep.mubr.bf16.mxu1 %v8107_v13  ;;  %v3685_v37 = vmul.f32 0.2, %v3607_v34  ;;  %v3500_v32 = vadd.f32 %v3499_v49, %v8078_v36  ;;  %v3746_v47 = vmax.f32 %v3605_v28, %v3682_v11  ;;  %v7084_v28 = vld [vmem:[#allocation8 + $0x28c] ss:$16 sps:$4 sm:$0xff]  }
 0x370   : > { %v3501_v38 = vpop.f32.mrf.mxu0  ;;  %4767 = vmatmul.mubr.bf16.vlgmr.msra.gmra.mxu1 %v8109_v46  ;;  %4880 = vmatmul.mubr.bf16.vlgmr.msra.gmra.mxu0 %v8016_v41 }
 0x371   : > { %v3614_v33 = vpop.f32.mrf.mxu1  ;;  %v3686_v31 = vmul.f32 0.2, %v3609_v26  ;;  %v3502_v45 = vadd.f32 %v3501_v38, %v8083_v42  ;;  %4961 = vmatpush1.bf16.msra.mxu1 %v7073_v14  ;;  %4889 = vmatprep.mubr.bf16.mxu0 %v8024_v8  ;;  %v3749_v0 = vmax.f32 %v3607_v34, %v3685_v37  ;;  %v3613_v9 = vadd.f32 %v3612_v20, %v3500_v32  ;;  %v7087_v38 = vld [vmem:[#allocation8 + $0x26c] ss:$16 sps:$4 sm:$0xff]  }
 0x372   : > { %v3503_v51 = vpop.f32.mrf.mxu0  ;;  %4962 = vmatprep.subr.bf16.mxu1 %v7078_v25  ;;  %v7082_v25 = vld [vmem:[#allocation8 + $0x288] ss:$16 sps:$4 sm:$0xff]  }
 0x373   : > { %v3616_v58 = vpop.f32.mrf.mxu1  ;;  %v3750_v3 = vmax.f32 %v3609_v26, %v3686_v31  ;;  %v3504_v29 = vadd.f32 %v3503_v51, %v8078_v36  ;;  %v3615_v35 = vadd.f32 %v3614_v33, %v3502_v45  ;;  %v8121_v55 = vpack.c.bf16 %v3749_v0, %v3745_v21  ;;  %v7085_v0 = vld [vmem:[#allocation8 + $0x268] ss:$16 sps:$4 sm:$0xff]  }
 0x374   : > { %v3505_v43 = vpop.f32.mrf.mxu0  ;;  %v3689_v60 = vmul.f32 0.2, %v3613_v9 }
 0x375   : > { %v3618_v18 = vpop.f32.mrf.mxu1  ;;  %v3617_v22 = vadd.f32 %v3616_v58, %v3504_v29  ;;  %v3506_v41 = vadd.f32 %v3505_v43, %v8083_v42  ;;  %4963 = vmatpush1.bf16.msra.mxu1 %v7076_v50  ;;  %v8119_v24 = vpack.c.bf16 %v3750_v3, %v3746_v47  ;;  %v3690_v5 = vmul.f32 0.2, %v3615_v35 }
 0x376   : > { %v3509_v27 = vpop.f32.mrf.mxu0  ;;  %4964 = vmatprep.subr.bf16.mxu1 %v7081_v62  ;;  %v3753_v45 = vmax.f32 %v3613_v9, %v3689_v60 }
 0x377   : > { %v3622_v8 = vpop.f32.mrf.mxu1  ;;  %v3693_v48 = vmul.f32 0.2, %v3617_v22  ;;  %v3619_v54 = vadd.f32 %v3618_v18, %v3506_v41  ;;  %4776 = vmatprep.mubr.bf16.mxu1 %v8119_v24  ;;  %v3510_v14 = vadd.f32 %v3509_v27, %v8078_v36  ;;  %v3754_v33 = vmax.f32 %v3615_v35, %v3690_v5  ;;  %v7090_v35 = vld [vmem:[#allocation8 + $0x24c] ss:$16 sps:$4 sm:$0xff]  }
 0x378   : > { %v3511_v59 = vpop.f32.mrf.mxu0  ;;  %4777 = vmatmul.mubr.bf16.gmra.mxu1 %v8121_v55  ;;  %4890 = vmatmul.mubr.bf16.gmra.mxu0 %v8026_v39 }
 0x379   : > { %v3624_v10 = vpop.f32.mrf.mxu1  ;;  %v3694_v2 = vmul.f32 0.2, %v3619_v54  ;;  %v3512_v34 = vadd.f32 %v3511_v59, %v8083_v42  ;;  %4899 = vmatprep.mubr.bf16.mxu0 %v8034_v44  ;;  %4965 = vmatpush1.bf16.msra.mxu1 %v7079_v7  ;;  %v3757_v26 = vmax.f32 %v3617_v22, %v3693_v48  ;;  %v3623_v50 = vadd.f32 %v3622_v8, %v3510_v14  ;;  %v7088_v48 = vld [vmem:[#allocation8 + $0x248] ss:$16 sps:$4 sm:$0xff]   ;;  %v7093_v59 = vld [vmem:[#allocation8 + $0x22c] ss:$16 sps:$4 sm:$0xff]  }
 0x37a   : > { %v3513_v49 = vpop.f32.mrf.mxu0  ;;  %4966 = vmatprep.subr.bf16.mxu1 %v7084_v28 }
 0x37b   : > { %v3626_v20 = vpop.f32.mrf.mxu1  ;;  %v3758_v11 = vmax.f32 %v3619_v54, %v3694_v2  ;;  %v3514_v37 = vadd.f32 %v3513_v49, %v8078_v36  ;;  %v3625_v57 = vadd.f32 %v3624_v10, %v3512_v34  ;;  %v8133_v47 = vpack.c.bf16 %v3757_v26, %v3753_v45 }
 0x37c   : > { %v3515_v31 = vpop.f32.mrf.mxu0  ;;  %v3697_v9 = vmul.f32 0.2, %v3623_v50 }
 0x37d   : > { %v3628_v32 = vpop.f32.mrf.mxu1  ;;  %v3627_v51 = vadd.f32 %v3626_v20, %v3514_v37  ;;  %v3516_v39 = vadd.f32 %v3515_v31, %v8083_v42  ;;  %4967 = vmatpush1.bf16.msra.mxu1 %v7082_v25  ;;  %v8131_v62 = vpack.c.bf16 %v3758_v11, %v3754_v33  ;;  %v3698_v43 = vmul.f32 0.2, %v3625_v57  ;;  %v7091_v11 = vld [vmem:[#allocation8 + $0x228] ss:$16 sps:$4 sm:$0xff]  }
 0x37e   : > { %v3519_v44 = vpop.f32.mrf.mxu0  ;;  %4968 = vmatprep.subr.bf16.mxu1 %v7087_v38  ;;  %v3761_v34 = vmax.f32 %v3623_v50, %v3697_v9 }
 0x37f   : > { %v3632_v58 = vpop.f32.mrf.mxu1  ;;  %v3701_v3 = vmul.f32 0.2, %v3627_v51  ;;  %v3629_v29 = vadd.f32 %v3628_v32, %v3516_v39  ;;  %4786 = vmatprep.mubr.bf16.mxu1 %v8131_v62  ;;  %v3520_v41 = vadd.f32 %v3519_v44, %v8078_v36  ;;  %v3762_v10 = vmax.f32 %v3625_v57, %v3698_v43  ;;  %v7096_v57 = vld [vmem:[#allocation8 + $0x20c] ss:$16 sps:$4 sm:$0xff]  }
 0x380   : > { %v3521_v18 = vpop.f32.mrf.mxu0  ;;  %4787 = vmatmul.mubr.bf16.gmra.mxu1 %v8133_v47  ;;  %4900 = vmatmul.mubr.bf16.gmra.mxu0 %v8036_v61 }
 0x381   : > { %v3634_v21 = vpop.f32.mrf.mxu1  ;;  %v3702_v22 = vmul.f32 0.2, %v3629_v29  ;;  %v3522_v27 = vadd.f32 %v3521_v18, %v8083_v42  ;;  %4909 = vmatprep.mubr.bf16.mxu0 %v8044_v4  ;;  %4969 = vmatpush1.bf16.msra.mxu1 %v7085_v0  ;;  %v3765_v54 = vmax.f32 %v3627_v51, %v3701_v3  ;;  %v3633_v49 = vadd.f32 %v3632_v58, %v3520_v41  ;;  %v7094_v3 = vld [vmem:[#allocation8 + $0x208] ss:$16 sps:$4 sm:$0xff]   ;;  %v7099_v18 = vld [vmem:[#allocation8 + $0x3ec] ss:$16 sps:$4 sm:$0xff]  }
 0x382   : > { %v3523_v8 = vpop.f32.mrf.mxu0  ;;  %4970 = vmatprep.subr.bf16.mxu1 %v7090_v35 }
 0x383   : > { %v3636_v7 = vpop.f32.mrf.mxu1  ;;  %v3766_v28 = vmax.f32 %v3629_v29, %v3702_v22  ;;  %v3524_v5 = vadd.f32 %v3523_v8, %v8078_v36  ;;  %v3635_v60 = vadd.f32 %v3634_v21, %v3522_v27  ;;  %v8145_v33 = vpack.c.bf16 %v3765_v54, %v3761_v34 }
 0x384   : > { %v3525_v2 = vpop.f32.mrf.mxu0  ;;  %v3705_v50 = vmul.f32 0.2, %v3633_v49 }
 0x385   : > { %v3638_v14 = vpop.f32.mrf.mxu1  ;;  %v3637_v20 = vadd.f32 %v3636_v7, %v3524_v5  ;;  %v3526_v61 = vadd.f32 %v3525_v2, %v8083_v42  ;;  %4971 = vmatpush1.bf16.msra.mxu1 %v7088_v48  ;;  %v8143_v26 = vpack.c.bf16 %v3766_v28, %v3762_v10  ;;  %v3706_v31 = vmul.f32 0.2, %v3635_v60  ;;  %v7097_v28 = vld [vmem:[#allocation8 + $0x3e8] ss:$16 sps:$4 sm:$0xff]  }
 0x386   : > { %v3529_v4 = vpop.f32.mrf.mxu0  ;;  %4972 = vmatprep.subr.bf16.mxu1 %v7093_v59  ;;  %v3769_v27 = vmax.f32 %v3633_v49, %v3705_v50 }
 0x387   : > { %v3642_v25 = vpop.f32.mrf.mxu1  ;;  %v3709_v37 = vmul.f32 0.2, %v3637_v20  ;;  %v3639_v38 = vadd.f32 %v3638_v14, %v3526_v61  ;;  %4796 = vmatprep.mubr.bf16.mxu1 %v8143_v26  ;;  %v3530_v39 = vadd.f32 %v3529_v4, %v8078_v36  ;;  %v3770_v21 = vmax.f32 %v3635_v60, %v3706_v31  ;;  %v7102_v60 = vld [vmem:[#allocation8 + $0x3cc] ss:$16 sps:$4 sm:$0xff]  }
 0x388   : > { %v3531_v32 = vpop.f32.mrf.mxu0  ;;  %4797 = vmatmul.mubr.bf16.gmra.mxu1 %v8145_v33  ;;  %4910 = vmatmul.mubr.bf16.gmra.mxu0 %v8046_v1 }
 0x389   : > { %v3644_v45 = vpop.f32.mrf.mxu1  ;;  %v3710_v51 = vmul.f32 0.2, %v3639_v38  ;;  %v3532_v44 = vadd.f32 %v3531_v32, %v8083_v42  ;;  %4919 = vmatprep.mubr.bf16.mxu0 %v8054_v63  ;;  %4973 = vmatpush1.bf16.msra.mxu1 %v7091_v11  ;;  %v3773_v29 = vmax.f32 %v3637_v20, %v3709_v37  ;;  %v3643_v8 = vadd.f32 %v3642_v25, %v3530_v39  ;;  %v7100_v37 = vld [vmem:[#allocation8 + $0x3c8] ss:$16 sps:$4 sm:$0xff]   ;;  %v7105_v32 = vld [vmem:[#allocation8 + $0x3ac] ss:$16 sps:$4 sm:$0xff]  }
 0x38a   : > { %v3533_v58 = vpop.f32.mrf.mxu0  ;;  %4974 = vmatprep.subr.bf16.mxu1 %v7096_v57 }
 0x38b   : > { %v3646_v0 = vpop.f32.mrf.mxu1  ;;  %v3774_v35 = vmax.f32 %v3639_v38, %v3710_v51  ;;  %v3534_v43 = vadd.f32 %v3533_v58, %v8078_v36  ;;  %v3645_v9 = vadd.f32 %v3644_v45, %v3532_v44  ;;  %v8157_v10 = vpack.c.bf16 %v3773_v29, %v3769_v27 }
 0x38c   : > { %v3535_v22 = vpop.f32.mrf.mxu0  ;;  %v3713_v49 = vmul.f32 0.2, %v3643_v8 }
 0x38d   : > { %v3648_v41 = vpop.f32.mrf.mxu1  ;;  %v3647_v7 = vadd.f32 %v3646_v0, %v3534_v43  ;;  %v3536_v1 = vadd.f32 %v3535_v22, %v8083_v42  ;;  %4975 = vmatpush1.bf16.msra.mxu1 %v7094_v3  ;;  %v8155_v54 = vpack.c.bf16 %v3774_v35, %v3770_v21  ;;  %v3714_v2 = vmul.f32 0.2, %v3645_v9  ;;  %v7103_v35 = vld [vmem:[#allocation8 + $0x3a8] ss:$16 sps:$4 sm:$0xff]  }
 0x38e   : > { %v3539_v63 = vpop.f32.mrf.mxu0  ;;  %4976 = vmatprep.subr.bf16.mxu1 %v7099_v18  ;;  %v3777_v44 = vmax.f32 %v3643_v8, %v3713_v49 }
 0x38f   : > { %v3652_v48 = vpop.f32.mrf.mxu1  ;;  %v3717_v5 = vmul.f32 0.2, %v3647_v7  ;;  %v3649_v59 = vadd.f32 %v3648_v41, %v3536_v1  ;;  %4806 = vmatprep.mubr.bf16.mxu1 %v8155_v54  ;;  %v3540_v61 = vadd.f32 %v3539_v63, %v8078_v36  ;;  %v3778_v45 = vmax.f32 %v3645_v9, %v3714_v2  ;;  %v7108_v9 = vld [vmem:[#allocation8 + $0x38c] ss:$16 sps:$4 sm:$0xff]  }
 0x390   : > { %v3541_v14 = vpop.f32.mrf.mxu0  ;;  %4807 = vmatmul.mubr.bf16.gmra.mxu1 %v8157_v10  ;;  %4920 = vmatmul.mubr.bf16.gmra.mxu0 %v8056_v15 }
 0x391   : > { %v3654_v34 = vpop.f32.mrf.mxu1  ;;  %v3718_v20 = vmul.f32 0.2, %v3649_v59  ;;  %v3542_v4 = vadd.f32 %v3541_v14, %v8083_v42  ;;  %4929 = vmatprep.mubr.bf16.mxu0 %v8064_v19  ;;  %4977 = vmatpush2.bf16.msra.mxu1 %v7097_v28  ;;  %v3781_v38 = vmax.f32 %v3647_v7, %v3717_v5  ;;  %v3653_v58 = vadd.f32 %v3652_v48, %v3540_v61  ;;  %v7106_v5 = vld [vmem:[#allocation8 + $0x388] ss:$16 sps:$4 sm:$0xff]  }
 0x392   : > { %v3543_v25 = vpop.f32.mrf.mxu0  ;;  %4978 = vmatprep.subr.bf16.mxu1 %v7102_v60 }
 0x393   : > { %v3656_v11 = vpop.f32.mrf.mxu1  ;;  %v3782_v57 = vmax.f32 %v3649_v59, %v3718_v20  ;;  %v3544_v31 = vadd.f32 %v3543_v25, %v8078_v36  ;;  %v3655_v50 = vadd.f32 %v3654_v34, %v3542_v4  ;;  %v8169_v21 = vpack.c.bf16 %v3781_v38, %v3777_v44  ;;  %v7111_v34 = vld [vmem:[#allocation8 + $0x36c] ss:$16 sps:$4 sm:$0xff]  }
 0x394   : > { %v3545_v51 = vpop.f32.mrf.mxu0  ;;  %v3721_v8 = vmul.f32 0.2, %v3653_v58  ;;  %v7114_v38 = vld [vmem:[#allocation8 + $0x34c] ss:$16 sps:$4 sm:$0xff]  }
 0x395   : > { %v3658_v39 = vpop.f32.mrf.mxu1  ;;  %v3657_v0 = vadd.f32 %v3656_v11, %v3544_v31  ;;  %v3546_v15 = vadd.f32 %v3545_v51, %v8083_v42  ;;  %4979 = vmatpush2.bf16.msra.mxu1 %v7100_v37  ;;  %v8167_v29 = vpack.c.bf16 %v3782_v57, %v3778_v45  ;;  %v3722_v22 = vmul.f32 0.2, %v3655_v50  ;;  %v7109_v37 = vld [vmem:[#allocation8 + $0x368] ss:$16 sps:$4 sm:$0xff]  }
 0x396   : > { %v3549_v19 = vpop.f32.mrf.mxu0  ;;  %4980 = vmatprep.subr.bf16.mxu1 %v7105_v32  ;;  %v3785_v61 = vmax.f32 %v3653_v58, %v3721_v8  ;;  %v7128_v8 = vld [vmem:[%s8633_s7 + $0x20] sm:$0xff]  }
 0x397   : > { %v3662_v3 = vpop.f32.mrf.mxu1  ;;  %v3725_v43 = vmul.f32 0.2, %v3657_v0  ;;  %v3659_v18 = vadd.f32 %v3658_v39, %v3546_v15  ;;  %4816 = vmatprep.mubr.bf16.mxu1 %v8167_v29  ;;  %v3550_v1 = vadd.f32 %v3549_v19, %v8078_v36  ;;  %v3786_v49 = vmax.f32 %v3655_v50, %v3722_v22  ;;  %v7112_v39 = vld [vmem:[#allocation8 + $0x348] ss:$16 sps:$4 sm:$0xff]   ;;  %v7117_v15 = vld [vmem:[#allocation8 + $0x32c] ss:$16 sps:$4 sm:$0xff]  }
 0x398   : > { %v3551_v41 = vpop.f32.mrf.mxu0  ;;  %4817 = vmatmul.mubr.bf16.gmra.mxu1 %v8169_v21  ;;  %4930 = vmatmul.mubr.bf16.gmra.mxu0 %v8066_v6  ;;  %v7123_v19 = vld [vmem:[%s8633_s7 + $0x70] sm:$0xff]   ;;  %v7126_v22 = vld [vmem:[%s8633_s7 + $0x28] sm:$0xff]  }
 0x399   : > { %v3664_v27 = vpop.f32.mrf.mxu1  ;;  %v3726_v7 = vmul.f32 0.2, %v3659_v18  ;;  %v3552_v63 = vadd.f32 %v3551_v41, %v8083_v42  ;;  %4939 = vmatprep.mubr.bf16.mxu0 %v8086_v23  ;;  %4981 = vmatpush2.bf16.msra.mxu1 %v7103_v35  ;;  %v3789_v59 = vmax.f32 %v3657_v0, %v3725_v43  ;;  %v3663_v4 = vadd.f32 %v3662_v3, %v3550_v1  ;;  %v7124_v3 = vld [vmem:[%s8633_s7 + $0x30] sm:$0xff]   ;;  %v7118_v41 = vld [vmem:[#allocation8 + $0x308] ss:$16 sps:$4 sm:$0xff]  }
 0x39a   : > { %v3553_v48 = vpop.f32.mrf.mxu0  ;;  %4982 = vmatprep.subr.bf16.mxu1 %v7108_v9  ;;  %v7125_v9 = vld [vmem:[%s8633_s7 + $0x68] sm:$0xff]   ;;  %v7132_v1 = vld [vmem:[%s8633_s7 + $0x10] sm:$0xff]  }
 0x39b   : > { %v3666_v28 = vpop.f32.mrf.mxu1  ;;  %v3790_v60 = vmax.f32 %v3659_v18, %v3726_v7  ;;  %v3665_v2 = vadd.f32 %v3664_v27, %v3552_v63  ;;  %v3554_v14 = vadd.f32 %v3553_v48, %v8078_v36  ;;  %v8181_v45 = vpack.c.bf16 %v3789_v59, %v3785_v61  ;;  %v7121_v36 = vld [vmem:[%s8633_s7 + $0x78] sm:$0xff]   ;;  %v7127_v27 = vld [vmem:[%s8633_s7 + $0x60] sm:$0xff]   ;;  %v7131_v7 = vld [vmem:[%s8633_s7 + $0x50] sm:$0xff]  }
 0x39c   : > { %v3555_v20 = vpop.f32.mrf.mxu0  ;;  %v3729_v50 = vmul.f32 0.2, %v3663_v4  ;;  %6294 = vmatprep.subr.bf16.mxu0 %v7121_v36  ;;  %v7120_v18 = vld [vmem:[#allocation8 + $0x30c] ss:$16 sps:$4 sm:$0xff]   ;;  %v7136_v48 = vld [vmem:[%s8633_s7] sm:$0xff]   ;;  %v7148_v59 = vld [vmem:[%s8633_s7 + $0x90] sm:$0xff]  }
 0x39d   : > { %v3667_v25 = vadd.f32 %v3666_v28, %v3554_v14  ;;  %v3556_v6 = vadd.f32 %v3555_v20, %v8083_v42  ;;  %v3668_v11 = vpop.f32.mrf.mxu1  ;;  %4983 = vmatpush2.bf16.msra.mxu1 %v7106_v5  ;;  %v8179_v23 = vpack.c.bf16 %v3790_v60, %v3786_v49  ;;  %v3730_v57 = vmul.f32 0.2, %v3665_v2  ;;  %v7122_v42 = vld [vmem:[%s8633_s7 + $0x38] sm:$0xff]   ;;  %v7133_v63 = vld [vmem:[%s8633_s7 + $0x48] sm:$0xff]   ;;  %v7147_v5 = vld [vmem:[%s8633_s7 + $0xd0] sm:$0xff]  }
 0x39e   : > { %4984 = vmatprep.subr.bf16.mxu1 %v7111_v34  ;;  %6295 = vmatpush3.bf16.msra.mxu0 %v7122_v42  ;;  %v7146_v28 = vld [vmem:[%s8633_s7 + $0x98] sm:$0xff]   ;;  %v7149_v49 = vld [vmem:[%s8633_s7 + $0xc8] sm:$0xff]  }
 0x39f   : > { %v3733_v31 = vmul.f32 0.2, %v3667_v25  ;;  %v3669_v32 = vadd.f32 %v3668_v11, %v3556_v6  ;;  %4826 = vmatprep.mubr.bf16.mxu1 %v8179_v23  ;;  %v3794_v44 = vmax.f32 %v3665_v2, %v3730_v57  ;;  %6296 = vmatprep.subr.bf16.mxu0 %v7123_v19  ;;  %v7150_v20 = vld [vmem:[%s8633_s7 + $0x88] sm:$0xff]   ;;  %v7152_v11 = vld [vmem:[%s8633_s7 + $0x80] sm:$0xff]  }
 0x3a0   : > { %4827 = vmatmul.mubr.bf16.gmra.mxu1 %v8181_v45  ;;  %4940 = vmatmul.mubr.bf16.gmra.mxu0 %v8088_v53  ;;  %v3793_v53 = vmax.f32 %v3663_v4, %v3729_v50 }
 0x3a1   : > { %v3734_v51 = vmul.f32 0.2, %v3669_v32  ;;  %4949 = vmatprep.mubr.bf16.mxu0 %v8096_v52  ;;  %4985 = vmatpush2.bf16.msra.mxu1 %v7109_v37  ;;  %v3797_v58 = vmax.f32 %v3667_v25, %v3733_v31  ;;  %v7115_v52 = vld [vmem:[#allocation8 + $0x328] ss:$16 sps:$4 sm:$0xff]   ;;  %v7151_v25 = vld [vmem:[%s8633_s7 + $0xc0] sm:$0xff]  }
 0x3a2   : > { %4986 = vmatprep.subr.bf16.mxu1 %v7114_v38  ;;  %6297 = vmatpush3.bf16.msra.mxu0 %v7124_v3 }
 0x3a3   : > { %v3798_v0 = vmax.f32 %v3669_v32, %v3734_v51  ;;  %v8202_v43 = vpack.c.bf16 %v3797_v58, %v3793_v53  ;;  %6298 = vmatprep.subr.bf16.mxu0 %v7125_v9 }
 0x3a5   : > { %v8199_v35 = vpack.c.bf16 %v3798_v0, %v3794_v44  ;;  %4987 = vmatpush2.bf16.msra.mxu1 %v7112_v39 }
 0x3a6   : > { %4988 = vmatprep.subr.bf16.mxu1 %v7117_v15  ;;  %6299 = vmatpush3.bf16.msra.mxu0 %v7126_v22 }
 0x3a7   : > { %4836 = vmatprep.mubr.bf16.mxu1 %v8199_v35  ;;  %6300 = vmatprep.subr.bf16.mxu0 %v7127_v27 }
 0x3a8   : > { %4837 = vmatmul.mubr.bf16.gmra.mxu1 %v8202_v43  ;;  %4950 = vmatmul.mubr.bf16.gmra.mxu0 %v8098_v12  ;;  %v7129_v12 = vld [vmem:[%s8633_s7 + $0x58] sm:$0xff]  }
 0x3a9   : > { %4989 = vmatpush2.bf16.msra.mxu1 %v7115_v52  ;;  %4992 = vmatprep.mubr.bf16.mxu1 %v8107_v13  ;;  %v7130_v13 = vld [vmem:[%s8633_s7 + $0x18] sm:$0xff]  }
 0x3aa   : > { %4990 = vmatprep.subr.bf16.mxu1 %v7120_v18  ;;  %6301 = vmatpush3.bf16.msra.mxu0 %v7128_v8  ;;  %v8351_v18 = vld [vmem:[%s8632_s6] sm:$0xf] }
 0x3ab   : > { %6302 = vmatprep.subr.bf16.mxu0 %v7129_v12  ;;  %v8358_v22 = vrot.slane %v8351_v18, %v2565_v30  ;;  %v8365_v27 = vrot.slane %v8351_v18, %v2561_v17 }
 0x3ad   : > { %4991 = vmatpush2.bf16.msra.mxu1 %v7118_v41 }
 0x3ae   : > { %6303 = vmatpush3.bf16.msra.mxu0 %v7130_v13 }
 0x3af   : > { %6304 = vmatprep.subr.bf16.mxu0 %v7131_v7 }
 0x3b0   : > { %4993 = vmatmul.mubr.bf16.vlgmr.msra.gmra.mxu1 %v8109_v46  ;;  %v7134_v46 = vld [vmem:[%s8633_s7 + $0x8] sm:$0xff]  }
 0x3b1   : > { %5002 = vmatprep.mubr.bf16.mxu1 %v8119_v24  ;;  %v7135_v24 = vld [vmem:[%s8633_s7 + $0x40] sm:$0xff]  }
 0x3b2   : > { %6305 = vmatpush3.bf16.msra.mxu0 %v7132_v1 }
 0x3b3   : > { %6306 = vmatprep.subr.bf16.mxu0 %v7133_v63 }
 0x3b6   : > { %6307 = vmatpush3.bf16.msra.mxu0 %v7134_v46 }
 0x3b7   : > { %6308 = vmatprep.subr.bf16.mxu0 %v7135_v24 }
 0x3b8   : > { %5003 = vmatmul.mubr.bf16.gmra.mxu1 %v8121_v55  ;;  %v7137_v55 = vld [vmem:[%s8633_s7 + $0xf8] sm:$0xff]  }
 0x3b9   : > { %5012 = vmatprep.mubr.bf16.mxu1 %v8131_v62  ;;  %v7138_v62 = vld [vmem:[%s8633_s7 + $0xb8] sm:$0xff]   ;;  %6358 = vmatprep.subr.bf16.mxu1 %v7137_v55 }
 0x3ba   : > { %6309 = vmatpush3.bf16.msra.mxu0 %v7136_v48  ;;  %6359 = vmatpush3.bf16.msra.mxu1 %v7138_v62 }
 0x3c0   : > { %5013 = vmatmul.mubr.bf16.gmra.mxu1 %v8133_v47  ;;  %v7139_v47 = vld [vmem:[%s8633_s7 + $0xf0] sm:$0xff]  }
 0x3c1   : > { %5022 = vmatprep.mubr.bf16.mxu1 %v8143_v26  ;;  %v7140_v26 = vld [vmem:[%s8633_s7 + $0xb0] sm:$0xff]   ;;  %6360 = vmatprep.subr.bf16.mxu1 %v7139_v47 }
 0x3c2   : > { %6361 = vmatpush3.bf16.msra.mxu1 %v7140_v26 }
 0x3c8   : > { %5023 = vmatmul.mubr.bf16.gmra.mxu1 %v8145_v33  ;;  %v7141_v33 = vld [vmem:[%s8633_s7 + $0xe8] sm:$0xff]  }
 0x3c9   : > { %5032 = vmatprep.mubr.bf16.mxu1 %v8155_v54  ;;  %v7142_v54 = vld [vmem:[%s8633_s7 + $0xa8] sm:$0xff]   ;;  %6362 = vmatprep.subr.bf16.mxu1 %v7141_v33 }
 0x3ca   : > { %6363 = vmatpush3.bf16.msra.mxu1 %v7142_v54 }
 0x3d0   : > { %5033 = vmatmul.mubr.bf16.gmra.mxu1 %v8157_v10  ;;  %v7143_v10 = vld [vmem:[%s8633_s7 + $0xe0] sm:$0xff]  }
 0x3d1   : > { %5042 = vmatprep.mubr.bf16.mxu1 %v8167_v29  ;;  %v7144_v29 = vld [vmem:[%s8633_s7 + $0xa0] sm:$0xff]   ;;  %6364 = vmatprep.subr.bf16.mxu1 %v7143_v10 }
 0x3d2   : > { %6365 = vmatpush3.bf16.msra.mxu1 %v7144_v29 }
 0x3d8   : > { %5043 = vmatmul.mubr.bf16.gmra.mxu1 %v8169_v21  ;;  %v7145_v21 = vld [vmem:[%s8633_s7 + $0xd8] sm:$0xff]  }
 0x3d9   : > { %5052 = vmatprep.mubr.bf16.mxu1 %v8179_v23  ;;  %6366 = vmatprep.subr.bf16.mxu1 %v7145_v21 }
 0x3da   : > { %6367 = vmatpush3.bf16.msra.mxu1 %v7146_v28 }
 0x3db   : > { %6368 = vmatprep.subr.bf16.mxu1 %v7147_v5 }
 0x3de   : > { %6369 = vmatpush3.bf16.msra.mxu1 %v7148_v59 }
 0x3df   : > { %6370 = vmatprep.subr.bf16.mxu1 %v7149_v49 }
 0x3e0   : > { %5053 = vmatmul.mubr.bf16.gmra.mxu1 %v8181_v45 }
 0x3e1   : > { %5062 = vmatprep.mubr.bf16.mxu1 %v8199_v35 }
 0x3e2   : > { %6371 = vmatpush3.bf16.msra.mxu1 %v7150_v20 }
 0x3e3   : > { %6372 = vmatprep.subr.bf16.mxu1 %v7151_v25 }
 0x3e6   : > { %6373 = vmatpush3.bf16.msra.mxu1 %v7152_v11 }
 0x3e8   : > { %5063 = vmatmul.mubr.bf16.gmra.mxu1 %v8202_v43 }
 0x3f0   : > { %v4655_v60 = vpop.f32.mrf.mxu0 }
 0x3f1   : > { %v4656_v1 = vadd.f32 %v4655_v60, %v8365_v27 }
 0x3f2   : > { %v4657_v2 = vpop.f32.mrf.mxu0 }
 0x3f3   : > { %v4658_v13 = vadd.f32 %v4657_v2, %v8358_v22 }
 0x3f4   : > { %v4659_v14 = vpop.f32.mrf.mxu0 }
 0x3f5   : > { %v4660_v30 = vadd.f32 %v4659_v14, %v8365_v27 }
 0x3f6   : > { %v4661_v34 = vpop.f32.mrf.mxu0 }
 0x3f7   : > { %v4662_v17 = vadd.f32 %v4661_v34, %v8358_v22 }
 0x3f8   : > { %v4665_v61 = vpop.f32.mrf.mxu0 }
 0x3f9   : > { %v4666_v34 = vadd.f32 %v4665_v61, %v8365_v27 }
 0x3fa   : > { %v4667_v4 = vpop.f32.mrf.mxu0 }
 0x3fb   : > { %v4668_v59 = vadd.f32 %v4667_v4, %v8358_v22 }
 0x3fc   : > { %v4669_v6 = vpop.f32.mrf.mxu0 }
 0x3fd   : > { %v4670_v20 = vadd.f32 %v4669_v6, %v8365_v27 }
 0x3fe   : > { %v4671_v23 = vpop.f32.mrf.mxu0 }
 0x400   : > { %v8306_v37 = vpop.f32.mrf.mxu0 }
 0x402   : > { %v8308_v38 = vpop.f32.mrf.mxu0 }
 0x404   : > { %v8310_v57 = vpop.f32.mrf.mxu0 }
 0x406   : > { %v8312_v31 = vpop.f32.mrf.mxu0 }
 0x408   : > { %v8314_v32 = vpop.f32.mrf.mxu0 }
 0x40a   : > { %v8316_v45 = vpop.f32.mrf.mxu0 }
 0x40c   : > { %v8318_v36 = vpop.f32.mrf.mxu0 }
 0x40e   : > { %v8320_v42 = vpop.f32.mrf.mxu0 }
 0x410   : > { %v8322_v50 = vpop.f32.mrf.mxu0 }
 0x412   : > { %v8324_v51 = vpop.f32.mrf.mxu0 }
 0x414   : > { %v8326_v39 = vpop.f32.mrf.mxu0 }
 0x416   : > { %v8328_v44 = vpop.f32.mrf.mxu0 }
 0x418   : > { %v8330_v58 = vpop.f32.mrf.mxu0 }
 0x41a   : > { %v8332_v0 = vpop.f32.mrf.mxu0 }
 0x41c   : > { %v8334_v15 = vpop.f32.mrf.mxu0 }
 0x41e   : > { %v8336_v19 = vpop.f32.mrf.mxu0 }
 0x420   : > { %v8338_v3 = vpop.f32.mrf.mxu0 }
 0x422   : > { %v8340_v53 = vpop.f32.mrf.mxu0 }
 0x424   : > { %v8342_v35 = vpop.f32.mrf.mxu0 }
 0x426   : > { %v8344_v52 = vpop.f32.mrf.mxu0 }
 0x428   : > { %v8346_v43 = vpop.f32.mrf.mxu0 }
 0x42a   : > { %v8353_v9 = vpop.f32.mrf.mxu0 }
 0x42c   : > { %v8360_v41 = vpop.f32.mrf.mxu0 }
 0x42e   : > { %v8367_v8 = vpop.f32.mrf.mxu0 }
 0x430   : > { %v4768_v12 = vpop.f32.mrf.mxu1  ;;  %v8370_v7 = vpop.f32.mrf.mxu0 }
 0x431   : > { %v4769_v48 = vadd.f32 %v4768_v12, %v4656_v1  ;;  %v4672_v1 = vadd.f32 %v4671_v23, %v8358_v22 }
 0x432   : > { %v4770_v63 = vpop.f32.mrf.mxu1  ;;  %v8374_v24 = vpop.f32.mrf.mxu0 }
 0x433   : > { %v4771_v46 = vadd.f32 %v4770_v63, %v4658_v13  ;;  %v5073_v29 = vmul.f32 0.2, %v4769_v48 }
 0x434   : > { %v4772_v55 = vpop.f32.mrf.mxu1  ;;  %v8377_v54 = vpop.f32.mrf.mxu0 }
 0x435   : > { %v4773_v62 = vadd.f32 %v4772_v55, %v4660_v30  ;;  %v5074_v26 = vmul.f32 0.2, %v4771_v46  ;;  %v5137_v25 = vmax.f32 %v4769_v48, %v5073_v29  ;;  %v4678_v48 = vadd.f32 %v8308_v38, %v8358_v22 }
 0x436   : > { %v4774_v47 = vpop.f32.mrf.mxu1  ;;  %v8380_v14 = vpop.f32.mrf.mxu0  ;;  %v4680_v29 = vadd.f32 %v8310_v57, %v8365_v27 }
 0x437   : > { %v5077_v33 = vmul.f32 0.2, %v4773_v62  ;;  %v4775_v10 = vadd.f32 %v4774_v47, %v4662_v17  ;;  %v5138_v60 = vmax.f32 %v4771_v46, %v5074_v26 }
 0x438   : > { %v4778_v28 = vpop.f32.mrf.mxu1  ;;  %v8385_v17 = vpop.f32.mrf.mxu0 }
 0x439   : > { %v5078_v21 = vmul.f32 0.2, %v4775_v10  ;;  %v5141_v5 = vmax.f32 %v4773_v62, %v5077_v33  ;;  %v4779_v30 = vadd.f32 %v4778_v28, %v4666_v34 }
 0x43a   : > { %v4780_v49 = vpop.f32.mrf.mxu1  ;;  %v8389_v33 = vpop.f32.mrf.mxu0 }
 0x43b   : > { %v5142_v2 = vmax.f32 %v4775_v10, %v5078_v21  ;;  %v4781_v11 = vadd.f32 %v4780_v49, %v4668_v59  ;;  %v5201_v63 = vpack.c.bf16 %v5141_v5, %v5137_v25  ;;  %v5081_v26 = vmul.f32 0.2, %v4779_v30 }
 0x43c   : > { %v4782_v12 = vpop.f32.mrf.mxu1  ;;  %v4676_v10 = vadd.f32 %v8306_v37, %v8365_v27 }
 0x43d   : > { %v5202_v13 = vpack.c.bf16 %v5142_v2, %v5138_v60  ;;  %v4783_v55 = vadd.f32 %v4782_v12, %v4670_v20  ;;  %v5082_v47 = vmul.f32 0.2, %v4781_v11  ;;  %v4682_v2 = vadd.f32 %v8312_v31, %v8358_v22  ;;  %v8397_v20 = vpop.f32.mrf.mxu0 }
 0x43e   : > { %v4784_v4 = vpop.f32.mrf.mxu1  ;;  %v5145_v49 = vmax.f32 %v4779_v30, %v5081_v26 }
 0x43f   : > { %5528 = vmatprep.mubr.bf16.mxu0 %v5202_v13  ;;  %v5085_v46 = vmul.f32 0.2, %v4783_v55  ;;  %v4785_v62 = vadd.f32 %v4784_v4, %v4672_v1  ;;  %v5146_v5 = vmax.f32 %v4781_v11, %v5082_v47  ;;  %v4688_v4 = vadd.f32 %v8316_v45, %v8358_v22  ;;  %v8401_v31 = vpop.f32.mrf.mxu0 }
 0x440   : > { %5529 = vmatmul.mubr.bf16.vlgmr.msra.gmra.mxu0 %v5201_v63  ;;  %v4788_v61 = vpop.f32.mrf.mxu1 }
 0x441   : > { %v5086_v6 = vmul.f32 0.2, %v4785_v62  ;;  %v5149_v21 = vmax.f32 %v4783_v55, %v5085_v46  ;;  %v4789_v34 = vadd.f32 %v4788_v61, %v4676_v10  ;;  %v4686_v46 = vadd.f32 %v8314_v32, %v8365_v27 }
 0x442   : > { %v4790_v23 = vpop.f32.mrf.mxu1 }
 0x443   : > { %v5150_v28 = vmax.f32 %v4785_v62, %v5086_v6  ;;  %v4791_v59 = vadd.f32 %v4790_v23, %v4678_v48  ;;  %v5205_v13 = vpack.c.bf16 %v5149_v21, %v5145_v49  ;;  %v5089_v55 = vmul.f32 0.2, %v4789_v34  ;;  %v8409_v21 = vpop.f32.mrf.mxu0 }
 0x444   : > { %v4792_v60 = vpop.f32.mrf.mxu1  ;;  %v4690_v62 = vadd.f32 %v8318_v36, %v8365_v27  ;;  %v4692_v23 = vadd.f32 %v8320_v42, %v8358_v22 }
 0x445   : > { %v4793_v38 = vadd.f32 %v4792_v60, %v4680_v29  ;;  %v5206_v12 = vpack.c.bf16 %v5150_v28, %v5146_v5  ;;  %v5090_v63 = vmul.f32 0.2, %v4791_v59  ;;  %v5153_v10 = vmax.f32 %v4789_v34, %v5089_v55  ;;  %v8413_v42 = vpop.f32.mrf.mxu0 }
 0x446   : > { %v4794_v25 = vpop.f32.mrf.mxu1 }
 0x447   : > { %v5093_v37 = vmul.f32 0.2, %v4793_v38  ;;  %v4795_v1 = vadd.f32 %v4794_v25, %v4682_v2  ;;  %5536 = vmatprep.mubr.bf16.mxu0 %v5206_v12  ;;  %v5154_v26 = vmax.f32 %v4791_v59, %v5090_v63  ;;  %v4698_v25 = vadd.f32 %v8324_v51, %v8358_v22 }
 0x448   : > { %v4798_v57 = vpop.f32.mrf.mxu1  ;;  %5537 = vmatmul.mubr.bf16.gmra.mxu0 %v5205_v13  ;;  %v4696_v12 = vadd.f32 %v8322_v50, %v8365_v27  ;;  %v4700_v13 = vadd.f32 %v8326_v39, %v8365_v27 }
 0x449   : > { %v5094_v11 = vmul.f32 0.2, %v4795_v1  ;;  %v5157_v47 = vmax.f32 %v4793_v38, %v5093_v37  ;;  %v4799_v29 = vadd.f32 %v4798_v57, %v4686_v46  ;;  %v8421_v46 = vpop.f32.mrf.mxu0 }
 0x44a   : > { %v4800_v30 = vpop.f32.mrf.mxu1 }
 0x44b   : > { %v5158_v61 = vmax.f32 %v4795_v1, %v5094_v11  ;;  %v4801_v6 = vadd.f32 %v4800_v30, %v4688_v4  ;;  %v5209_v60 = vpack.c.bf16 %v5157_v47, %v5153_v10  ;;  %v5097_v38 = vmul.f32 0.2, %v4799_v29 }
 0x44c   : > { %v4802_v48 = vpop.f32.mrf.mxu1  ;;  %v4702_v11 = vadd.f32 %v8328_v44, %v8358_v22  ;;  %v4708_v10 = vadd.f32 %v8332_v0, %v8358_v22  ;;  %v8425_v44 = vpop.f32.mrf.mxu0 }
 0x44d   : > { %v4803_v45 = vadd.f32 %v4802_v48, %v4690_v62  ;;  %v5210_v5 = vpack.c.bf16 %v5158_v61, %v5154_v26  ;;  %v5098_v49 = vmul.f32 0.2, %v4801_v6  ;;  %v5161_v4 = vmax.f32 %v4799_v29, %v5097_v38 }
 0x44e   : > { %v4804_v28 = vpop.f32.mrf.mxu1 }
 0x44f   : > { %v5101_v32 = vmul.f32 0.2, %v4803_v45  ;;  %v4805_v2 = vadd.f32 %v4804_v28, %v4692_v23  ;;  %5544 = vmatprep.mubr.bf16.mxu0 %v5210_v5  ;;  %v5162_v63 = vmax.f32 %v4801_v6, %v5098_v49  ;;  %v4710_v28 = vadd.f32 %v8334_v15, %v8365_v27 }
 0x450   : > { %v4808_v36 = vpop.f32.mrf.mxu1  ;;  %5545 = vmatmul.mubr.bf16.gmra.mxu0 %v5209_v60 }
 0x451   : > { %v5102_v59 = vmul.f32 0.2, %v4805_v2  ;;  %v5165_v37 = vmax.f32 %v4803_v45, %v5101_v32  ;;  %v4809_v30 = vadd.f32 %v4808_v36, %v4696_v12  ;;  %v4706_v45 = vadd.f32 %v8330_v58, %v8365_v27 }
 0x452   : > { %v4810_v34 = vpop.f32.mrf.mxu1  ;;  %v4712_v36 = vadd.f32 %v8336_v19, %v8358_v22 }
 0x453   : > { %v5166_v1 = vmax.f32 %v4805_v2, %v5102_v59  ;;  %v4811_v57 = vadd.f32 %v4810_v34, %v4698_v25  ;;  %v5213_v61 = vpack.c.bf16 %v5165_v37, %v5161_v4  ;;  %v5105_v23 = vmul.f32 0.2, %v4809_v30  ;;  %v8433_v25 = vpop.f32.mrf.mxu0 }
 0x454   : > { %v4812_v55 = vpop.f32.mrf.mxu1  ;;  %v4716_v4 = vadd.f32 %v8338_v3, %v8365_v27 }
 0x455   : > { %v4813_v51 = vadd.f32 %v4812_v55, %v4700_v13  ;;  %v5214_v47 = vpack.c.bf16 %v5166_v1, %v5162_v63  ;;  %v5106_v48 = vmul.f32 0.2, %v4811_v57  ;;  %v5169_v38 = vmax.f32 %v4809_v30, %v5105_v23  ;;  %v8437_v19 = vpop.f32.mrf.mxu0 }
 0x456   : > { %v4814_v62 = vpop.f32.mrf.mxu1  ;;  %v4718_v55 = vadd.f32 %v8340_v53, %v8358_v22  ;;  %v4720_v30 = vadd.f32 %v8342_v35, %v8365_v27 }
 0x457   : > { %v5109_v50 = vmul.f32 0.2, %v4813_v51  ;;  %v4815_v26 = vadd.f32 %v4814_v62, %v4702_v11  ;;  %5552 = vmatprep.mubr.bf16.mxu0 %v5214_v47  ;;  %v5170_v32 = vmax.f32 %v4811_v57, %v5106_v48  ;;  %v8445_v23 = vpop.f32.mrf.mxu0 }
 0x458   : > { %v4818_v39 = vpop.f32.mrf.mxu1  ;;  %5553 = vmatmul.mubr.bf16.gmra.mxu0 %v5213_v61 }
 0x459   : > { %v5110_v6 = vmul.f32 0.2, %v4815_v26  ;;  %v5173_v5 = vmax.f32 %v4813_v51, %v5109_v50  ;;  %v4819_v59 = vadd.f32 %v4818_v39, %v4706_v45 }
 0x45a   : > { %v4820_v29 = vpop.f32.mrf.mxu1 }
 0x45b   : > { %v5174_v60 = vmax.f32 %v4815_v26, %v5110_v6  ;;  %v4821_v2 = vadd.f32 %v4820_v29, %v4708_v10  ;;  %v5217_v13 = vpack.c.bf16 %v5173_v5, %v5169_v38  ;;  %v5113_v63 = vmul.f32 0.2, %v4819_v59 }
 0x45c   : > { %v4822_v49 = vpop.f32.mrf.mxu1  ;;  %v4722_v26 = vadd.f32 %v8344_v52, %v8358_v22  ;;  %v4728_v5 = vadd.f32 %v8353_v9, %v8358_v22  ;;  %v4726_v52 = vadd.f32 %v8346_v43, %v8365_v27 }
 0x45d   : > { %v4823_v0 = vadd.f32 %v4822_v49, %v4710_v28  ;;  %v5218_v12 = vpack.c.bf16 %v5174_v60, %v5170_v32  ;;  %v5114_v1 = vmul.f32 0.2, %v4821_v2  ;;  %v5177_v48 = vmax.f32 %v4819_v59, %v5113_v63 }
 0x45e   : > { %v4824_v34 = vpop.f32.mrf.mxu1 }
 0x45f   : > { %v5117_v58 = vmul.f32 0.2, %v4823_v0  ;;  %v4825_v37 = vadd.f32 %v4824_v34, %v4712_v36  ;;  %5560 = vmatprep.mubr.bf16.mxu0 %v5218_v12  ;;  %v5178_v47 = vmax.f32 %v4821_v2, %v5114_v1  ;;  %v8451_v2 = vpop.f32.mrf.mxu0  ;;  %v4730_v36 = vadd.f32 %v8360_v41, %v8365_v27 }
 0x460   : > { %v4828_v15 = vpop.f32.mrf.mxu1  ;;  %5561 = vmatmul.mubr.bf16.gmra.mxu0 %v5217_v13  ;;  %v8458_v34 = vrot.slane %v8351_v18, %v2573_v56  ;;  %v4732_v13 = vadd.f32 %v8367_v8, %v8358_v22  ;;  %v8465_v41 = vrot.slane %v8351_v18, %v2569_v40 }
 0x461   : > { %v5118_v57 = vmul.f32 0.2, %v4825_v37  ;;  %v5181_v51 = vmax.f32 %v4823_v0, %v5117_v58  ;;  %v4829_v39 = vadd.f32 %v4828_v15, %v4716_v4  ;;  %v8467_v27 = vpop.f32.mrf.mxu0 }
 0x462   : > { %v4830_v11 = vpop.f32.mrf.mxu1  ;;  %v4884_v22 = vadd.f32 %v8374_v24, %v8458_v34  ;;  %v4882_v16 = vadd.f32 %v8370_v7, %v8465_v41  ;;  %v4886_v40 = vadd.f32 %v8377_v54, %v8465_v41  ;;  %v4888_v24 = vadd.f32 %v8380_v14, %v8458_v34 }
 0x463   : > { %v5182_v62 = vmax.f32 %v4825_v37, %v5118_v57  ;;  %v4831_v61 = vadd.f32 %v4830_v11, %v4718_v55  ;;  %v5221_v29 = vpack.c.bf16 %v5181_v51, %v5177_v48  ;;  %v5121_v60 = vmul.f32 0.2, %v4829_v39  ;;  %v8475_v18 = vpop.f32.mrf.mxu0 }
 0x464   : > { %v4832_v50 = vpop.f32.mrf.mxu1  ;;  %v4892_v14 = vadd.f32 %v8385_v17, %v8465_v41 }
 0x465   : > { %v4833_v53 = vadd.f32 %v4832_v50, %v4720_v30  ;;  %v5222_v10 = vpack.c.bf16 %v5182_v62, %v5178_v47  ;;  %v5122_v28 = vmul.f32 0.2, %v4831_v61  ;;  %v5185_v43 = vmax.f32 %v4829_v39, %v5121_v60 }
 0x466   : > { %v4834_v6 = vpop.f32.mrf.mxu1 }
 0x467   : > { %v5125_v3 = vmul.f32 0.2, %v4833_v53  ;;  %v4835_v45 = vadd.f32 %v4834_v6, %v4722_v26  ;;  %5568 = vmatprep.mubr.bf16.mxu0 %v5222_v10  ;;  %v5186_v9 = vmax.f32 %v4831_v61, %v5122_v28  ;;  %v8479_v6 = vpop.f32.mrf.mxu0 }
 0x468   : > { %v4838_v35 = vpop.f32.mrf.mxu1  ;;  %5569 = vmatmul.mubr.bf16.gmra.mxu0 %v5221_v29 }
 0x469   : > { %v5126_v32 = vmul.f32 0.2, %v4835_v45  ;;  %v5189_v38 = vmax.f32 %v4833_v53, %v5125_v3  ;;  %v4839_v58 = vadd.f32 %v4838_v35, %v4726_v52  ;;  %v4894_v35 = vadd.f32 %v8389_v33, %v8458_v34  ;;  %v8485_v60 = vpop.f32.mrf.mxu0 }
 0x46a   : > { %v4840_v49 = vpop.f32.mrf.mxu1  ;;  %v4898_v33 = vadd.f32 %v8401_v31, %v8458_v34  ;;  %v4902_v31 = vadd.f32 %v8409_v21, %v8465_v41 }
 0x46b   : > { %v5190_v59 = vmax.f32 %v4835_v45, %v5126_v32  ;;  %v4841_v0 = vadd.f32 %v4840_v49, %v4728_v5  ;;  %v5225_v63 = vpack.c.bf16 %v5189_v38, %v5185_v43  ;;  %v5129_v8 = vmul.f32 0.2, %v4839_v58 }
 0x46c   : > { %v4842_v12 = vpop.f32.mrf.mxu1  ;;  %v4896_v49 = vadd.f32 %v8397_v20, %v8465_v41 }
 0x46d   : > { %v4843_v37 = vadd.f32 %v4842_v12, %v4730_v36  ;;  %v5226_v15 = vpack.c.bf16 %v5190_v59, %v5186_v9  ;;  %v5130_v56 = vmul.f32 0.2, %v4841_v0  ;;  %v5193_v48 = vmax.f32 %v4839_v58, %v5129_v8  ;;  %v8491_v58 = vpop.f32.mrf.mxu0 }
 0x46e   : > { %v4844_v1 = vpop.f32.mrf.mxu1 }
 0x46f   : > { %v5133_v57 = vmul.f32 0.2, %v4843_v37  ;;  %v4845_v55 = vadd.f32 %v4844_v1, %v4732_v13  ;;  %5576 = vmatprep.mubr.bf16.mxu0 %v5226_v15  ;;  %v5194_v51 = vmax.f32 %v4841_v0, %v5130_v56 }
 0x470   : > { %v4994_v11 = vpop.f32.mrf.mxu1  ;;  %5577 = vmatmul.mubr.bf16.gmra.mxu0 %v5225_v63 }
 0x471   : > { %v5134_v4 = vmul.f32 0.2, %v4845_v55  ;;  %v5197_v62 = vmax.f32 %v4843_v37, %v5133_v57  ;;  %v4995_v50 = vadd.f32 %v4994_v11, %v4882_v16  ;;  %v4904_v57 = vadd.f32 %v8413_v42, %v8458_v34  ;;  %v8497_v11 = vpop.f32.mrf.mxu0 }
 0x472   : > { %v4996_v30 = vpop.f32.mrf.mxu1  ;;  %v4908_v42 = vadd.f32 %v8425_v44, %v8458_v34  ;;  %v4912_v44 = vadd.f32 %v8433_v25, %v8465_v41 }
 0x473   : > { %v5198_v47 = vmax.f32 %v4845_v55, %v5134_v4  ;;  %v4997_v61 = vadd.f32 %v4996_v30, %v4884_v22  ;;  %v5229_v10 = vpack.c.bf16 %v5197_v62, %v5193_v48  ;;  %v5075_v45 = vmul.f32 0.2, %v4995_v50 }
 0x474   : > { %v4998_v26 = vpop.f32.mrf.mxu1  ;;  %v4906_v4 = vadd.f32 %v8421_v46, %v8465_v41 }
 0x475   : > { %v4999_v39 = vadd.f32 %v4998_v26, %v4886_v40  ;;  %v5230_v53 = vpack.c.bf16 %v5198_v47, %v5194_v51  ;;  %v5076_v54 = vmul.f32 0.2, %v4997_v61  ;;  %v5139_v0 = vmax.f32 %v4995_v50, %v5075_v45  ;;  %v8503_v26 = vpop.f32.mrf.mxu0 }
 0x476   : > { %v5000_v7 = vpop.f32.mrf.mxu1 }
 0x477   : > { %v5079_v29 = vmul.f32 0.2, %v4999_v39  ;;  %v5001_v3 = vadd.f32 %v5000_v7, %v4888_v24  ;;  %5584 = vmatprep.mubr.bf16.mxu0 %v5230_v53  ;;  %v5140_v36 = vmax.f32 %v4997_v61, %v5076_v54 }
 0x478   : > { %v5004_v28 = vpop.f32.mrf.mxu1  ;;  %5585 = vmatmul.mubr.bf16.gmra.mxu0 %v5229_v10  ;;  %v4914_v10 = vadd.f32 %v8437_v19, %v8458_v34 }
 0x479   : > { %v5080_v5 = vmul.f32 0.2, %v5001_v3  ;;  %v5143_v32 = vmax.f32 %v4999_v39, %v5079_v29  ;;  %v5005_v9 = vadd.f32 %v5004_v28, %v4892_v14  ;;  %v4937_v29 = vpop.f32.mrf.mxu0  ;;  %v4916_v28 = vadd.f32 %v8445_v23, %v8465_v41 }
 0x47a   : > { %v5006_v52 = vpop.f32.mrf.mxu1 }
 0x47b   : > { %v5144_v38 = vmax.f32 %v5001_v3, %v5080_v5  ;;  %v5007_v59 = vadd.f32 %v5006_v52, %v4894_v35  ;;  %v5203_v17 = vpack.c.bf16 %v5143_v32, %v5139_v0  ;;  %v5083_v20 = vmul.f32 0.2, %v5005_v9 }
 0x47c   : > { %v5008_v12 = vpop.f32.mrf.mxu1 }
 0x47d   : > { %v5009_v13 = vadd.f32 %v5008_v12, %v4896_v49  ;;  %v5204_v43 = vpack.c.bf16 %v5144_v38, %v5140_v36  ;;  %v5084_v1 = vmul.f32 0.2, %v5007_v59  ;;  %v5147_v51 = vmax.f32 %v5005_v9, %v5083_v20 }
 0x47e   : > { %v5010_v37 = vpop.f32.mrf.mxu1  ;;  %v4918_v36 = vadd.f32 %v8451_v2, %v8458_v34  ;;  %v4922_v2 = vadd.f32 %v8467_v27, %v8465_v41 }
 0x47f   : > { %v5087_v15 = vmul.f32 0.2, %v5009_v13  ;;  %v5011_v63 = vadd.f32 %v5010_v37, %v4898_v33  ;;  %5625 = vmatprep.mubr.bf16.mxu1 %v5204_v43  ;;  %v5148_v16 = vmax.f32 %v5007_v59, %v5084_v1  ;;  %v8513_v59 = vpop.f32.mrf.mxu0  ;;  %v4924_v43 = vadd.f32 %v8475_v18, %v8458_v34 }
 0x480   : > { %v5014_v56 = vpop.f32.mrf.mxu1  ;;  %5626 = vmatmul.mubr.bf16.vlgmr.msra.gmra.mxu1 %v5203_v17 }
 0x481   : > { %v5088_v55 = vmul.f32 0.2, %v5011_v63  ;;  %v5151_v22 = vmax.f32 %v5009_v13, %v5087_v15  ;;  %v5015_v62 = vadd.f32 %v5014_v56, %v4902_v31  ;;  %v4943_v37 = vpop.f32.mrf.mxu0 }
 0x482   : > { %v5016_v8 = vpop.f32.mrf.mxu1 }
 0x483   : > { %v5152_v40 = vmax.f32 %v5011_v63, %v5088_v55  ;;  %v5017_v30 = vadd.f32 %v5016_v8, %v4904_v57  ;;  %v5207_v21 = vpack.c.bf16 %v5151_v22, %v5147_v51  ;;  %v5091_v46 = vmul.f32 0.2, %v5015_v62 }
 0x484   : > { %v5018_v47 = vpop.f32.mrf.mxu1  ;;  %v4926_v63 = vadd.f32 %v8479_v6, %v8465_v41  ;;  %v4928_v8 = vadd.f32 %v8485_v60, %v8458_v34 }
 0x485   : > { %v5019_v61 = vadd.f32 %v5018_v47, %v4906_v4  ;;  %v5208_v50 = vpack.c.bf16 %v5152_v40, %v5148_v16  ;;  %v5092_v48 = vmul.f32 0.2, %v5017_v30  ;;  %v5155_v32 = vmax.f32 %v5015_v62, %v5091_v46  ;;  %v4945_v16 = vpop.f32.mrf.mxu0 }
 0x486   : > { %v5020_v24 = vpop.f32.mrf.mxu1 }
 0x487   : > { %v5095_v39 = vmul.f32 0.2, %v5019_v61  ;;  %v5021_v53 = vadd.f32 %v5020_v24, %v4908_v42  ;;  %5633 = vmatprep.mubr.bf16.mxu1 %v5208_v50  ;;  %v5156_v35 = vmax.f32 %v5017_v30, %v5092_v48  ;;  %v4934_v42 = vadd.f32 %v8497_v11, %v8458_v34  ;;  %v4947_v60 = vpop.f32.mrf.mxu0 }
 0x488   : > { %v5024_v7 = vpop.f32.mrf.mxu1  ;;  %5634 = vmatmul.mubr.bf16.gmra.mxu1 %v5207_v21  ;;  %v4932_v50 = vadd.f32 %v8491_v58, %v8465_v41  ;;  %v4936_v48 = vadd.f32 %v8503_v26, %v8465_v41  ;;  %v4944_v26 = vadd.f32 %v4943_v37, %v8458_v34 }
 0x489   : > { %v5096_v54 = vmul.f32 0.2, %v5021_v53  ;;  %v5159_v3 = vmax.f32 %v5019_v61, %v5095_v39  ;;  %v5025_v52 = vadd.f32 %v5024_v7, %v4912_v44  ;;  %v4938_v44 = vadd.f32 %v4937_v29, %v8458_v34 }
 0x48a   : > { %v5026_v45 = vpop.f32.mrf.mxu1 }
 0x48b   : > { %v5160_v5 = vmax.f32 %v5021_v53, %v5096_v54  ;;  %v5027_v14 = vadd.f32 %v5026_v45, %v4914_v10  ;;  %v5211_v25 = vpack.c.bf16 %v5159_v3, %v5155_v32  ;;  %v5099_v23 = vmul.f32 0.2, %v5025_v52  ;;  %v4951_v45 = vpop.f32.mrf.mxu0 }
 0x48c   : > { %v5028_v49 = vpop.f32.mrf.mxu1 }
 0x48d   : > { %v5029_v19 = vadd.f32 %v5028_v49, %v4916_v28  ;;  %v5212_v38 = vpack.c.bf16 %v5160_v5, %v5156_v35  ;;  %v5100_v9 = vmul.f32 0.2, %v5027_v14  ;;  %v5163_v55 = vmax.f32 %v5025_v52, %v5099_v23 }
 0x48e   : > { %v5030_v0 = vpop.f32.mrf.mxu1 }
 0x48f   : > { %v5103_v12 = vmul.f32 0.2, %v5029_v19  ;;  %v5031_v33 = vadd.f32 %v5030_v0, %v4918_v36  ;;  %5641 = vmatprep.mubr.bf16.mxu1 %v5212_v38  ;;  %v5164_v20 = vmax.f32 %v5027_v14, %v5100_v9  ;;  %v4942_v36 = vadd.f32 %v8513_v59, %v8465_v41 }
 0x490   : > { %v5034_v13 = vpop.f32.mrf.mxu1  ;;  %5642 = vmatmul.mubr.bf16.gmra.mxu1 %v5211_v25  ;;  %v4946_v25 = vadd.f32 %v4945_v16, %v8465_v41 }
 0x491   : > { %v5104_v17 = vmul.f32 0.2, %v5031_v33  ;;  %v5167_v1 = vmax.f32 %v5029_v19, %v5103_v12  ;;  %v5035_v31 = vadd.f32 %v5034_v13, %v4922_v2  ;;  %v4953_v19 = vpop.f32.mrf.mxu0 }
 0x492   : > { %v5036_v15 = vpop.f32.mrf.mxu1 }
 0x493   : > { %v5168_v56 = vmax.f32 %v5031_v33, %v5104_v17  ;;  %v5037_v57 = vadd.f32 %v5036_v15, %v4924_v43  ;;  %v5215_v40 = vpack.c.bf16 %v5167_v1, %v5163_v55  ;;  %v5107_v47 = vmul.f32 0.2, %v5035_v31  ;;  %v4955_v37 = vpop.f32.mrf.mxu0 }
 0x494   : > { %v5038_v22 = vpop.f32.mrf.mxu1  ;;  %v4948_v43 = vadd.f32 %v4947_v60, %v8458_v34  ;;  %v4954_v55 = vadd.f32 %v4953_v19, %v8458_v34  ;;  %v4956_v16 = vadd.f32 %v4955_v37, %v8465_v41 }
 0x495   : > { %v5039_v18 = vadd.f32 %v5038_v22, %v4926_v63  ;;  %v5216_v4 = vpack.c.bf16 %v5168_v56, %v5164_v20  ;;  %v5108_v30 = vmul.f32 0.2, %v5037_v57  ;;  %v5171_v7 = vmax.f32 %v5035_v31, %v5107_v47 }
 0x496   : > { %v5040_v27 = vpop.f32.mrf.mxu1  ;;  %v4952_v22 = vadd.f32 %v4951_v45, %v8465_v41 }
 0x497   : > { %v5111_v51 = vmul.f32 0.2, %v5039_v18  ;;  %v5041_v62 = vadd.f32 %v5040_v27, %v4928_v8  ;;  %5649 = vmatprep.mubr.bf16.mxu1 %v5216_v4  ;;  %v5172_v39 = vmax.f32 %v5037_v57, %v5108_v30  ;;  %v4957_v8 = vpop.f32.mrf.mxu0 }
 0x498   : > { %v5044_v6 = vpop.f32.mrf.mxu1  ;;  %5650 = vmatmul.mubr.bf16.gmra.mxu1 %v5215_v40 }
 0x499   : > { %v5112_v61 = vmul.f32 0.2, %v5041_v62  ;;  %v5175_v21 = vmax.f32 %v5039_v18, %v5111_v51  ;;  %v5045_v10 = vadd.f32 %v5044_v6, %v4932_v50  ;;  %v4958_v6 = vadd.f32 %v4957_v8, %v8458_v34 }
 0x49a   : > { %v5046_v24 = vpop.f32.mrf.mxu1 }
 0x49b   : > { %v5176_v53 = vmax.f32 %v5041_v62, %v5112_v61  ;;  %v5047_v46 = vadd.f32 %v5046_v24, %v4934_v42  ;;  %v5219_v28 = vpack.c.bf16 %v5175_v21, %v5171_v7  ;;  %v5115_v32 = vmul.f32 0.2, %v5045_v10 }
 0x49c   : > { %v5048_v54 = vpop.f32.mrf.mxu1 }
 0x49d   : > { %v5049_v3 = vadd.f32 %v5048_v54, %v4936_v48  ;;  %v5220_v11 = vpack.c.bf16 %v5176_v53, %v5172_v39  ;;  %v5116_v58 = vmul.f32 0.2, %v5047_v46  ;;  %v5179_v33 = vmax.f32 %v5045_v10, %v5115_v32 }
 0x49e   : > { %v5050_v35 = vpop.f32.mrf.mxu1 }
 0x49f   : > { %v5119_v5 = vmul.f32 0.2, %v5049_v3  ;;  %v5051_v14 = vadd.f32 %v5050_v35, %v4938_v44  ;;  %5657 = vmatprep.mubr.bf16.mxu1 %v5220_v11  ;;  %v5180_v0 = vmax.f32 %v5047_v46, %v5116_v58 }
 0x4a0   : > { %v5054_v52 = vpop.f32.mrf.mxu1  ;;  %5658 = vmatmul.mubr.bf16.gmra.mxu1 %v5219_v28 }
 0x4a1   : > { %v5120_v49 = vmul.f32 0.2, %v5051_v14  ;;  %v5183_v29 = vmax.f32 %v5049_v3, %v5119_v5  ;;  %v5055_v23 = vadd.f32 %v5054_v52, %v4942_v36 }
 0x4a2   : > { %v5056_v38 = vpop.f32.mrf.mxu1 }
 0x4a3   : > { %v5184_v9 = vmax.f32 %v5051_v14, %v5120_v49  ;;  %v5057_v12 = vadd.f32 %v5056_v38, %v4944_v26  ;;  %v5223_v1 = vpack.c.bf16 %v5183_v29, %v5179_v33  ;;  %v5123_v56 = vmul.f32 0.2, %v5055_v23 }
 0x4a4   : > { %v5058_v13 = vpop.f32.mrf.mxu1 }
 0x4a5   : > { %v5059_v17 = vadd.f32 %v5058_v13, %v4946_v25  ;;  %v5224_v2 = vpack.c.bf16 %v5184_v9, %v5180_v0  ;;  %v5124_v63 = vmul.f32 0.2, %v5057_v12  ;;  %v5187_v51 = vmax.f32 %v5055_v23, %v5123_v56  ;;  %v8542_v0 = vld [vmem:[%s8634_s8] ss:$0 sm:$0xff] }
 0x4a6   : > { %v5060_v15 = vpop.f32.mrf.mxu1 }
 0x4a7   : > { %v5127_v59 = vmul.f32 0.2, %v5059_v17  ;;  %v5061_v20 = vadd.f32 %v5060_v15, %v4948_v43  ;;  %5665 = vmatprep.mubr.bf16.mxu1 %v5224_v2  ;;  %v5188_v40 = vmax.f32 %v5057_v12, %v5124_v63 }
 0x4a8   : > { %v5064_v57 = vpop.f32.mrf.mxu1  ;;  %5666 = vmatmul.mubr.bf16.gmra.mxu1 %v5223_v1 }
 0x4a9   : > { %v5128_v31 = vmul.f32 0.2, %v5061_v20  ;;  %v5191_v18 = vmax.f32 %v5059_v17, %v5127_v59  ;;  %v5065_v62 = vadd.f32 %v5064_v57, %v4952_v22 }
 0x4aa   : > { %v5066_v4 = vpop.f32.mrf.mxu1 }
 0x4ab   : > { %v5192_v27 = vmax.f32 %v5061_v20, %v5128_v31  ;;  %v5067_v30 = vadd.f32 %v5066_v4, %v4954_v55  ;;  %v5227_v50 = vpack.c.bf16 %v5191_v18, %v5187_v51  ;;  %v5131_v39 = vmul.f32 0.2, %v5065_v62 }
 0x4ac   : > { %v5068_v47 = vpop.f32.mrf.mxu1 }
 0x4ad   : > { %v5069_v42 = vadd.f32 %v5068_v47, %v4956_v16  ;;  %v5228_v61 = vpack.c.bf16 %v5192_v27, %v5188_v40  ;;  %v5132_v21 = vmul.f32 0.2, %v5067_v30  ;;  %v5195_v10 = vmax.f32 %v5065_v62, %v5131_v39 }
 0x4ae   : > { %v5070_v60 = vpop.f32.mrf.mxu1 }
 0x4af   : > { %v5135_v24 = vmul.f32 0.2, %v5069_v42  ;;  %v5071_v48 = vadd.f32 %v5070_v60, %v4958_v6  ;;  %5673 = vmatprep.mubr.bf16.mxu1 %v5228_v61  ;;  %v5196_v46 = vmax.f32 %v5067_v30, %v5132_v21 }
 0x4b0   : > { %5674 = vmatmul.mubr.bf16.gmra.mxu1 %v5227_v50 }
 0x4b1   : > { %v5136_v53 = vmul.f32 0.2, %v5071_v48  ;;  %v5199_v41 = vmax.f32 %v5069_v42, %v5135_v24 }
 0x4b3   : > { %v5200_v7 = vmax.f32 %v5071_v48, %v5136_v53  ;;  %v5231_v44 = vpack.c.bf16 %v5199_v41, %v5195_v10 }
 0x4b5   : > { %v5232_v54 = vpack.c.bf16 %v5200_v7, %v5196_v46 }
 0x4b7   : > { %5681 = vmatprep.mubr.bf16.mxu1 %v5232_v54 }
 0x4b8   : > { %5682 = vmatmul.mubr.bf16.gmra.mxu1 %v5231_v44 }
 0x500   : > { %v6310_v34 = vpop.f32.mrf.mxu0 }
 0x502   : > { %v6311_v3 = vpop.f32.mrf.mxu0 }
 0x503   : > { %v6312_v25 = vadd.f32 %v6311_v3, %v6310_v34 }
 0x504   : > { %v6313_v11 = vpop.f32.mrf.mxu0 }
 0x505   : > { %v5531_v23 = vadd.f32 %v6312_v25, %v8542_v0 }
 0x506   : > { %v6314_v45 = vpop.f32.mrf.mxu0 }
 0x507   : > { %v6315_v13 = vadd.f32 %v6314_v45, %v6313_v11 }
 0x508   : > { %v6316_v28 = vpop.f32.mrf.mxu0 }
 0x509   : > { %v5534_v15 = vadd.f32 %v6315_v13, %v8542_v0 }
 0x50a   : > { %v6317_v35 = vpop.f32.mrf.mxu0 }
 0x50b   : > { %v6318_v63 = vadd.f32 %v6317_v35, %v6316_v28 }
 0x50c   : > { %v6319_v58 = vpop.f32.mrf.mxu0 }
 0x50d   : > { %v5539_v31 = vadd.f32 %v6318_v63, %v8542_v0 }
 0x50e   : > { %v6320_v5 = vpop.f32.mrf.mxu0 }
 0x50f   : > { %v6321_v22 = vadd.f32 %v6320_v5, %v6319_v58 }
 0x510   : > { %v6322_v14 = vpop.f32.mrf.mxu0 }
 0x511   : > { %v5542_v27 = vadd.f32 %v6321_v22, %v8542_v0 }
 0x512   : > { %v6323_v32 = vpop.f32.mrf.mxu0 }
 0x513   : > { %v6324_v30 = vadd.f32 %v6323_v32, %v6322_v14 }
 0x514   : > { %v6325_v52 = vpop.f32.mrf.mxu0 }
 0x515   : > { %v5547_v61 = vadd.f32 %v6324_v30, %v8542_v0 }
 0x516   : > { %v6326_v26 = vpop.f32.mrf.mxu0 }
 0x517   : > { %v6327_v50 = vadd.f32 %v6326_v26, %v6325_v52 }
 0x518   : > { %v6328_v49 = vpop.f32.mrf.mxu0 }
 0x519   : > { %v5550_v53 = vadd.f32 %v6327_v50, %v8542_v0 }
 0x51a   : > { %v6329_v36 = vpop.f32.mrf.mxu0 }
 0x51b   : > { %v6330_v41 = vadd.f32 %v6329_v36, %v6328_v49 }
 0x51c   : > { %v6331_v19 = vpop.f32.mrf.mxu0 }
 0x51d   : > { %v5555_v34 = vadd.f32 %v6330_v41, %v8542_v0 }
 0x51e   : > { %v6332_v29 = vpop.f32.mrf.mxu0 }
 0x51f   : > { %v6333_v3 = vadd.f32 %v6332_v29, %v6331_v19 }
 0x520   : > { %v6334_v38 = vpop.f32.mrf.mxu0 }
 0x521   : > { %v5558_v5 = vadd.f32 %v6333_v3, %v8542_v0 }
 0x522   : > { %v6335_v9 = vpop.f32.mrf.mxu0 }
 0x523   : > { %v6336_v14 = vadd.f32 %v6335_v9, %v6334_v38 }
 0x524   : > { %v6337_v17 = vpop.f32.mrf.mxu0 }
 0x525   : > { %v5563_v19 = vadd.f32 %v6336_v14, %v8542_v0 }
 0x526   : > { %v6338_v20 = vpop.f32.mrf.mxu0 }
 0x527   : > { %v6339_v29 = vadd.f32 %v6338_v20, %v6337_v17 }
 0x528   : > { %v6340_v18 = vpop.f32.mrf.mxu0 }
 0x52a   : > { %v6341_v62 = vpop.f32.mrf.mxu0 }
 0x52b   : > { %v6342_v13 = vadd.f32 %v6341_v62, %v6340_v18 }
 0x52c   : > { %v6343_v21 = vpop.f32.mrf.mxu0 }
 0x52e   : > { %v6344_v7 = vpop.f32.mrf.mxu0 }
 0x52f   : > { %v6345_v63 = vadd.f32 %v6344_v7, %v6343_v21 }
 0x530   : > { %v6346_v45 = vpop.f32.mrf.mxu0 }
 0x532   : > { %v6347_v52 = vpop.f32.mrf.mxu0 }
 0x533   : > { %v6348_v22 = vadd.f32 %v6347_v52, %v6346_v45 }
 0x540   : > { %v6374_v12 = vpop.f32.mrf.mxu1 }
 0x542   : > { %v6375_v33 = vpop.f32.mrf.mxu1 }
 0x543   : > { %v6376_v43 = vadd.f32 %v6375_v33, %v6374_v12  ;;  %v6349_v12 = vpop.f32.mrf.mxu0 }
 0x544   : > { %v6377_v2 = vpop.f32.mrf.mxu1 }
 0x545   : > { %v5628_v37 = vadd.f32 %v6376_v43, %v5531_v23  ;;  %v5566_v23 = vadd.f32 %v6339_v29, %v8542_v0 }
 0x546   : > { %v6378_v1 = vpop.f32.mrf.mxu1 }
 0x547   : > { %5690 = vst [vmem:[%s8635_s9] sm:$0xff] %v5628_v37  ;;  %v6379_v59 = vadd.f32 %v6378_v1, %v6377_v2  ;;  %v6350_v2 = vpop.f32.mrf.mxu0 }
 0x548   : > { %v6380_v56 = vpop.f32.mrf.mxu1  ;;  %v6351_v30 = vadd.f32 %v6350_v2, %v6349_v12 }
 0x549   : > { %v5631_v57 = vadd.f32 %v6379_v59, %v5534_v15  ;;  %v5571_v15 = vadd.f32 %v6342_v13, %v8542_v0  ;;  %v6352_v20 = vpop.f32.mrf.mxu0 }
 0x54a   : > { %v6381_v55 = vpop.f32.mrf.mxu1 }
 0x54b   : > { %5691 = vst [vmem:[%s8635_s9 + $0x8] sm:$0xff] %v5631_v57  ;;  %v6382_v8 = vadd.f32 %v6381_v55, %v6380_v56  ;;  %v6353_v18 = vpop.f32.mrf.mxu0 }
 0x54c   : > { %v6383_v4 = vpop.f32.mrf.mxu1  ;;  %v6354_v50 = vadd.f32 %v6353_v18, %v6352_v20 }
 0x54d   : > { %v5636_v16 = vadd.f32 %v6382_v8, %v5539_v31  ;;  %v5574_v31 = vadd.f32 %v6345_v63, %v8542_v0  ;;  %v6355_v62 = vpop.f32.mrf.mxu0 }
 0x54e   : > { %v6384_v40 = vpop.f32.mrf.mxu1 }
 0x54f   : > { %5692 = vst [vmem:[%s8635_s9 + $0x10] sm:$0xff] %v5636_v16  ;;  %v6385_v51 = vadd.f32 %v6384_v40, %v6383_v4  ;;  %v6356_v21 = vpop.f32.mrf.mxu0 }
 0x550   : > { %v6386_v47 = vpop.f32.mrf.mxu1  ;;  %v6357_v41 = vadd.f32 %v6356_v21, %v6355_v62 }
 0x551   : > { %v5639_v6 = vadd.f32 %v6385_v51, %v5542_v27  ;;  %v5579_v27 = vadd.f32 %v6348_v22, %v8542_v0 }
 0x552   : > { %v6387_v42 = vpop.f32.mrf.mxu1 }
 0x553   : > { %5693 = vst [vmem:[%s8635_s9 + $0x18] sm:$0xff] %v5639_v6  ;;  %v6388_v60 = vadd.f32 %v6387_v42, %v6386_v47 }
 0x554   : > { %v6389_v24 = vpop.f32.mrf.mxu1 }
 0x555   : > { %v5644_v48 = vadd.f32 %v6388_v60, %v5547_v61  ;;  %v5582_v61 = vadd.f32 %v6351_v30, %v8542_v0 }
 0x556   : > { %v6390_v39 = vpop.f32.mrf.mxu1 }
 0x557   : > { %5694 = vst [vmem:[%s8635_s9 + $0x20] sm:$0xff] %v5644_v48  ;;  %v6391_v46 = vadd.f32 %v6390_v39, %v6389_v24 }
 0x558   : > { %v6392_v10 = vpop.f32.mrf.mxu1 }
 0x559   : > { %v5647_v54 = vadd.f32 %v6391_v46, %v5550_v53  ;;  %v5587_v53 = vadd.f32 %v6354_v50, %v8542_v0 }
 0x55a   : > { %v6393_v44 = vpop.f32.mrf.mxu1 }
 0x55b   : > { %5695 = vst [vmem:[%s8635_s9 + $0x28] sm:$0xff] %v5647_v54  ;;  %v6394_v11 = vadd.f32 %v6393_v44, %v6392_v10  ;;  %v5590_v44 = vadd.f32 %v6357_v41, %v8542_v0 }
 0x55c   : > { %v6395_v28 = vpop.f32.mrf.mxu1 }
 0x55d   : > { %v5652_v35 = vadd.f32 %v6394_v11, %v5555_v34 }
 0x55e   : > { %v6396_v58 = vpop.f32.mrf.mxu1 }
 0x55f   : > { %5696 = vst [vmem:[%s8635_s9 + $0x30] sm:$0xff] %v5652_v35  ;;  %v6397_v32 = vadd.f32 %v6396_v58, %v6395_v28 }
 0x560   : > { %v6398_v26 = vpop.f32.mrf.mxu1 }
 0x561   : > { %v5655_v49 = vadd.f32 %v6397_v32, %v5558_v5 }
 0x562   : > { %v6399_v36 = vpop.f32.mrf.mxu1 }
 0x563   : > { %5697 = vst [vmem:[%s8635_s9 + $0x38] sm:$0xff] %v5655_v49  ;;  %v6400_v25 = vadd.f32 %v6399_v36, %v6398_v26 }
 0x564   : > { %v6401_v33 = vpop.f32.mrf.mxu1 }
 0x565   : > { %v5660_v38 = vadd.f32 %v6400_v25, %v5563_v19 }
 0x566   : > { %v6402_v9 = vpop.f32.mrf.mxu1 }
 0x567   : > { %5698 = vst [vmem:[%s8635_s9 + $0x40] sm:$0xff] %v5660_v38  ;;  %v6403_v43 = vadd.f32 %v6402_v9, %v6401_v33 }
 0x568   : > { %v6404_v37 = vpop.f32.mrf.mxu1 }
 0x569   : > { %v5663_v17 = vadd.f32 %v6403_v43, %v5566_v23 }
 0x56a   : > { %v6405_v1 = vpop.f32.mrf.mxu1 }
 0x56b   : > { %5699 = vst [vmem:[%s8635_s9 + $0x48] sm:$0xff] %v5663_v17  ;;  %v6406_v59 = vadd.f32 %v6405_v1, %v6404_v37 }
 0x56c   : > { %v6407_v56 = vpop.f32.mrf.mxu1 }
 0x56d   : > { %v5668_v57 = vadd.f32 %v6406_v59, %v5571_v15 }
 0x56e   : > { %v6408_v55 = vpop.f32.mrf.mxu1 }
 0x56f   : > { %5700 = vst [vmem:[%s8635_s9 + $0x50] sm:$0xff] %v5668_v57  ;;  %v6409_v8 = vadd.f32 %v6408_v55, %v6407_v56 }
 0x570   : > { %v6410_v4 = vpop.f32.mrf.mxu1 }
 0x571   : > { %v5671_v16 = vadd.f32 %v6409_v8, %v5574_v31 }
 0x572   : > { %v6411_v40 = vpop.f32.mrf.mxu1 }
 0x573   : > { %5701 = vst [vmem:[%s8635_s9 + $0x58] sm:$0xff] %v5671_v16  ;;  %v6412_v51 = vadd.f32 %v6411_v40, %v6410_v4 }
 0x574   : > { %v6413_v47 = vpop.f32.mrf.mxu1 }
 0x575   : > { %v5676_v6 = vadd.f32 %v6412_v51, %v5579_v27 }
 0x576   : > { %v6414_v42 = vpop.f32.mrf.mxu1 }
 0x577   : > { %5702 = vst [vmem:[%s8635_s9 + $0x60] sm:$0xff] %v5676_v6  ;;  %v6415_v60 = vadd.f32 %v6414_v42, %v6413_v47 }
 0x578   : > { %v6416_v24 = vpop.f32.mrf.mxu1 }
 0x579   : > { %v5679_v48 = vadd.f32 %v6415_v60, %v5582_v61 }
 0x57a   : > { %v6417_v39 = vpop.f32.mrf.mxu1 }
 0x57b   : > { %5703 = vst [vmem:[%s8635_s9 + $0x68] sm:$0xff] %v5679_v48  ;;  %v6418_v46 = vadd.f32 %v6417_v39, %v6416_v24 }
 0x57c   : > { %v6419_v7 = vpop.f32.mrf.mxu1 }
 0x57d   : > { %v5684_v10 = vadd.f32 %v6418_v46, %v5587_v53 }
 0x57e   : > { %v6420_v54 = vpop.f32.mrf.mxu1 }
 0x57f   : > { %5704 = vst [vmem:[%s8635_s9 + $0x70] sm:$0xff] %v5684_v10  ;;  %v6421_v34 = vadd.f32 %v6420_v54, %v6419_v7 }
 0x581   : > { %v5687_v3 = vadd.f32 %v6421_v34, %v5590_v44 }
 0x583   : > { %5705 = vst [vmem:[%s8635_s9 + $0x78] sm:$0xff] %v5687_v3 }
 0x584 PF: > { %s23_s14 = sadd.s32 1, %s7285_s14   ;;  %s8652_s27 = sld [smem:[#allocation11_spill]] }
 0x585   : > { %p20_p4 = scmp.ge.s32.totalorder %s23_s14, 4   ;;  %s8653_s30 = smov %s7269_s10 }
 0x586   : > { %s8654_s10 = smov %s7273_s11  ;;  %s8655_s11 = smov %s7400_s22 }
 0x587   : > { %s8656_s12 = smov %s7281_s13  ;;  %22 = sbr.rel (!%p20_p4) target bundleno = 8 (0x8), region = 143 }
 0x58a   : > { %s8657_s13 = smov %s8652_s27 }
 0x58c   :  { %5728 = vsyncpa [#allocation5], 1 }
 0x58d   :  { %5730 = vsyncpa [#allocation5 + $0x1], 1 }
 0x58e   :  { %5731 = vsyncpa [#allocation7], 1 }

</bundles_post_ra>
